<compile_context>
chip_gen: v6e
topology: v6e:2x2x1
jax: 0.10.0
libtpu: 0.0.40
codegen_flags: <defaults>
</compile_context>

<pallas_src>
import jax
import jax.numpy as jnp
from jax.experimental import pallas as pl
from jax.experimental.pallas import tpu as pltpu

FEAT = 256
NROW, NCOL = 4, 4
NCORE = NROW * NCOL          # 16 cores
FLAT = NCORE * FEAT          # 4096 flat feature width (input and output)


def _round_up(n, m):
    return ((n + m - 1) // m) * m


def _cdiv(a, b):
    return -(-a // b)


# ---------------------------------------------------------------------------
# Kernel: one batch tile, all 16 per-core matmuls (K = 256 each).
# ---------------------------------------------------------------------------
def eic_kernel(x_ref, w_ref, o_ref):
    # x_ref: (TB, 4096) bf16  -- per-core gathered inputs, lanes [c*256:(c+1)*256]
    # w_ref: (16, 256, 256) bf16 -- per-core W^T (192-input cores zero padded)
    # o_ref: (TB, 4096) f32   -- flat lane-dense output, lanes [c*256:(c+1)*256]
    for core in range(NCORE):
        xc = x_ref[:, core * FEAT:(core + 1) * FEAT]              # lane-aligned slice
        y = jnp.dot(xc, w_ref[core],
                    preferred_element_type=jnp.float32)           # (TB, 256) f32, MXU
        m = jnp.max(y, axis=1, keepdims=True)                     # max over out features
        o_ref[:, core * FEAT:(core + 1) * FEAT] = jax.nn.sigmoid(y - 0.5 * m)


# ---------------------------------------------------------------------------
# Wrapper
# ---------------------------------------------------------------------------
def eic_layer2(x, w_packed):
    """x: (B, 4, 4, 256) f32 activation grid; w_packed: (16, 256, 256) bf16."""
    B = x.shape[0]

    # Batch tiling: tiles are multiples of 8 sublanes, capped at 256.  If one
    # tile would cover the whole batch and the batch is large enough, use two
    # tiles so the "parallel" grid axis can split across v7x's 2 TensorCores.
    nt = _cdiv(B, 256)
    if nt == 1 and B >= 64:
        nt = 2
    TB = _round_up(_cdiv(B, nt), 8)
    Bp = nt * TB

    # Only wrapper glue: fold the per-core 64-lane gather into one fused
    # transpose + bf16 convert.  For core c = row*4 + col, lanes
    # [c*256:(c+1)*256] of xg are concat_l x[:, row, l, col*64:(col+1)*64]
    # (== the PyTorch chunk; the extra l=3 block on row 3 hits zero weight
    # rows, so it contributes nothing).
    xg = (x.reshape(B, NROW, NCOL, NCOL, 64)
            .transpose(0, 1, 3, 2, 4)
            .reshape(B, FLAT)
            .astype(jnp.bfloat16))
    if Bp != B:
        xg = jnp.pad(xg, ((0, Bp - B), (0, 0)))

    cost = pl.CostEstimate(
        flops=2 * Bp * NCORE * FEAT * FEAT,
        transcendentals=Bp * NCORE * FEAT,
        bytes_accessed=Bp * FLAT * 2 + NCORE * FEAT * FEAT * 2 + Bp * FLAT * 4,
    )

    out = pl.pallas_call(
        eic_kernel,
        out_shape=jax.ShapeDtypeStruct((Bp, FLAT), jnp.float32),
        grid_spec=pltpu.PrefetchScalarGridSpec(
            num_scalar_prefetch=0,
            grid=(Bp // TB,),
            in_specs=[
                pl.BlockSpec((TB, FLAT), lambda b: (b, 0)),
                # Constant index -> weights stay resident in VMEM across tiles.
                pl.BlockSpec((NCORE, FEAT, FEAT), lambda b: (0, 0, 0)),
            ],
            out_specs=pl.BlockSpec((TB, FLAT), lambda b: (b, 0)),
        ),
        compiler_params=pltpu.CompilerParams(
            dimension_semantics=("parallel",),
            vmem_limit_bytes=48 * 1024 * 1024),
        cost_estimate=cost,
    )(xg, w_packed)

    if Bp != B:
        out = out[:B]
    # Free view: flat lane index core*256 + f == row-major (row, col, f)
    # with core = row*4 + col, matching activations_grid[:, row, col, :].
    return out.reshape(B, NROW, NCOL, FEAT)


# ---------------------------------------------------------------------------
# Parameters
# ---------------------------------------------------------------------------
def init_weights(key):
    """Per-core torch nn.Linear-style weights, shape (out=256, in) each."""
    raw = []
    for i in range(NCORE):
        in_f = 256 if i < 12 else 192
        key, sub = jax.random.split(key)
        bound = in_f ** -0.5
        raw.append(jax.random.uniform(sub, (FEAT, in_f),
                                      minval=-bound, maxval=bound,
                                      dtype=jnp.float32))
    return raw


def pack_weights(raw):
    """Stack per-core W^T as (16, 256, 256) bf16; 192-input cores are padded
    with zero rows so the extra gathered input lanes contribute nothing."""
    ws = []
    for w in raw:
        wt = w.T.astype(jnp.float32)                    # (in_f, 256)
        if wt.shape[0] < FEAT:
            wt = jnp.pad(wt, ((0, FEAT - wt.shape[0]), (0, 0)))
        ws.append(wt)
    return jnp.stack(ws, axis=0).astype(jnp.bfloat16)   # (16, 256, 256)


# ---------------------------------------------------------------------------
# Plain-JAX reference mirroring the PyTorch forward (f32 throughout)
# ---------------------------------------------------------------------------
def reference(x, raw_weights):
    core = 0
    rows = []
    for row in range(NROW):
        n_l1 = 3 if row == 3 else 4
        cols = []
        for col in range(NCOL):
            s = 64 * col
            chunk = jnp.concatenate(
                [x[:, row, l, s:s + 64] for l in range(n_l1)], axis=1)
            y = chunk @ raw_weights[core].T
            m = jnp.max(y, axis=1, keepdims=True)
            cols.append(jax.nn.sigmoid(y - 0.5 * m))
            core += 1
        rows.append(jnp.stack(cols, axis=1))
    return jnp.stack(rows, axis=1)              # (B, 4, 4, 256)


if __name__ == "__main__":
    key = jax.random.PRNGKey(0)
    kx, kw = jax.random.split(key)

    B = 2
    x = jax.random.uniform(kx, (B, NROW, NCOL, FEAT), dtype=jnp.float32)
    raw_w = init_weights(kw)
    w_packed = pack_weights(raw_w)

    fwd = jax.jit(eic_layer2)
    y = jax.block_until_ready(fwd(x, w_packed))

    y_ref = reference(x, raw_w)
    assert y.shape == (B, NROW, NCOL, FEAT)
    max_err = float(jnp.max(jnp.abs(y - y_ref)))
    assert jnp.allclose(y, y_ref, atol=3e-2, rtol=0.0), \
        f"mismatch vs reference (max abs err {max_err})"

    print("KERNEL_OK")
</pallas_src>

<mosaic_0001>
module attributes {stable_mosaic.version = 11 : i64} {
  func.func @eic_kernel(%arg0: i32, %arg1: memref<8x4096xbf16, #tpu.memory_space<vmem>>, %arg2: memref<16x256x256xbf16, #tpu.memory_space<vmem>>, %arg3: memref<8x4096xf32, #tpu.memory_space<vmem>>) attributes {dimension_semantics = [#tpu.dimension_semantics<parallel>], iteration_bounds = array<i64: 1>, scalar_prefetch = 0 : i64, scratch_operands = 0 : i64, tpu.core_type = #tpu.core_type<tc>, window_params = [{transform_indices = @transform_0, window_bounds = array<i64: 8, 4096>}, {pipeline_mode = #tpu.pipeline_mode<synchronous>, transform_indices = @transform_1, window_bounds = array<i64: 16, 256, 256>}, {transform_indices = @transform_2, window_bounds = array<i64: 8, 4096>}]} {
    %c0 = arith.constant 0 : index
    %c0_0 = arith.constant 0 : index
    %0 = vector.load %arg1[%c0, %c0_0] : memref<8x4096xbf16, #tpu.memory_space<vmem>>, vector<8x256xbf16>
    %c0_1 = arith.constant 0 : index
    %c0_2 = arith.constant 0 : index
    %c0_3 = arith.constant 0 : index
    %1 = vector.load %arg2[%c0_1, %c0_2, %c0_3] : memref<16x256x256xbf16, #tpu.memory_space<vmem>>, vector<1x256x256xbf16>
    %2 = vector.shape_cast %1 : vector<1x256x256xbf16> to vector<256x256xbf16>
    %cst = arith.constant dense<0.000000e+00> : vector<8x256xf32>
    %3 = tpu.matmul %0, %2, %cst {dimension_numbers = #tpu.dot_dimension_numbers<[1], [0], [0], [1], [0, 0, 1, 1], [], []>} : vector<8x256xbf16>, vector<256x256xbf16>, vector<8x256xf32> -> vector<8x256xf32>
    %cst_4 = arith.constant dense<0xFF800000> : vector<8xf32>
    %4 = vector.multi_reduction <maximumf>, %3, %cst_4 [1] : vector<8x256xf32> to vector<8xf32>
    %5 = vector.shape_cast %4 : vector<8xf32> to vector<8x1xf32>
    %cst_5 = arith.constant 5.000000e-01 : f32
    %6 = vector.broadcast %cst_5 : f32 to vector<8x1xf32>
    %7 = arith.mulf %6, %5 : vector<8x1xf32>
    %8 = vector.broadcast %7 : vector<8x1xf32> to vector<8x256xf32>
    %9 = arith.subf %3, %8 : vector<8x256xf32>
    %10 = arith.negf %9 : vector<8x256xf32>
    %11 = math.exp %10 : vector<8x256xf32>
    %cst_6 = arith.constant 1.000000e+00 : f32
    %12 = vector.broadcast %cst_6 : f32 to vector<8x256xf32>
    %13 = arith.addf %12, %11 : vector<8x256xf32>
    %14 = arith.divf %12, %13 : vector<8x256xf32>
    %c0_7 = arith.constant 0 : index
    %c0_8 = arith.constant 0 : index
    %15 = vector.load %arg3[%c0_7, %c0_8] : memref<8x4096xf32, #tpu.memory_space<vmem>>, vector<8x256xf32>
    tpu.vector_store %arg3[%c0_7, %c0_8], %14 {strides = array<i32>} : memref<8x4096xf32, #tpu.memory_space<vmem>>, vector<8x256xf32>,
    %c0_9 = arith.constant 0 : index
    %c256 = arith.constant 256 : index
    %16 = vector.load %arg1[%c0_9, %c256] : memref<8x4096xbf16, #tpu.memory_space<vmem>>, vector<8x256xbf16>
    %c1 = arith.constant 1 : index
    %c0_10 = arith.constant 0 : index
    %c0_11 = arith.constant 0 : index
    %17 = vector.load %arg2[%c1, %c0_10, %c0_11] : memref<16x256x256xbf16, #tpu.memory_space<vmem>>, vector<1x256x256xbf16>
    %18 = vector.shape_cast %17 : vector<1x256x256xbf16> to vector<256x256xbf16>
    %cst_12 = arith.constant dense<0.000000e+00> : vector<8x256xf32>
    %19 = tpu.matmul %16, %18, %cst_12 {dimension_numbers = #tpu.dot_dimension_numbers<[1], [0], [0], [1], [0, 0, 1, 1], [], []>} : vector<8x256xbf16>, vector<256x256xbf16>, vector<8x256xf32> -> vector<8x256xf32>
    %cst_13 = arith.constant dense<0xFF800000> : vector<8xf32>
    %20 = vector.multi_reduction <maximumf>, %19, %cst_13 [1] : vector<8x256xf32> to vector<8xf32>
    %21 = vector.shape_cast %20 : vector<8xf32> to vector<8x1xf32>
    %cst_14 = arith.constant 5.000000e-01 : f32
    %22 = vector.broadcast %cst_14 : f32 to vector<8x1xf32>
    %23 = arith.mulf %22, %21 : vector<8x1xf32>
    %24 = vector.broadcast %23 : vector<8x1xf32> to vector<8x256xf32>
    %25 = arith.subf %19, %24 : vector<8x256xf32>
    %26 = arith.negf %25 : vector<8x256xf32>
    %27 = math.exp %26 : vector<8x256xf32>
    %cst_15 = arith.constant 1.000000e+00 : f32
    %28 = vector.broadcast %cst_15 : f32 to vector<8x256xf32>
    %29 = arith.addf %28, %27 : vector<8x256xf32>
    %30 = arith.divf %28, %29 : vector<8x256xf32>
    %c0_16 = arith.constant 0 : index
    %c256_17 = arith.constant 256 : index
    %31 = vector.load %arg3[%c0_16, %c256_17] : memref<8x4096xf32, #tpu.memory_space<vmem>>, vector<8x256xf32>
    tpu.vector_store %arg3[%c0_16, %c256_17], %30 {strides = array<i32>} : memref<8x4096xf32, #tpu.memory_space<vmem>>, vector<8x256xf32>,
    %c0_18 = arith.constant 0 : index
    %c512 = arith.constant 512 : index
    %32 = vector.load %arg1[%c0_18, %c512] : memref<8x4096xbf16, #tpu.memory_space<vmem>>, vector<8x256xbf16>
    %c2 = arith.constant 2 : index
    %c0_19 = arith.constant 0 : index
    %c0_20 = arith.constant 0 : index
    %33 = vector.load %arg2[%c2, %c0_19, %c0_20] : memref<16x256x256xbf16, #tpu.memory_space<vmem>>, vector<1x256x256xbf16>
    %34 = vector.shape_cast %33 : vector<1x256x256xbf16> to vector<256x256xbf16>
    %cst_21 = arith.constant dense<0.000000e+00> : vector<8x256xf32>
    %35 = tpu.matmul %32, %34, %cst_21 {dimension_numbers = #tpu.dot_dimension_numbers<[1], [0], [0], [1], [0, 0, 1, 1], [], []>} : vector<8x256xbf16>, vector<256x256xbf16>, vector<8x256xf32> -> vector<8x256xf32>
    %cst_22 = arith.constant dense<0xFF800000> : vector<8xf32>
    %36 = vector.multi_reduction <maximumf>, %35, %cst_22 [1] : vector<8x256xf32> to vector<8xf32>
    %37 = vector.shape_cast %36 : vector<8xf32> to vector<8x1xf32>
    %cst_23 = arith.constant 5.000000e-01 : f32
    %38 = vector.broadcast %cst_23 : f32 to vector<8x1xf32>
    %39 = arith.mulf %38, %37 : vector<8x1xf32>
    %40 = vector.broadcast %39 : vector<8x1xf32> to vector<8x256xf32>
    %41 = arith.subf %35, %40 : vector<8x256xf32>
    %42 = arith.negf %41 : vector<8x256xf32>
    %43 = math.exp %42 : vector<8x256xf32>
    %cst_24 = arith.constant 1.000000e+00 : f32
    %44 = vector.broadcast %cst_24 : f32 to vector<8x256xf32>
    %45 = arith.addf %44, %43 : vector<8x256xf32>
    %46 = arith.divf %44, %45 : vector<8x256xf32>
    %c0_25 = arith.constant 0 : index
    %c512_26 = arith.constant 512 : index
    %47 = vector.load %arg3[%c0_25, %c512_26] : memref<8x4096xf32, #tpu.memory_space<vmem>>, vector<8x256xf32>
    tpu.vector_store %arg3[%c0_25, %c512_26], %46 {strides = array<i32>} : memref<8x4096xf32, #tpu.memory_space<vmem>>, vector<8x256xf32>,
    %c0_27 = arith.constant 0 : index
    %c768 = arith.constant 768 : index
    %48 = vector.load %arg1[%c0_27, %c768] : memref<8x4096xbf16, #tpu.memory_space<vmem>>, vector<8x256xbf16>
    %c3 = arith.constant 3 : index
    %c0_28 = arith.constant 0 : index
    %c0_29 = arith.constant 0 : index
    %49 = vector.load %arg2[%c3, %c0_28, %c0_29] : memref<16x256x256xbf16, #tpu.memory_space<vmem>>, vector<1x256x256xbf16>
    %50 = vector.shape_cast %49 : vector<1x256x256xbf16> to vector<256x256xbf16>
    %cst_30 = arith.constant dense<0.000000e+00> : vector<8x256xf32>
    %51 = tpu.matmul %48, %50, %cst_30 {dimension_numbers = #tpu.dot_dimension_numbers<[1], [0], [0], [1], [0, 0, 1, 1], [], []>} : vector<8x256xbf16>, vector<256x256xbf16>, vector<8x256xf32> -> vector<8x256xf32>
    %cst_31 = arith.constant dense<0xFF800000> : vector<8xf32>
    %52 = vector.multi_reduction <maximumf>, %51, %cst_31 [1] : vector<8x256xf32> to vector<8xf32>
    %53 = vector.shape_cast %52 : vector<8xf32> to vector<8x1xf32>
    %cst_32 = arith.constant 5.000000e-01 : f32
    %54 = vector.broadcast %cst_32 : f32 to vector<8x1xf32>
    %55 = arith.mulf %54, %53 : vector<8x1xf32>
    %56 = vector.broadcast %55 : vector<8x1xf32> to vector<8x256xf32>
    %57 = arith.subf %51, %56 : vector<8x256xf32>
    %58 = arith.negf %57 : vector<8x256xf32>
    %59 = math.exp %58 : vector<8x256xf32>
    %cst_33 = arith.constant 1.000000e+00 : f32
    %60 = vector.broadcast %cst_33 : f32 to vector<8x256xf32>
    %61 = arith.addf %60, %59 : vector<8x256xf32>
    %62 = arith.divf %60, %61 : vector<8x256xf32>
    %c0_34 = arith.constant 0 : index
    %c768_35 = arith.constant 768 : index
    %63 = vector.load %arg3[%c0_34, %c768_35] : memref<8x4096xf32, #tpu.memory_space<vmem>>, vector<8x256xf32>
    tpu.vector_store %arg3[%c0_34, %c768_35], %62 {strides = array<i32>} : memref<8x4096xf32, #tpu.memory_space<vmem>>, vector<8x256xf32>,
    %c0_36 = arith.constant 0 : index
    %c1024 = arith.constant 1024 : index
    %64 = vector.load %arg1[%c0_36, %c1024] : memref<8x4096xbf16, #tpu.memory_space<vmem>>, vector<8x256xbf16>
    %c4 = arith.constant 4 : index
    %c0_37 = arith.constant 0 : index
    %c0_38 = arith.constant 0 : index
    %65 = vector.load %arg2[%c4, %c0_37, %c0_38] : memref<16x256x256xbf16, #tpu.memory_space<vmem>>, vector<1x256x256xbf16>
    %66 = vector.shape_cast %65 : vector<1x256x256xbf16> to vector<256x256xbf16>
    %cst_39 = arith.constant dense<0.000000e+00> : vector<8x256xf32>
    %67 = tpu.matmul %64, %66, %cst_39 {dimension_numbers = #tpu.dot_dimension_numbers<[1], [0], [0], [1], [0, 0, 1, 1], [], []>} : vector<8x256xbf16>, vector<256x256xbf16>, vector<8x256xf32> -> vector<8x256xf32>
    %cst_40 = arith.constant dense<0xFF800000> : vector<8xf32>
    %68 = vector.multi_reduction <maximumf>, %67, %cst_40 [1] : vector<8x256xf32> to vector<8xf32>
    %69 = vector.shape_cast %68 : vector<8xf32> to vector<8x1xf32>
    %cst_41 = arith.constant 5.000000e-01 : f32
    %70 = vector.broadcast %cst_41 : f32 to vector<8x1xf32>
    %71 = arith.mulf %70, %69 : vector<8x1xf32>
    %72 = vector.broadcast %71 : vector<8x1xf32> to vector<8x256xf32>
    %73 = arith.subf %67, %72 : vector<8x256xf32>
    %74 = arith.negf %73 : vector<8x256xf32>
    %75 = math.exp %74 : vector<8x256xf32>
    %cst_42 = arith.constant 1.000000e+00 : f32
    %76 = vector.broadcast %cst_42 : f32 to vector<8x256xf32>
    %77 = arith.addf %76, %75 : vector<8x256xf32>
    %78 = arith.divf %76, %77 : vector<8x256xf32>
    %c0_43 = arith.constant 0 : index
    %c1024_44 = arith.constant 1024 : index
    %79 = vector.load %arg3[%c0_43, %c1024_44] : memref<8x4096xf32, #tpu.memory_space<vmem>>, vector<8x256xf32>
    tpu.vector_store %arg3[%c0_43, %c1024_44], %78 {strides = array<i32>} : memref<8x4096xf32, #tpu.memory_space<vmem>>, vector<8x256xf32>,
    %c0_45 = arith.constant 0 : index
    %c1280 = arith.constant 1280 : index
    %80 = vector.load %arg1[%c0_45, %c1280] : memref<8x4096xbf16, #tpu.memory_space<vmem>>, vector<8x256xbf16>
    %c5 = arith.constant 5 : index
    %c0_46 = arith.constant 0 : index
    %c0_47 = arith.constant 0 : index
    %81 = vector.load %arg2[%c5, %c0_46, %c0_47] : memref<16x256x256xbf16, #tpu.memory_space<vmem>>, vector<1x256x256xbf16>
    %82 = vector.shape_cast %81 : vector<1x256x256xbf16> to vector<256x256xbf16>
    %cst_48 = arith.constant dense<0.000000e+00> : vector<8x256xf32>
    %83 = tpu.matmul %80, %82, %cst_48 {dimension_numbers = #tpu.dot_dimension_numbers<[1], [0], [0], [1], [0, 0, 1, 1], [], []>} : vector<8x256xbf16>, vector<256x256xbf16>, vector<8x256xf32> -> vector<8x256xf32>
    %cst_49 = arith.constant dense<0xFF800000> : vector<8xf32>
    %84 = vector.multi_reduction <maximumf>, %83, %cst_49 [1] : vector<8x256xf32> to vector<8xf32>
    %85 = vector.shape_cast %84 : vector<8xf32> to vector<8x1xf32>
    %cst_50 = arith.constant 5.000000e-01 : f32
    %86 = vector.broadcast %cst_50 : f32 to vector<8x1xf32>
    %87 = arith.mulf %86, %85 : vector<8x1xf32>
    %88 = vector.broadcast %87 : vector<8x1xf32> to vector<8x256xf32>
    %89 = arith.subf %83, %88 : vector<8x256xf32>
    %90 = arith.negf %89 : vector<8x256xf32>
    %91 = math.exp %90 : vector<8x256xf32>
    %cst_51 = arith.constant 1.000000e+00 : f32
    %92 = vector.broadcast %cst_51 : f32 to vector<8x256xf32>
    %93 = arith.addf %92, %91 : vector<8x256xf32>
    %94 = arith.divf %92, %93 : vector<8x256xf32>
    %c0_52 = arith.constant 0 : index
    %c1280_53 = arith.constant 1280 : index
    %95 = vector.load %arg3[%c0_52, %c1280_53] : memref<8x4096xf32, #tpu.memory_space<vmem>>, vector<8x256xf32>
    tpu.vector_store %arg3[%c0_52, %c1280_53], %94 {strides = array<i32>} : memref<8x4096xf32, #tpu.memory_space<vmem>>, vector<8x256xf32>,
    %c0_54 = arith.constant 0 : index
    %c1536 = arith.constant 1536 : index
    %96 = vector.load %arg1[%c0_54, %c1536] : memref<8x4096xbf16, #tpu.memory_space<vmem>>, vector<8x256xbf16>
    %c6 = arith.constant 6 : index
    %c0_55 = arith.constant 0 : index
    %c0_56 = arith.constant 0 : index
    %97 = vector.load %arg2[%c6, %c0_55, %c0_56] : memref<16x256x256xbf16, #tpu.memory_space<vmem>>, vector<1x256x256xbf16>
    %98 = vector.shape_cast %97 : vector<1x256x256xbf16> to vector<256x256xbf16>
    %cst_57 = arith.constant dense<0.000000e+00> : vector<8x256xf32>
    %99 = tpu.matmul %96, %98, %cst_57 {dimension_numbers = #tpu.dot_dimension_numbers<[1], [0], [0], [1], [0, 0, 1, 1], [], []>} : vector<8x256xbf16>, vector<256x256xbf16>, vector<8x256xf32> -> vector<8x256xf32>
    %cst_58 = arith.constant dense<0xFF800000> : vector<8xf32>
    %100 = vector.multi_reduction <maximumf>, %99, %cst_58 [1] : vector<8x256xf32> to vector<8xf32>
    %101 = vector.shape_cast %100 : vector<8xf32> to vector<8x1xf32>
    %cst_59 = arith.constant 5.000000e-01 : f32
    %102 = vector.broadcast %cst_59 : f32 to vector<8x1xf32>
    %103 = arith.mulf %102, %101 : vector<8x1xf32>
    %104 = vector.broadcast %103 : vector<8x1xf32> to vector<8x256xf32>
    %105 = arith.subf %99, %104 : vector<8x256xf32>
    %106 = arith.negf %105 : vector<8x256xf32>
    %107 = math.exp %106 : vector<8x256xf32>
    %cst_60 = arith.constant 1.000000e+00 : f32
    %108 = vector.broadcast %cst_60 : f32 to vector<8x256xf32>
    %109 = arith.addf %108, %107 : vector<8x256xf32>
    %110 = arith.divf %108, %109 : vector<8x256xf32>
    %c0_61 = arith.constant 0 : index
    %c1536_62 = arith.constant 1536 : index
    %111 = vector.load %arg3[%c0_61, %c1536_62] : memref<8x4096xf32, #tpu.memory_space<vmem>>, vector<8x256xf32>
    tpu.vector_store %arg3[%c0_61, %c1536_62], %110 {strides = array<i32>} : memref<8x4096xf32, #tpu.memory_space<vmem>>, vector<8x256xf32>,
    %c0_63 = arith.constant 0 : index
    %c1792 = arith.constant 1792 : index
    %112 = vector.load %arg1[%c0_63, %c1792] : memref<8x4096xbf16, #tpu.memory_space<vmem>>, vector<8x256xbf16>
    %c7 = arith.constant 7 : index
    %c0_64 = arith.constant 0 : index
    %c0_65 = arith.constant 0 : index
    %113 = vector.load %arg2[%c7, %c0_64, %c0_65] : memref<16x256x256xbf16, #tpu.memory_space<vmem>>, vector<1x256x256xbf16>
    %114 = vector.shape_cast %113 : vector<1x256x256xbf16> to vector<256x256xbf16>
    %cst_66 = arith.constant dense<0.000000e+00> : vector<8x256xf32>
    %115 = tpu.matmul %112, %114, %cst_66 {dimension_numbers = #tpu.dot_dimension_numbers<[1], [0], [0], [1], [0, 0, 1, 1], [], []>} : vector<8x256xbf16>, vector<256x256xbf16>, vector<8x256xf32> -> vector<8x256xf32>
    %cst_67 = arith.constant dense<0xFF800000> : vector<8xf32>
    %116 = vector.multi_reduction <maximumf>, %115, %cst_67 [1] : vector<8x256xf32> to vector<8xf32>
    %117 = vector.shape_cast %116 : vector<8xf32> to vector<8x1xf32>
    %cst_68 = arith.constant 5.000000e-01 : f32
    %118 = vector.broadcast %cst_68 : f32 to vector<8x1xf32>
    %119 = arith.mulf %118, %117 : vector<8x1xf32>
    %120 = vector.broadcast %119 : vector<8x1xf32> to vector<8x256xf32>
    %121 = arith.subf %115, %120 : vector<8x256xf32>
    %122 = arith.negf %121 : vector<8x256xf32>
    %123 = math.exp %122 : vector<8x256xf32>
    %cst_69 = arith.constant 1.000000e+00 : f32
    %124 = vector.broadcast %cst_69 : f32 to vector<8x256xf32>
    %125 = arith.addf %124, %123 : vector<8x256xf32>
    %126 = arith.divf %124, %125 : vector<8x256xf32>
    %c0_70 = arith.constant 0 : index
    %c1792_71 = arith.constant 1792 : index
    %127 = vector.load %arg3[%c0_70, %c1792_71] : memref<8x4096xf32, #tpu.memory_space<vmem>>, vector<8x256xf32>
    tpu.vector_store %arg3[%c0_70, %c1792_71], %126 {strides = array<i32>} : memref<8x4096xf32, #tpu.memory_space<vmem>>, vector<8x256xf32>,
    %c0_72 = arith.constant 0 : index
    %c2048 = arith.constant 2048 : index
    %128 = vector.load %arg1[%c0_72, %c2048] : memref<8x4096xbf16, #tpu.memory_space<vmem>>, vector<8x256xbf16>
    %c8 = arith.constant 8 : index
    %c0_73 = arith.constant 0 : index
    %c0_74 = arith.constant 0 : index
    %129 = vector.load %arg2[%c8, %c0_73, %c0_74] : memref<16x256x256xbf16, #tpu.memory_space<vmem>>, vector<1x256x256xbf16>
    %130 = vector.shape_cast %129 : vector<1x256x256xbf16> to vector<256x256xbf16>
    %cst_75 = arith.constant dense<0.000000e+00> : vector<8x256xf32>
    %131 = tpu.matmul %128, %130, %cst_75 {dimension_numbers = #tpu.dot_dimension_numbers<[1], [0], [0], [1], [0, 0, 1, 1], [], []>} : vector<8x256xbf16>, vector<256x256xbf16>, vector<8x256xf32> -> vector<8x256xf32>
    %cst_76 = arith.constant dense<0xFF800000> : vector<8xf32>
    %132 = vector.multi_reduction <maximumf>, %131, %cst_76 [1] : vector<8x256xf32> to vector<8xf32>
    %133 = vector.shape_cast %132 : vector<8xf32> to vector<8x1xf32>
    %cst_77 = arith.constant 5.000000e-01 : f32
    %134 = vector.broadcast %cst_77 : f32 to vector<8x1xf32>
    %135 = arith.mulf %134, %133 : vector<8x1xf32>
    %136 = vector.broadcast %135 : vector<8x1xf32> to vector<8x256xf32>
    %137 = arith.subf %131, %136 : vector<8x256xf32>
    %138 = arith.negf %137 : vector<8x256xf32>
    %139 = math.exp %138 : vector<8x256xf32>
    %cst_78 = arith.constant 1.000000e+00 : f32
    %140 = vector.broadcast %cst_78 : f32 to vector<8x256xf32>
    %141 = arith.addf %140, %139 : vector<8x256xf32>
    %142 = arith.divf %140, %141 : vector<8x256xf32>
    %c0_79 = arith.constant 0 : index
    %c2048_80 = arith.constant 2048 : index
    %143 = vector.load %arg3[%c0_79, %c2048_80] : memref<8x4096xf32, #tpu.memory_space<vmem>>, vector<8x256xf32>
    tpu.vector_store %arg3[%c0_79, %c2048_80], %142 {strides = array<i32>} : memref<8x4096xf32, #tpu.memory_space<vmem>>, vector<8x256xf32>,
    %c0_81 = arith.constant 0 : index
    %c2304 = arith.constant 2304 : index
    %144 = vector.load %arg1[%c0_81, %c2304] : memref<8x4096xbf16, #tpu.memory_space<vmem>>, vector<8x256xbf16>
    %c9 = arith.constant 9 : index
    %c0_82 = arith.constant 0 : index
    %c0_83 = arith.constant 0 : index
    %145 = vector.load %arg2[%c9, %c0_82, %c0_83] : memref<16x256x256xbf16, #tpu.memory_space<vmem>>, vector<1x256x256xbf16>
    %146 = vector.shape_cast %145 : vector<1x256x256xbf16> to vector<256x256xbf16>
    %cst_84 = arith.constant dense<0.000000e+00> : vector<8x256xf32>
    %147 = tpu.matmul %144, %146, %cst_84 {dimension_numbers = #tpu.dot_dimension_numbers<[1], [0], [0], [1], [0, 0, 1, 1], [], []>} : vector<8x256xbf16>, vector<256x256xbf16>, vector<8x256xf32> -> vector<8x256xf32>
    %cst_85 = arith.constant dense<0xFF800000> : vector<8xf32>
    %148 = vector.multi_reduction <maximumf>, %147, %cst_85 [1] : vector<8x256xf32> to vector<8xf32>
    %149 = vector.shape_cast %148 : vector<8xf32> to vector<8x1xf32>
    %cst_86 = arith.constant 5.000000e-01 : f32
    %150 = vector.broadcast %cst_86 : f32 to vector<8x1xf32>
    %151 = arith.mulf %150, %149 : vector<8x1xf32>
    %152 = vector.broadcast %151 : vector<8x1xf32> to vector<8x256xf32>
    %153 = arith.subf %147, %152 : vector<8x256xf32>
    %154 = arith.negf %153 : vector<8x256xf32>
    %155 = math.exp %154 : vector<8x256xf32>
    %cst_87 = arith.constant 1.000000e+00 : f32
    %156 = vector.broadcast %cst_87 : f32 to vector<8x256xf32>
    %157 = arith.addf %156, %155 : vector<8x256xf32>
    %158 = arith.divf %156, %157 : vector<8x256xf32>
    %c0_88 = arith.constant 0 : index
    %c2304_89 = arith.constant 2304 : index
    %159 = vector.load %arg3[%c0_88, %c2304_89] : memref<8x4096xf32, #tpu.memory_space<vmem>>, vector<8x256xf32>
    tpu.vector_store %arg3[%c0_88, %c2304_89], %158 {strides = array<i32>} : memref<8x4096xf32, #tpu.memory_space<vmem>>, vector<8x256xf32>,
    %c0_90 = arith.constant 0 : index
    %c2560 = arith.constant 2560 : index
    %160 = vector.load %arg1[%c0_90, %c2560] : memref<8x4096xbf16, #tpu.memory_space<vmem>>, vector<8x256xbf16>
    %c10 = arith.constant 10 : index
    %c0_91 = arith.constant 0 : index
    %c0_92 = arith.constant 0 : index
    %161 = vector.load %arg2[%c10, %c0_91, %c0_92] : memref<16x256x256xbf16, #tpu.memory_space<vmem>>, vector<1x256x256xbf16>
    %162 = vector.shape_cast %161 : vector<1x256x256xbf16> to vector<256x256xbf16>
    %cst_93 = arith.constant dense<0.000000e+00> : vector<8x256xf32>
    %163 = tpu.matmul %160, %162, %cst_93 {dimension_numbers = #tpu.dot_dimension_numbers<[1], [0], [0], [1], [0, 0, 1, 1], [], []>} : vector<8x256xbf16>, vector<256x256xbf16>, vector<8x256xf32> -> vector<8x256xf32>
    %cst_94 = arith.constant dense<0xFF800000> : vector<8xf32>
    %164 = vector.multi_reduction <maximumf>, %163, %cst_94 [1] : vector<8x256xf32> to vector<8xf32>
    %165 = vector.shape_cast %164 : vector<8xf32> to vector<8x1xf32>
    %cst_95 = arith.constant 5.000000e-01 : f32
    %166 = vector.broadcast %cst_95 : f32 to vector<8x1xf32>
    %167 = arith.mulf %166, %165 : vector<8x1xf32>
    %168 = vector.broadcast %167 : vector<8x1xf32> to vector<8x256xf32>
    %169 = arith.subf %163, %168 : vector<8x256xf32>
    %170 = arith.negf %169 : vector<8x256xf32>
    %171 = math.exp %170 : vector<8x256xf32>
    %cst_96 = arith.constant 1.000000e+00 : f32
    %172 = vector.broadcast %cst_96 : f32 to vector<8x256xf32>
    %173 = arith.addf %172, %171 : vector<8x256xf32>
    %174 = arith.divf %172, %173 : vector<8x256xf32>
    %c0_97 = arith.constant 0 : index
    %c2560_98 = arith.constant 2560 : index
    %175 = vector.load %arg3[%c0_97, %c2560_98] : memref<8x4096xf32, #tpu.memory_space<vmem>>, vector<8x256xf32>
    tpu.vector_store %arg3[%c0_97, %c2560_98], %174 {strides = array<i32>} : memref<8x4096xf32, #tpu.memory_space<vmem>>, vector<8x256xf32>,
    %c0_99 = arith.constant 0 : index
    %c2816 = arith.constant 2816 : index
    %176 = vector.load %arg1[%c0_99, %c2816] : memref<8x4096xbf16, #tpu.memory_space<vmem>>, vector<8x256xbf16>
    %c11 = arith.constant 11 : index
    %c0_100 = arith.constant 0 : index
    %c0_101 = arith.constant 0 : index
    %177 = vector.load %arg2[%c11, %c0_100, %c0_101] : memref<16x256x256xbf16, #tpu.memory_space<vmem>>, vector<1x256x256xbf16>
    %178 = vector.shape_cast %177 : vector<1x256x256xbf16> to vector<256x256xbf16>
    %cst_102 = arith.constant dense<0.000000e+00> : vector<8x256xf32>
    %179 = tpu.matmul %176, %178, %cst_102 {dimension_numbers = #tpu.dot_dimension_numbers<[1], [0], [0], [1], [0, 0, 1, 1], [], []>} : vector<8x256xbf16>, vector<256x256xbf16>, vector<8x256xf32> -> vector<8x256xf32>
    %cst_103 = arith.constant dense<0xFF800000> : vector<8xf32>
    %180 = vector.multi_reduction <maximumf>, %179, %cst_103 [1] : vector<8x256xf32> to vector<8xf32>
    %181 = vector.shape_cast %180 : vector<8xf32> to vector<8x1xf32>
    %cst_104 = arith.constant 5.000000e-01 : f32
    %182 = vector.broadcast %cst_104 : f32 to vector<8x1xf32>
    %183 = arith.mulf %182, %181 : vector<8x1xf32>
    %184 = vector.broadcast %183 : vector<8x1xf32> to vector<8x256xf32>
    %185 = arith.subf %179, %184 : vector<8x256xf32>
    %186 = arith.negf %185 : vector<8x256xf32>
    %187 = math.exp %186 : vector<8x256xf32>
    %cst_105 = arith.constant 1.000000e+00 : f32
    %188 = vector.broadcast %cst_105 : f32 to vector<8x256xf32>
    %189 = arith.addf %188, %187 : vector<8x256xf32>
    %190 = arith.divf %188, %189 : vector<8x256xf32>
    %c0_106 = arith.constant 0 : index
    %c2816_107 = arith.constant 2816 : index
    %191 = vector.load %arg3[%c0_106, %c2816_107] : memref<8x4096xf32, #tpu.memory_space<vmem>>, vector<8x256xf32>
    tpu.vector_store %arg3[%c0_106, %c2816_107], %190 {strides = array<i32>} : memref<8x4096xf32, #tpu.memory_space<vmem>>, vector<8x256xf32>,
    %c0_108 = arith.constant 0 : index
    %c3072 = arith.constant 3072 : index
    %192 = vector.load %arg1[%c0_108, %c3072] : memref<8x4096xbf16, #tpu.memory_space<vmem>>, vector<8x256xbf16>
    %c12 = arith.constant 12 : index
    %c0_109 = arith.constant 0 : index
    %c0_110 = arith.constant 0 : index
    %193 = vector.load %arg2[%c12, %c0_109, %c0_110] : memref<16x256x256xbf16, #tpu.memory_space<vmem>>, vector<1x256x256xbf16>
    %194 = vector.shape_cast %193 : vector<1x256x256xbf16> to vector<256x256xbf16>
    %cst_111 = arith.constant dense<0.000000e+00> : vector<8x256xf32>
    %195 = tpu.matmul %192, %194, %cst_111 {dimension_numbers = #tpu.dot_dimension_numbers<[1], [0], [0], [1], [0, 0, 1, 1], [], []>} : vector<8x256xbf16>, vector<256x256xbf16>, vector<8x256xf32> -> vector<8x256xf32>
    %cst_112 = arith.constant dense<0xFF800000> : vector<8xf32>
    %196 = vector.multi_reduction <maximumf>, %195, %cst_112 [1] : vector<8x256xf32> to vector<8xf32>
    %197 = vector.shape_cast %196 : vector<8xf32> to vector<8x1xf32>
    %cst_113 = arith.constant 5.000000e-01 : f32
    %198 = vector.broadcast %cst_113 : f32 to vector<8x1xf32>
    %199 = arith.mulf %198, %197 : vector<8x1xf32>
    %200 = vector.broadcast %199 : vector<8x1xf32> to vector<8x256xf32>
    %201 = arith.subf %195, %200 : vector<8x256xf32>
    %202 = arith.negf %201 : vector<8x256xf32>
    %203 = math.exp %202 : vector<8x256xf32>
    %cst_114 = arith.constant 1.000000e+00 : f32
    %204 = vector.broadcast %cst_114 : f32 to vector<8x256xf32>
    %205 = arith.addf %204, %203 : vector<8x256xf32>
    %206 = arith.divf %204, %205 : vector<8x256xf32>
    %c0_115 = arith.constant 0 : index
    %c3072_116 = arith.constant 3072 : index
    %207 = vector.load %arg3[%c0_115, %c3072_116] : memref<8x4096xf32, #tpu.memory_space<vmem>>, vector<8x256xf32>
    tpu.vector_store %arg3[%c0_115, %c3072_116], %206 {strides = array<i32>} : memref<8x4096xf32, #tpu.memory_space<vmem>>, vector<8x256xf32>,
    %c0_117 = arith.constant 0 : index
    %c3328 = arith.constant 3328 : index
    %208 = vector.load %arg1[%c0_117, %c3328] : memref<8x4096xbf16, #tpu.memory_space<vmem>>, vector<8x256xbf16>
    %c13 = arith.constant 13 : index
    %c0_118 = arith.constant 0 : index
    %c0_119 = arith.constant 0 : index
    %209 = vector.load %arg2[%c13, %c0_118, %c0_119] : memref<16x256x256xbf16, #tpu.memory_space<vmem>>, vector<1x256x256xbf16>
    %210 = vector.shape_cast %209 : vector<1x256x256xbf16> to vector<256x256xbf16>
    %cst_120 = arith.constant dense<0.000000e+00> : vector<8x256xf32>
    %211 = tpu.matmul %208, %210, %cst_120 {dimension_numbers = #tpu.dot_dimension_numbers<[1], [0], [0], [1], [0, 0, 1, 1], [], []>} : vector<8x256xbf16>, vector<256x256xbf16>, vector<8x256xf32> -> vector<8x256xf32>
    %cst_121 = arith.constant dense<0xFF800000> : vector<8xf32>
    %212 = vector.multi_reduction <maximumf>, %211, %cst_121 [1] : vector<8x256xf32> to vector<8xf32>
    %213 = vector.shape_cast %212 : vector<8xf32> to vector<8x1xf32>
    %cst_122 = arith.constant 5.000000e-01 : f32
    %214 = vector.broadcast %cst_122 : f32 to vector<8x1xf32>
    %215 = arith.mulf %214, %213 : vector<8x1xf32>
    %216 = vector.broadcast %215 : vector<8x1xf32> to vector<8x256xf32>
    %217 = arith.subf %211, %216 : vector<8x256xf32>
    %218 = arith.negf %217 : vector<8x256xf32>
    %219 = math.exp %218 : vector<8x256xf32>
    %cst_123 = arith.constant 1.000000e+00 : f32
    %220 = vector.broadcast %cst_123 : f32 to vector<8x256xf32>
    %221 = arith.addf %220, %219 : vector<8x256xf32>
    %222 = arith.divf %220, %221 : vector<8x256xf32>
    %c0_124 = arith.constant 0 : index
    %c3328_125 = arith.constant 3328 : index
    %223 = vector.load %arg3[%c0_124, %c3328_125] : memref<8x4096xf32, #tpu.memory_space<vmem>>, vector<8x256xf32>
    tpu.vector_store %arg3[%c0_124, %c3328_125], %222 {strides = array<i32>} : memref<8x4096xf32, #tpu.memory_space<vmem>>, vector<8x256xf32>,
    %c0_126 = arith.constant 0 : index
    %c3584 = arith.constant 3584 : index
    %224 = vector.load %arg1[%c0_126, %c3584] : memref<8x4096xbf16, #tpu.memory_space<vmem>>, vector<8x256xbf16>
    %c14 = arith.constant 14 : index
    %c0_127 = arith.constant 0 : index
    %c0_128 = arith.constant 0 : index
    %225 = vector.load %arg2[%c14, %c0_127, %c0_128] : memref<16x256x256xbf16, #tpu.memory_space<vmem>>, vector<1x256x256xbf16>
    %226 = vector.shape_cast %225 : vector<1x256x256xbf16> to vector<256x256xbf16>
    %cst_129 = arith.constant dense<0.000000e+00> : vector<8x256xf32>
    %227 = tpu.matmul %224, %226, %cst_129 {dimension_numbers = #tpu.dot_dimension_numbers<[1], [0], [0], [1], [0, 0, 1, 1], [], []>} : vector<8x256xbf16>, vector<256x256xbf16>, vector<8x256xf32> -> vector<8x256xf32>
    %cst_130 = arith.constant dense<0xFF800000> : vector<8xf32>
    %228 = vector.multi_reduction <maximumf>, %227, %cst_130 [1] : vector<8x256xf32> to vector<8xf32>
    %229 = vector.shape_cast %228 : vector<8xf32> to vector<8x1xf32>
    %cst_131 = arith.constant 5.000000e-01 : f32
    %230 = vector.broadcast %cst_131 : f32 to vector<8x1xf32>
    %231 = arith.mulf %230, %229 : vector<8x1xf32>
    %232 = vector.broadcast %231 : vector<8x1xf32> to vector<8x256xf32>
    %233 = arith.subf %227, %232 : vector<8x256xf32>
    %234 = arith.negf %233 : vector<8x256xf32>
    %235 = math.exp %234 : vector<8x256xf32>
    %cst_132 = arith.constant 1.000000e+00 : f32
    %236 = vector.broadcast %cst_132 : f32 to vector<8x256xf32>
    %237 = arith.addf %236, %235 : vector<8x256xf32>
    %238 = arith.divf %236, %237 : vector<8x256xf32>
    %c0_133 = arith.constant 0 : index
    %c3584_134 = arith.constant 3584 : index
    %239 = vector.load %arg3[%c0_133, %c3584_134] : memref<8x4096xf32, #tpu.memory_space<vmem>>, vector<8x256xf32>
    tpu.vector_store %arg3[%c0_133, %c3584_134], %238 {strides = array<i32>} : memref<8x4096xf32, #tpu.memory_space<vmem>>, vector<8x256xf32>,
    %c0_135 = arith.constant 0 : index
    %c3840 = arith.constant 3840 : index
    %240 = vector.load %arg1[%c0_135, %c3840] : memref<8x4096xbf16, #tpu.memory_space<vmem>>, vector<8x256xbf16>
    %c15 = arith.constant 15 : index
    %c0_136 = arith.constant 0 : index
    %c0_137 = arith.constant 0 : index
    %241 = vector.load %arg2[%c15, %c0_136, %c0_137] : memref<16x256x256xbf16, #tpu.memory_space<vmem>>, vector<1x256x256xbf16>
    %242 = vector.shape_cast %241 : vector<1x256x256xbf16> to vector<256x256xbf16>
    %cst_138 = arith.constant dense<0.000000e+00> : vector<8x256xf32>
    %243 = tpu.matmul %240, %242, %cst_138 {dimension_numbers = #tpu.dot_dimension_numbers<[1], [0], [0], [1], [0, 0, 1, 1], [], []>} : vector<8x256xbf16>, vector<256x256xbf16>, vector<8x256xf32> -> vector<8x256xf32>
    %cst_139 = arith.constant dense<0xFF800000> : vector<8xf32>
    %244 = vector.multi_reduction <maximumf>, %243, %cst_139 [1] : vector<8x256xf32> to vector<8xf32>
    %245 = vector.shape_cast %244 : vector<8xf32> to vector<8x1xf32>
    %cst_140 = arith.constant 5.000000e-01 : f32
    %246 = vector.broadcast %cst_140 : f32 to vector<8x1xf32>
    %247 = arith.mulf %246, %245 : vector<8x1xf32>
    %248 = vector.broadcast %247 : vector<8x1xf32> to vector<8x256xf32>
    %249 = arith.subf %243, %248 : vector<8x256xf32>
    %250 = arith.negf %249 : vector<8x256xf32>
    %251 = math.exp %250 : vector<8x256xf32>
    %cst_141 = arith.constant 1.000000e+00 : f32
    %252 = vector.broadcast %cst_141 : f32 to vector<8x256xf32>
    %253 = arith.addf %252, %251 : vector<8x256xf32>
    %254 = arith.divf %252, %253 : vector<8x256xf32>
    %c0_142 = arith.constant 0 : index
    %c3840_143 = arith.constant 3840 : index
    %255 = vector.load %arg3[%c0_142, %c3840_143] : memref<8x4096xf32, #tpu.memory_space<vmem>>, vector<8x256xf32>
    tpu.vector_store %arg3[%c0_142, %c3840_143], %254 {strides = array<i32>} : memref<8x4096xf32, #tpu.memory_space<vmem>>, vector<8x256xf32>,
    return
  }
  func.func @transform_0(%arg0: i32) -> (i32, i32) {
    %c0_i32 = arith.constant 0 : i32
    %c0_i32_0 = arith.constant 0 : i32
    return %arg0, %c0_i32 : i32, i32
  }
  func.func @transform_1(%arg0: i32) -> (i32, i32, i32) {
    %c0_i32 = arith.constant 0 : i32
    %c0_i32_0 = arith.constant 0 : i32
    %c0_i32_1 = arith.constant 0 : i32
    %c0_i32_2 = arith.constant 0 : i32
    return %c0_i32, %c0_i32_0, %c0_i32_1 : i32, i32, i32
  }
  func.func @transform_2(%arg0: i32) -> (i32, i32) {
    %c0_i32 = arith.constant 0 : i32
    %c0_i32_0 = arith.constant 0 : i32
    return %arg0, %c0_i32 : i32, i32
  }
}

</mosaic_0001>

<bundles_post_ra>
// kernel: eic_layer2.1
= control target key start
LH: loop header
LB: loop body
LE: loop exit
PB: predicated region body
PF: predicated region fallthrough
CT: control target
= control target key end

     0   :  { %7 = vsyncpa [#allocation3], 0  ;;  %s5750_s9 = smov [#allocation2]   ;;  %s6127_s0 = inlined_call_operand.vmem [shape: bf16[8,4096], index: 0, kind: input, shape index: {}]   ;;  %s6128_s1 = inlined_call_operand.hbm [shape: bf16[16,256,256], index: 1, kind: input, shape index: {}]   ;;  %s6129_s2 = inlined_call_operand.vmem [shape: f32[8,4096], index: 2, kind: output, shape index: {}]  }
   0x1   :  { %s15_s10 = sshll.u32 %s5750_s9, 4  ;;  %s16_s10 = int_to_ptr.vmem [resolvable:$true] %s15_s10 }
   0x2   :  { %s5736_s11 = scalar_lea.vmem %s16_s10, 65536  ;;  %p5741_p1 = scmp.lt.s32.totalorder %s16_s10, %s16_s10 }
   0x3   :  { %p5737_p0 = scmp.ne.s32.totalorder %s16_s10, %s5736_s11  ;;  %p5742_p2 = scmp.lt.s32.totalorder %s5736_s11, %s5736_s11 }
   0x5   :  { %p5743_p3 = por %p5742_p2, %p5741_p1 }
   0x7   :  { %p5744_p4 = pnand %p5743_p3, %p5737_p0 }
   0x9   :  { %5747 = shalt.err (!%p5744_p4)
}
   0xa   :  { %s5751_s12 = smov 128   ;;  %s5752_s13 = smov 8  }
   0xb   :  { %21 = dma.hbm_to_vmem [thread:$0]  %s6128_s1, 65536, %s16_s10, [#allocation3], %s5751_s12, %s5751_s12, %s5752_s13  }
   0xc   :  { %5748 = dma.done.wait [#allocation3], 65536  }
   0xd   :  { %5749 = vsyncadd [#allocation3], 4294901760  ;;  %v4800_v0 = vld [vmem:[#allocation2 + $0x74] ss:$8 sps:$4 sm:$0xff]   ;;  %v4804_v2 = vld [vmem:[#allocation2 + $0x70] ss:$8 sps:$4 sm:$0xff]  }
   0xe   :  { %v4802_v1 = vld [vmem:[#allocation2 + $0x174] ss:$8 sps:$4 sm:$0xff]   ;;  %225 = vmatprep.subr.bf16.mxu0 %v4800_v0  ;;  %v4805_v3 = vld [vmem:[#allocation2 + $0x170] ss:$8 sps:$4 sm:$0xff]   ;;  %v4806_v4 = vld [vmem:[#allocation2 + $0x64] ss:$8 sps:$4 sm:$0xff]  }
   0xf   :  { %487 = vmatprep.subr.bf16.mxu1 %v4802_v1  ;;  %226 = vmatpush1.bf16.msra.mxu0 %v4804_v2  ;;  %v4808_v5 = vld [vmem:[#allocation2 + $0x164] ss:$8 sps:$4 sm:$0xff]   ;;  %v4810_v6 = vld [vmem:[#allocation2 + $0x60] ss:$8 sps:$4 sm:$0xff]   ;;  %v4812_v8 = vld [vmem:[#allocation2 + $0x54] ss:$8 sps:$4 sm:$0xff]  }
  0x10   :  { %488 = vmatpush1.bf16.msra.mxu1 %v4805_v3  ;;  %227 = vmatprep.subr.bf16.mxu0 %v4806_v4  ;;  %v4811_v7 = vld [vmem:[#allocation2 + $0x160] ss:$8 sps:$4 sm:$0xff]   ;;  %v4814_v9 = vld [vmem:[#allocation2 + $0x154] ss:$8 sps:$4 sm:$0xff]   ;;  %v4816_v10 = vld [vmem:[#allocation2 + $0x50] ss:$8 sps:$4 sm:$0xff]  }
  0x11   :  { %489 = vmatprep.subr.bf16.mxu1 %v4808_v5  ;;  %v4817_v11 = vld [vmem:[#allocation2 + $0x150] ss:$8 sps:$4 sm:$0xff]   ;;  %v4818_v12 = vld [vmem:[#allocation2 + $0x44] ss:$8 sps:$4 sm:$0xff]   ;;  %v4822_v14 = vld [vmem:[#allocation2 + $0x40] ss:$8 sps:$4 sm:$0xff]  }
  0x12   :  { %v4820_v13 = vld [vmem:[#allocation2 + $0x144] ss:$8 sps:$4 sm:$0xff]   ;;  %v4823_v15 = vld [vmem:[#allocation2 + $0x140] ss:$8 sps:$4 sm:$0xff]   ;;  %v4824_v16 = vld [vmem:[#allocation2 + $0x34] ss:$8 sps:$4 sm:$0xff]  }
  0x13   :  { %228 = vmatpush1.bf16.msra.mxu0 %v4810_v6  ;;  %v4826_v17 = vld [vmem:[#allocation2 + $0x134] ss:$8 sps:$4 sm:$0xff]   ;;  %v4828_v18 = vld [vmem:[#allocation2 + $0x30] ss:$8 sps:$4 sm:$0xff]   ;;  %v4830_v20 = vld [vmem:[#allocation2 + $0x24] ss:$8 sps:$4 sm:$0xff]  }
  0x14   :  { %490 = vmatpush1.bf16.msra.mxu1 %v4811_v7  ;;  %229 = vmatprep.subr.bf16.mxu0 %v4812_v8  ;;  %v4829_v19 = vld [vmem:[#allocation2 + $0x130] ss:$8 sps:$4 sm:$0xff]   ;;  %v4832_v21 = vld [vmem:[#allocation2 + $0x124] ss:$8 sps:$4 sm:$0xff]   ;;  %v4834_v22 = vld [vmem:[#allocation2 + $0x20] ss:$8 sps:$4 sm:$0xff]  }
  0x15   :  { %491 = vmatprep.subr.bf16.mxu1 %v4814_v9  ;;  %v4835_v23 = vld [vmem:[#allocation2 + $0x120] ss:$8 sps:$4 sm:$0xff]   ;;  %v4836_v24 = vld [vmem:[#allocation2 + $0x14] ss:$8 sps:$4 sm:$0xff]   ;;  %v4840_v26 = vld [vmem:[#allocation2 + $0x10] ss:$8 sps:$4 sm:$0xff]  }
  0x16   :  { %v4838_v25 = vld [vmem:[#allocation2 + $0x114] ss:$8 sps:$4 sm:$0xff]   ;;  %v4841_v27 = vld [vmem:[#allocation2 + $0x110] ss:$8 sps:$4 sm:$0xff]   ;;  %v4842_v28 = vld [vmem:[#allocation2 + $0x4] ss:$8 sps:$4 sm:$0xff]  }
  0x17   :  { %230 = vmatpush1.bf16.msra.mxu0 %v4816_v10  ;;  %v4844_v29 = vld [vmem:[#allocation2 + $0x104] ss:$8 sps:$4 sm:$0xff]   ;;  %v4846_v30 = vld [vmem:[#allocation2] ss:$8 sps:$4 sm:$0xff]   ;;  %v4848_v32 = vld [vmem:[#allocation2 + $0xf4] ss:$8 sps:$4 sm:$0xff]  }
  0x18   :  { %492 = vmatpush1.bf16.msra.mxu1 %v4817_v11  ;;  %231 = vmatprep.subr.bf16.mxu0 %v4818_v12  ;;  %v4847_v31 = vld [vmem:[#allocation2 + $0x100] ss:$8 sps:$4 sm:$0xff]   ;;  %v4850_v33 = vld [vmem:[#allocation2 + $0x1f4] ss:$8 sps:$4 sm:$0xff]   ;;  %v4852_v34 = vld [vmem:[#allocation2 + $0xf0] ss:$8 sps:$4 sm:$0xff]  }
  0x19   :  { %493 = vmatprep.subr.bf16.mxu1 %v4820_v13  ;;  %v4853_v35 = vld [vmem:[#allocation2 + $0x1f0] ss:$8 sps:$4 sm:$0xff]   ;;  %v4854_v36 = vld [vmem:[#allocation2 + $0xe4] ss:$8 sps:$4 sm:$0xff]   ;;  %v4858_v38 = vld [vmem:[#allocation2 + $0xe0] ss:$8 sps:$4 sm:$0xff]  }
  0x1a   :  { %v4856_v37 = vld [vmem:[#allocation2 + $0x1e4] ss:$8 sps:$4 sm:$0xff]   ;;  %v4859_v39 = vld [vmem:[#allocation2 + $0x1e0] ss:$8 sps:$4 sm:$0xff]   ;;  %v4860_v40 = vld [vmem:[#allocation2 + $0xd4] ss:$8 sps:$4 sm:$0xff]  }
  0x1b   :  { %232 = vmatpush1.bf16.msra.mxu0 %v4822_v14  ;;  %v4862_v41 = vld [vmem:[#allocation2 + $0x1d4] ss:$8 sps:$4 sm:$0xff]   ;;  %v4864_v42 = vld [vmem:[#allocation2 + $0xd0] ss:$8 sps:$4 sm:$0xff]   ;;  %v4866_v44 = vld [vmem:[#allocation2 + $0xc4] ss:$8 sps:$4 sm:$0xff]  }
  0x1c   :  { %494 = vmatpush1.bf16.msra.mxu1 %v4823_v15  ;;  %233 = vmatprep.subr.bf16.mxu0 %v4824_v16  ;;  %v4865_v43 = vld [vmem:[#allocation2 + $0x1d0] ss:$8 sps:$4 sm:$0xff]   ;;  %v4868_v45 = vld [vmem:[#allocation2 + $0x1c4] ss:$8 sps:$4 sm:$0xff]   ;;  %v4870_v49 = vld [vmem:[#allocation2 + $0xc0] ss:$8 sps:$4 sm:$0xff]  }
  0x1d   :  { %495 = vmatprep.subr.bf16.mxu1 %v4826_v17  ;;  %v25_v46 = vld [vmem:[%s6127_s0] sm:$0xff]  ;;  %v286_v48 = vld [vmem:[%s6127_s0 + $0x8] sm:$0xff]  ;;  %v4872_v52 = vld [vmem:[#allocation2 + $0xb4] ss:$8 sps:$4 sm:$0xff]  }
  0x1e   :  { %v4222_v47 = vcombine.high %v25_v46, %v25_v46  ;;  %v4871_v50 = vld [vmem:[#allocation2 + $0x1c0] ss:$8 sps:$4 sm:$0xff]   ;;  %v4258_v51 = vcombine.high %v286_v48, %v286_v48  ;;  %v4874_v53 = vld [vmem:[#allocation2 + $0x1b4] ss:$8 sps:$4 sm:$0xff]   ;;  %v4876_v54 = vld [vmem:[#allocation2 + $0xb0] ss:$8 sps:$4 sm:$0xff]   ;;  %v4221_v6 = vcombine.low %v25_v46, %v25_v46  ;;  %v4257_v7 = vcombine.low %v286_v48, %v286_v48 }
  0x1f   :  { %234 = vmatpush1.bf16.msra.mxu0 %v4828_v18  ;;  %v4877_v55 = vld [vmem:[#allocation2 + $0x1b0] ss:$8 sps:$4 sm:$0xff]   ;;  %v4878_v56 = vld [vmem:[#allocation2 + $0xa4] ss:$8 sps:$4 sm:$0xff]   ;;  %v4882_v58 = vld [vmem:[#allocation2 + $0xa0] ss:$8 sps:$4 sm:$0xff]  }
  0x20   :  { %496 = vmatpush1.bf16.msra.mxu1 %v4829_v19  ;;  %235 = vmatprep.subr.bf16.mxu0 %v4830_v20  ;;  %v4880_v57 = vld [vmem:[#allocation2 + $0x1a4] ss:$8 sps:$4 sm:$0xff]   ;;  %v4883_v59 = vld [vmem:[#allocation2 + $0x1a0] ss:$8 sps:$4 sm:$0xff]   ;;  %v4884_v60 = vld [vmem:[#allocation2 + $0x94] ss:$8 sps:$4 sm:$0xff]  }
  0x21   :  { %497 = vmatprep.subr.bf16.mxu1 %v4832_v21  ;;  %257 = vmatprep.mubr.bf16.mxu0 %v4222_v47  ;;  %v4886_v61 = vld [vmem:[#allocation2 + $0x194] ss:$8 sps:$4 sm:$0xff]   ;;  %v4888_v62 = vld [vmem:[#allocation2 + $0x90] ss:$8 sps:$4 sm:$0xff]   ;;  %v4890_v0 = vld [vmem:[#allocation2 + $0x84] ss:$8 sps:$4 sm:$0xff]  }
  0x22   :  { %519 = vmatprep.mubr.bf16.mxu1 %v4258_v51  ;;  %v4889_v63 = vld [vmem:[#allocation2 + $0x190] ss:$8 sps:$4 sm:$0xff]   ;;  %v4892_v1 = vld [vmem:[#allocation2 + $0x184] ss:$8 sps:$4 sm:$0xff]   ;;  %v4894_v2 = vld [vmem:[#allocation2 + $0x80] ss:$8 sps:$4 sm:$0xff]  }
  0x23   :  { %236 = vmatpush1.bf16.msra.mxu0 %v4834_v22  ;;  %v4895_v3 = vld [vmem:[#allocation2 + $0x180] ss:$8 sps:$4 sm:$0xff]   ;;  %v4902_v4 = vld [vmem:[#allocation2 + $0x274] ss:$8 sps:$4 sm:$0xff]   ;;  %v4900_v8 = vld [vmem:[#allocation2 + $0x270] ss:$8 sps:$4 sm:$0xff]  }
  0x24   :  { %498 = vmatpush1.bf16.msra.mxu1 %v4835_v23  ;;  %237 = vmatprep.subr.bf16.mxu0 %v4836_v24  ;;  %v4905_v5 = vld [vmem:[#allocation2 + $0x374] ss:$8 sps:$4 sm:$0xff]   ;;  %v4903_v9 = vld [vmem:[#allocation2 + $0x370] ss:$8 sps:$4 sm:$0xff]   ;;  %v4908_v10 = vld [vmem:[#allocation2 + $0x264] ss:$8 sps:$4 sm:$0xff]  }
  0x25   :  { %499 = vmatprep.subr.bf16.mxu1 %v4838_v25  ;;  %v4911_v11 = vld [vmem:[#allocation2 + $0x364] ss:$8 sps:$4 sm:$0xff]   ;;  %v4906_v12 = vld [vmem:[#allocation2 + $0x260] ss:$8 sps:$4 sm:$0xff]   ;;  %v4914_v14 = vld [vmem:[#allocation2 + $0x254] ss:$8 sps:$4 sm:$0xff]  }
  0x26   :  { %v4909_v13 = vld [vmem:[#allocation2 + $0x360] ss:$8 sps:$4 sm:$0xff]   ;;  %v4917_v15 = vld [vmem:[#allocation2 + $0x354] ss:$8 sps:$4 sm:$0xff]   ;;  %v4912_v16 = vld [vmem:[#allocation2 + $0x250] ss:$8 sps:$4 sm:$0xff]  }
  0x27   :  { %238 = vmatpush1.bf16.msra.mxu0 %v4840_v26  ;;  %v4915_v17 = vld [vmem:[#allocation2 + $0x350] ss:$8 sps:$4 sm:$0xff]   ;;  %v4920_v18 = vld [vmem:[#allocation2 + $0x244] ss:$8 sps:$4 sm:$0xff]   ;;  %v4918_v20 = vld [vmem:[#allocation2 + $0x240] ss:$8 sps:$4 sm:$0xff]  }
  0x28   :  { %500 = vmatpush1.bf16.msra.mxu1 %v4841_v27  ;;  %239 = vmatprep.subr.bf16.mxu0 %v4842_v28  ;;  %v4923_v19 = vld [vmem:[#allocation2 + $0x344] ss:$8 sps:$4 sm:$0xff]   ;;  %v4921_v21 = vld [vmem:[#allocation2 + $0x340] ss:$8 sps:$4 sm:$0xff]   ;;  %v4926_v22 = vld [vmem:[#allocation2 + $0x234] ss:$8 sps:$4 sm:$0xff]  }
  0x29   :  { %501 = vmatprep.subr.bf16.mxu1 %v4844_v29  ;;  %v4929_v23 = vld [vmem:[#allocation2 + $0x334] ss:$8 sps:$4 sm:$0xff]   ;;  %v4924_v24 = vld [vmem:[#allocation2 + $0x230] ss:$8 sps:$4 sm:$0xff]   ;;  %v4932_v26 = vld [vmem:[#allocation2 + $0x224] ss:$8 sps:$4 sm:$0xff]  }
  0x2a   :  { %v4927_v25 = vld [vmem:[#allocation2 + $0x330] ss:$8 sps:$4 sm:$0xff]   ;;  %v4935_v27 = vld [vmem:[#allocation2 + $0x324] ss:$8 sps:$4 sm:$0xff]   ;;  %v4930_v28 = vld [vmem:[#allocation2 + $0x220] ss:$8 sps:$4 sm:$0xff]  }
  0x2b   :  { %240 = vmatpush1.bf16.msra.mxu0 %v4846_v30  ;;  %v4933_v29 = vld [vmem:[#allocation2 + $0x320] ss:$8 sps:$4 sm:$0xff]   ;;  %v4938_v30 = vld [vmem:[#allocation2 + $0x214] ss:$8 sps:$4 sm:$0xff]   ;;  %v4956_v46 = vld [vmem:[#allocation2 + $0x2e4] ss:$8 sps:$4 sm:$0xff]  }
  0x2c   :  { %502 = vmatpush1.bf16.msra.mxu1 %v4847_v31  ;;  %241 = vmatprep.subr.bf16.mxu0 %v4848_v32  ;;  %v4941_v31 = vld [vmem:[#allocation2 + $0x314] ss:$8 sps:$4 sm:$0xff]   ;;  %v4959_v47 = vld [vmem:[#allocation2 + $0x3e4] ss:$8 sps:$4 sm:$0xff]   ;;  %v4954_v48 = vld [vmem:[#allocation2 + $0x2e0] ss:$8 sps:$4 sm:$0xff]  }
  0x2d   :  { %503 = vmatprep.subr.bf16.mxu1 %v4850_v33  ;;  %v5780_v32 = vld [vmem:[%s6127_s0 + $0x10] sm:$0xff]  ;;  %v5785_v33 = vld [vmem:[%s6127_s0 + $0x18] sm:$0xff] }
  0x2e   :  { %v4965_v51 = vld [vmem:[#allocation2 + $0x3d4] ss:$8 sps:$4 sm:$0xff]  }
  0x2f   :  { %242 = vmatpush2.bf16.msra.mxu0 %v4852_v34  ;;  %v4936_v34 = vld [vmem:[#allocation2 + $0x210] ss:$8 sps:$4 sm:$0xff]  }
  0x30   :  { %504 = vmatpush2.bf16.msra.mxu1 %v4853_v35  ;;  %243 = vmatprep.subr.bf16.mxu0 %v4854_v36  ;;  %v4939_v35 = vld [vmem:[#allocation2 + $0x310] ss:$8 sps:$4 sm:$0xff]   ;;  %v4294_v36 = vcombine.high %v5780_v32, %v5780_v32 }
  0x31   :  { %505 = vmatprep.subr.bf16.mxu1 %v4856_v37  ;;  %v4330_v37 = vcombine.high %v5785_v33, %v5785_v33 }
  0x33   :  { %244 = vmatpush2.bf16.msra.mxu0 %v4858_v38  ;;  %v4944_v38 = vld [vmem:[#allocation2 + $0x204] ss:$8 sps:$4 sm:$0xff]  }
  0x34   :  { %506 = vmatpush2.bf16.msra.mxu1 %v4859_v39  ;;  %245 = vmatprep.subr.bf16.mxu0 %v4860_v40  ;;  %v4947_v39 = vld [vmem:[#allocation2 + $0x304] ss:$8 sps:$4 sm:$0xff]   ;;  %v4942_v40 = vld [vmem:[#allocation2 + $0x200] ss:$8 sps:$4 sm:$0xff]  }
  0x35   :  { %507 = vmatprep.subr.bf16.mxu1 %v4862_v41  ;;  %v4945_v41 = vld [vmem:[#allocation2 + $0x300] ss:$8 sps:$4 sm:$0xff]  }
  0x37   :  { %246 = vmatpush2.bf16.msra.mxu0 %v4864_v42  ;;  %v4950_v42 = vld [vmem:[#allocation2 + $0x2f4] ss:$8 sps:$4 sm:$0xff]  }
  0x38   :  { %508 = vmatpush2.bf16.msra.mxu1 %v4865_v43  ;;  %247 = vmatprep.subr.bf16.mxu0 %v4866_v44  ;;  %v4953_v43 = vld [vmem:[#allocation2 + $0x3f4] ss:$8 sps:$4 sm:$0xff]   ;;  %v4948_v44 = vld [vmem:[#allocation2 + $0x2f0] ss:$8 sps:$4 sm:$0xff]  }
  0x39   :  { %509 = vmatprep.subr.bf16.mxu1 %v4868_v45  ;;  %v4951_v45 = vld [vmem:[#allocation2 + $0x3f0] ss:$8 sps:$4 sm:$0xff]  }
  0x3b   :  { %248 = vmatpush2.bf16.msra.mxu0 %v4870_v49  ;;  %v4957_v49 = vld [vmem:[#allocation2 + $0x3e0] ss:$8 sps:$4 sm:$0xff]  }
  0x3c   :  { %510 = vmatpush2.bf16.msra.mxu1 %v4871_v50  ;;  %249 = vmatprep.subr.bf16.mxu0 %v4872_v52  ;;  %v4962_v50 = vld [vmem:[#allocation2 + $0x2d4] ss:$8 sps:$4 sm:$0xff]   ;;  %v4960_v52 = vld [vmem:[#allocation2 + $0x2d0] ss:$8 sps:$4 sm:$0xff]  }
  0x3d   :  { %511 = vmatprep.subr.bf16.mxu1 %v4874_v53  ;;  %v4963_v53 = vld [vmem:[#allocation2 + $0x3d0] ss:$8 sps:$4 sm:$0xff]  }
  0x3f   :  { %250 = vmatpush2.bf16.msra.mxu0 %v4876_v54  ;;  %v4968_v54 = vld [vmem:[#allocation2 + $0x2c4] ss:$8 sps:$4 sm:$0xff]  }
  0x40   :  { %512 = vmatpush2.bf16.msra.mxu1 %v4877_v55  ;;  %251 = vmatprep.subr.bf16.mxu0 %v4878_v56  ;;  %v4971_v55 = vld [vmem:[#allocation2 + $0x3c4] ss:$8 sps:$4 sm:$0xff]   ;;  %v4966_v56 = vld [vmem:[#allocation2 + $0x2c0] ss:$8 sps:$4 sm:$0xff]  }
  0x41   :  { %513 = vmatprep.subr.bf16.mxu1 %v4880_v57  ;;  %v4969_v57 = vld [vmem:[#allocation2 + $0x3c0] ss:$8 sps:$4 sm:$0xff]  }
  0x43   :  { %252 = vmatpush2.bf16.msra.mxu0 %v4882_v58  ;;  %v4974_v58 = vld [vmem:[#allocation2 + $0x2b4] ss:$8 sps:$4 sm:$0xff]  }
  0x44   :  { %514 = vmatpush2.bf16.msra.mxu1 %v4883_v59  ;;  %253 = vmatprep.subr.bf16.mxu0 %v4884_v60  ;;  %v4977_v59 = vld [vmem:[#allocation2 + $0x3b4] ss:$8 sps:$4 sm:$0xff]   ;;  %v4972_v60 = vld [vmem:[#allocation2 + $0x2b0] ss:$8 sps:$4 sm:$0xff]  }
  0x45   :  { %515 = vmatprep.subr.bf16.mxu1 %v4886_v61  ;;  %v4975_v61 = vld [vmem:[#allocation2 + $0x3b0] ss:$8 sps:$4 sm:$0xff]  }
  0x47   :  { %254 = vmatpush2.bf16.msra.mxu0 %v4888_v62  ;;  %v4980_v62 = vld [vmem:[#allocation2 + $0x2a4] ss:$8 sps:$4 sm:$0xff]  }
  0x48   :  { %516 = vmatpush2.bf16.msra.mxu1 %v4889_v63  ;;  %255 = vmatprep.subr.bf16.mxu0 %v4890_v0  ;;  %v4983_v63 = vld [vmem:[#allocation2 + $0x3a4] ss:$8 sps:$4 sm:$0xff]   ;;  %v4978_v0 = vld [vmem:[#allocation2 + $0x2a0] ss:$8 sps:$4 sm:$0xff]  }
  0x49   :  { %517 = vmatprep.subr.bf16.mxu1 %v4892_v1  ;;  %v4981_v1 = vld [vmem:[#allocation2 + $0x3a0] ss:$8 sps:$4 sm:$0xff]  }
  0x4b   :  { %256 = vmatpush2.bf16.msra.mxu0 %v4894_v2  ;;  %v4986_v2 = vld [vmem:[#allocation2 + $0x294] ss:$8 sps:$4 sm:$0xff]  }
  0x4c   :  { %518 = vmatpush2.bf16.msra.mxu1 %v4895_v3  ;;  %749 = vmatprep.subr.bf16.mxu0 %v4902_v4  ;;  %v4989_v3 = vld [vmem:[#allocation2 + $0x394] ss:$8 sps:$4 sm:$0xff]   ;;  %v4984_v4 = vld [vmem:[#allocation2 + $0x290] ss:$8 sps:$4 sm:$0xff]  }
  0x4d   :  { %1011 = vmatprep.subr.bf16.mxu1 %v4905_v5  ;;  %v4987_v5 = vld [vmem:[#allocation2 + $0x390] ss:$8 sps:$4 sm:$0xff]  }
  0x4e   :  { %258 = vmatmul.mubr.bf16.vlgmr.msra.gmra.mxu0 %v4221_v6  ;;  %v4992_v6 = vld [vmem:[#allocation2 + $0x284] ss:$8 sps:$4 sm:$0xff]  }
  0x4f   :  { %520 = vmatmul.mubr.bf16.vlgmr.msra.gmra.mxu1 %v4257_v7  ;;  %750 = vmatpush1.bf16.msra.mxu0 %v4900_v8  ;;  %v4995_v7 = vld [vmem:[#allocation2 + $0x384] ss:$8 sps:$4 sm:$0xff]   ;;  %v4990_v8 = vld [vmem:[#allocation2 + $0x280] ss:$8 sps:$4 sm:$0xff]  }
  0x50   :  { %1012 = vmatpush1.bf16.msra.mxu1 %v4903_v9  ;;  %751 = vmatprep.subr.bf16.mxu0 %v4908_v10  ;;  %v4993_v9 = vld [vmem:[#allocation2 + $0x380] ss:$8 sps:$4 sm:$0xff]   ;;  %v5002_v10 = vld [vmem:[#allocation2 + $0x474] ss:$8 sps:$4 sm:$0xff]  }
  0x51   :  { %1013 = vmatprep.subr.bf16.mxu1 %v4911_v11  ;;  %781 = vmatprep.mubr.bf16.mxu0 %v4294_v36  ;;  %v5005_v11 = vld [vmem:[#allocation2 + $0x574] ss:$8 sps:$4 sm:$0xff]   ;;  %v5032_v36 = vld [vmem:[#allocation2 + $0x424] ss:$8 sps:$4 sm:$0xff]  }
  0x52   :  { %1043 = vmatprep.mubr.bf16.mxu1 %v4330_v37  ;;  %v5035_v37 = vld [vmem:[#allocation2 + $0x524] ss:$8 sps:$4 sm:$0xff]  }
  0x53   :  { %752 = vmatpush1.bf16.msra.mxu0 %v4906_v12  ;;  %v4293_v12 = vcombine.low %v5780_v32, %v5780_v32  ;;  %v5026_v32 = vld [vmem:[#allocation2 + $0x434] ss:$8 sps:$4 sm:$0xff]  }
  0x54   :  { %1014 = vmatpush1.bf16.msra.mxu1 %v4909_v13  ;;  %753 = vmatprep.subr.bf16.mxu0 %v4914_v14  ;;  %v4329_v13 = vcombine.low %v5785_v33, %v5785_v33  ;;  %v5000_v14 = vld [vmem:[#allocation2 + $0x470] ss:$8 sps:$4 sm:$0xff]   ;;  %v5029_v33 = vld [vmem:[#allocation2 + $0x534] ss:$8 sps:$4 sm:$0xff]  }
  0x55   :  { %1015 = vmatprep.subr.bf16.mxu1 %v4917_v15  ;;  %v5003_v15 = vld [vmem:[#allocation2 + $0x570] ss:$8 sps:$4 sm:$0xff]  }
  0x57   :  { %754 = vmatpush1.bf16.msra.mxu0 %v4912_v16  ;;  %v5008_v16 = vld [vmem:[#allocation2 + $0x464] ss:$8 sps:$4 sm:$0xff]  }
  0x58   :  { %1016 = vmatpush1.bf16.msra.mxu1 %v4915_v17  ;;  %755 = vmatprep.subr.bf16.mxu0 %v4920_v18  ;;  %v5011_v17 = vld [vmem:[#allocation2 + $0x564] ss:$8 sps:$4 sm:$0xff]  }
  0x59   :  { %1017 = vmatprep.subr.bf16.mxu1 %v4923_v19  ;;  %v5798_v18 = vld [vmem:[%s6127_s0 + $0x20] sm:$0xff]  ;;  %v5803_v19 = vld [vmem:[%s6127_s0 + $0x28] sm:$0xff] }
  0x5b   :  { %756 = vmatpush1.bf16.msra.mxu0 %v4918_v20  ;;  %v4366_v20 = vcombine.high %v5798_v18, %v5798_v18 }
  0x5c   :  { %1018 = vmatpush1.bf16.msra.mxu1 %v4921_v21  ;;  %757 = vmatprep.subr.bf16.mxu0 %v4926_v22  ;;  %v4402_v21 = vcombine.high %v5803_v19, %v5803_v19  ;;  %v5006_v22 = vld [vmem:[#allocation2 + $0x460] ss:$8 sps:$4 sm:$0xff]  }
  0x5d   :  { %1019 = vmatprep.subr.bf16.mxu1 %v4929_v23  ;;  %v5009_v23 = vld [vmem:[#allocation2 + $0x560] ss:$8 sps:$4 sm:$0xff]  }
  0x5f   :  { %758 = vmatpush1.bf16.msra.mxu0 %v4924_v24  ;;  %v5014_v24 = vld [vmem:[#allocation2 + $0x454] ss:$8 sps:$4 sm:$0xff]  }
  0x60   :  { %1020 = vmatpush1.bf16.msra.mxu1 %v4927_v25  ;;  %759 = vmatprep.subr.bf16.mxu0 %v4932_v26  ;;  %v5017_v25 = vld [vmem:[#allocation2 + $0x554] ss:$8 sps:$4 sm:$0xff]   ;;  %v5012_v26 = vld [vmem:[#allocation2 + $0x450] ss:$8 sps:$4 sm:$0xff]  }
  0x61   :  { %1021 = vmatprep.subr.bf16.mxu1 %v4935_v27  ;;  %v5015_v27 = vld [vmem:[#allocation2 + $0x550] ss:$8 sps:$4 sm:$0xff]  }
  0x63   :  { %760 = vmatpush1.bf16.msra.mxu0 %v4930_v28  ;;  %v5020_v28 = vld [vmem:[#allocation2 + $0x444] ss:$8 sps:$4 sm:$0xff]  }
  0x64   :  { %1022 = vmatpush1.bf16.msra.mxu1 %v4933_v29  ;;  %761 = vmatprep.subr.bf16.mxu0 %v4938_v30  ;;  %v5023_v29 = vld [vmem:[#allocation2 + $0x544] ss:$8 sps:$4 sm:$0xff]   ;;  %v5018_v30 = vld [vmem:[#allocation2 + $0x440] ss:$8 sps:$4 sm:$0xff]  }
  0x65   :  { %1023 = vmatprep.subr.bf16.mxu1 %v4941_v31  ;;  %v5021_v31 = vld [vmem:[#allocation2 + $0x540] ss:$8 sps:$4 sm:$0xff]  }
  0x67   :  { %762 = vmatpush1.bf16.msra.mxu0 %v4936_v34  ;;  %v5024_v34 = vld [vmem:[#allocation2 + $0x430] ss:$8 sps:$4 sm:$0xff]  }
  0x68   :  { %1024 = vmatpush1.bf16.msra.mxu1 %v4939_v35  ;;  %763 = vmatprep.subr.bf16.mxu0 %v4944_v38  ;;  %v5027_v35 = vld [vmem:[#allocation2 + $0x530] ss:$8 sps:$4 sm:$0xff]   ;;  %v5030_v38 = vld [vmem:[#allocation2 + $0x420] ss:$8 sps:$4 sm:$0xff]  }
  0x69   :  { %1025 = vmatprep.subr.bf16.mxu1 %v4947_v39  ;;  %v5033_v39 = vld [vmem:[#allocation2 + $0x520] ss:$8 sps:$4 sm:$0xff]  }
  0x6b   :  { %764 = vmatpush1.bf16.msra.mxu0 %v4942_v40  ;;  %v5038_v40 = vld [vmem:[#allocation2 + $0x414] ss:$8 sps:$4 sm:$0xff]  }
  0x6c   :  { %1026 = vmatpush1.bf16.msra.mxu1 %v4945_v41  ;;  %765 = vmatprep.subr.bf16.mxu0 %v4950_v42  ;;  %v5041_v41 = vld [vmem:[#allocation2 + $0x514] ss:$8 sps:$4 sm:$0xff]   ;;  %v5036_v42 = vld [vmem:[#allocation2 + $0x410] ss:$8 sps:$4 sm:$0xff]  }
  0x6d   :  { %1027 = vmatprep.subr.bf16.mxu1 %v4953_v43  ;;  %v5039_v43 = vld [vmem:[#allocation2 + $0x510] ss:$8 sps:$4 sm:$0xff]  }
  0x6f   :  { %766 = vmatpush2.bf16.msra.mxu0 %v4948_v44  ;;  %v5044_v44 = vld [vmem:[#allocation2 + $0x404] ss:$8 sps:$4 sm:$0xff]  }
  0x70   :  { %1028 = vmatpush2.bf16.msra.mxu1 %v4951_v45  ;;  %767 = vmatprep.subr.bf16.mxu0 %v4956_v46  ;;  %v5047_v45 = vld [vmem:[#allocation2 + $0x504] ss:$8 sps:$4 sm:$0xff]   ;;  %v5042_v46 = vld [vmem:[#allocation2 + $0x400] ss:$8 sps:$4 sm:$0xff]  }
  0x71   :  { %1029 = vmatprep.subr.bf16.mxu1 %v4959_v47  ;;  %v5045_v47 = vld [vmem:[#allocation2 + $0x500] ss:$8 sps:$4 sm:$0xff]  }
  0x73   :  { %768 = vmatpush2.bf16.msra.mxu0 %v4954_v48  ;;  %v5050_v48 = vld [vmem:[#allocation2 + $0x4f4] ss:$8 sps:$4 sm:$0xff]  }
  0x74   :  { %1030 = vmatpush2.bf16.msra.mxu1 %v4957_v49  ;;  %769 = vmatprep.subr.bf16.mxu0 %v4962_v50  ;;  %v5053_v49 = vld [vmem:[#allocation2 + $0x5f4] ss:$8 sps:$4 sm:$0xff]   ;;  %v5048_v50 = vld [vmem:[#allocation2 + $0x4f0] ss:$8 sps:$4 sm:$0xff]  }
  0x75   :  { %1031 = vmatprep.subr.bf16.mxu1 %v4965_v51  ;;  %v5051_v51 = vld [vmem:[#allocation2 + $0x5f0] ss:$8 sps:$4 sm:$0xff]  }
  0x77   :  { %770 = vmatpush2.bf16.msra.mxu0 %v4960_v52  ;;  %v5056_v52 = vld [vmem:[#allocation2 + $0x4e4] ss:$8 sps:$4 sm:$0xff]  }
  0x78   :  { %1032 = vmatpush2.bf16.msra.mxu1 %v4963_v53  ;;  %771 = vmatprep.subr.bf16.mxu0 %v4968_v54  ;;  %v5059_v53 = vld [vmem:[#allocation2 + $0x5e4] ss:$8 sps:$4 sm:$0xff]   ;;  %v5054_v54 = vld [vmem:[#allocation2 + $0x4e0] ss:$8 sps:$4 sm:$0xff]  }
  0x79   :  { %1033 = vmatprep.subr.bf16.mxu1 %v4971_v55  ;;  %v5057_v55 = vld [vmem:[#allocation2 + $0x5e0] ss:$8 sps:$4 sm:$0xff]  }
  0x7b   :  { %772 = vmatpush2.bf16.msra.mxu0 %v4966_v56  ;;  %v5062_v56 = vld [vmem:[#allocation2 + $0x4d4] ss:$8 sps:$4 sm:$0xff]  }
  0x7c   :  { %1034 = vmatpush2.bf16.msra.mxu1 %v4969_v57  ;;  %773 = vmatprep.subr.bf16.mxu0 %v4974_v58  ;;  %v5065_v57 = vld [vmem:[#allocation2 + $0x5d4] ss:$8 sps:$4 sm:$0xff]   ;;  %v5060_v58 = vld [vmem:[#allocation2 + $0x4d0] ss:$8 sps:$4 sm:$0xff]  }
  0x7d   :  { %1035 = vmatprep.subr.bf16.mxu1 %v4977_v59  ;;  %v5063_v59 = vld [vmem:[#allocation2 + $0x5d0] ss:$8 sps:$4 sm:$0xff]  }
  0x7f   :  { %774 = vmatpush2.bf16.msra.mxu0 %v4972_v60  ;;  %v5068_v60 = vld [vmem:[#allocation2 + $0x4c4] ss:$8 sps:$4 sm:$0xff]  }
  0x80   :  { %1036 = vmatpush2.bf16.msra.mxu1 %v4975_v61  ;;  %775 = vmatprep.subr.bf16.mxu0 %v4980_v62  ;;  %v5071_v61 = vld [vmem:[#allocation2 + $0x5c4] ss:$8 sps:$4 sm:$0xff]   ;;  %v5066_v62 = vld [vmem:[#allocation2 + $0x4c0] ss:$8 sps:$4 sm:$0xff]  }
  0x81   :  { %1037 = vmatprep.subr.bf16.mxu1 %v4983_v63  ;;  %v5069_v63 = vld [vmem:[#allocation2 + $0x5c0] ss:$8 sps:$4 sm:$0xff]  }
  0x83   :  { %776 = vmatpush2.bf16.msra.mxu0 %v4978_v0  ;;  %v5074_v0 = vld [vmem:[#allocation2 + $0x4b4] ss:$8 sps:$4 sm:$0xff]  }
  0x84   :  { %1038 = vmatpush2.bf16.msra.mxu1 %v4981_v1  ;;  %777 = vmatprep.subr.bf16.mxu0 %v4986_v2  ;;  %v5077_v1 = vld [vmem:[#allocation2 + $0x5b4] ss:$8 sps:$4 sm:$0xff]   ;;  %v5072_v2 = vld [vmem:[#allocation2 + $0x4b0] ss:$8 sps:$4 sm:$0xff]  }
  0x85   :  { %1039 = vmatprep.subr.bf16.mxu1 %v4989_v3  ;;  %v5075_v3 = vld [vmem:[#allocation2 + $0x5b0] ss:$8 sps:$4 sm:$0xff]  }
  0x87   :  { %778 = vmatpush2.bf16.msra.mxu0 %v4984_v4  ;;  %v5080_v4 = vld [vmem:[#allocation2 + $0x4a4] ss:$8 sps:$4 sm:$0xff]  }
  0x88   :  { %1040 = vmatpush2.bf16.msra.mxu1 %v4987_v5  ;;  %779 = vmatprep.subr.bf16.mxu0 %v4992_v6  ;;  %v5083_v5 = vld [vmem:[#allocation2 + $0x5a4] ss:$8 sps:$4 sm:$0xff]   ;;  %v5078_v6 = vld [vmem:[#allocation2 + $0x4a0] ss:$8 sps:$4 sm:$0xff]  }
  0x89   :  { %1041 = vmatprep.subr.bf16.mxu1 %v4995_v7  ;;  %v5081_v7 = vld [vmem:[#allocation2 + $0x5a0] ss:$8 sps:$4 sm:$0xff]  }
  0x8b   :  { %780 = vmatpush2.bf16.msra.mxu0 %v4990_v8  ;;  %v5086_v8 = vld [vmem:[#allocation2 + $0x494] ss:$8 sps:$4 sm:$0xff]  }
  0x8c   :  { %1042 = vmatpush2.bf16.msra.mxu1 %v4993_v9  ;;  %1273 = vmatprep.subr.bf16.mxu0 %v5002_v10  ;;  %v5089_v9 = vld [vmem:[#allocation2 + $0x594] ss:$8 sps:$4 sm:$0xff]   ;;  %v5084_v10 = vld [vmem:[#allocation2 + $0x490] ss:$8 sps:$4 sm:$0xff]  }
  0x8d   :  { %1535 = vmatprep.subr.bf16.mxu1 %v5005_v11  ;;  %v5087_v11 = vld [vmem:[#allocation2 + $0x590] ss:$8 sps:$4 sm:$0xff]  }
  0x8e   :  { %782 = vmatmul.mubr.bf16.vlgmr.msra.gmra.mxu0 %v4293_v12  ;;  %v5092_v12 = vld [vmem:[#allocation2 + $0x484] ss:$8 sps:$4 sm:$0xff]  }
  0x8f   :  { %1044 = vmatmul.mubr.bf16.vlgmr.msra.gmra.mxu1 %v4329_v13  ;;  %1274 = vmatpush1.bf16.msra.mxu0 %v5000_v14  ;;  %v5095_v13 = vld [vmem:[#allocation2 + $0x584] ss:$8 sps:$4 sm:$0xff]   ;;  %v5090_v14 = vld [vmem:[#allocation2 + $0x480] ss:$8 sps:$4 sm:$0xff]  }
  0x90   :  { %1536 = vmatpush1.bf16.msra.mxu1 %v5003_v15  ;;  %1275 = vmatprep.subr.bf16.mxu0 %v5008_v16  ;;  %v5093_v15 = vld [vmem:[#allocation2 + $0x580] ss:$8 sps:$4 sm:$0xff]   ;;  %v5102_v16 = vld [vmem:[#allocation2 + $0x674] ss:$8 sps:$4 sm:$0xff]  }
  0x91   :  { %1537 = vmatprep.subr.bf16.mxu1 %v5011_v17  ;;  %1305 = vmatprep.mubr.bf16.mxu0 %v4366_v20  ;;  %v5105_v17 = vld [vmem:[#allocation2 + $0x774] ss:$8 sps:$4 sm:$0xff]   ;;  %v5100_v20 = vld [vmem:[#allocation2 + $0x670] ss:$8 sps:$4 sm:$0xff]  }
  0x92   :  { %1567 = vmatprep.mubr.bf16.mxu1 %v4402_v21  ;;  %v5103_v21 = vld [vmem:[#allocation2 + $0x770] ss:$8 sps:$4 sm:$0xff]  }
  0x93   :  { %1276 = vmatpush1.bf16.msra.mxu0 %v5006_v22  ;;  %v4365_v22 = vcombine.low %v5798_v18, %v5798_v18 }
  0x94   :  { %1538 = vmatpush1.bf16.msra.mxu1 %v5009_v23  ;;  %1277 = vmatprep.subr.bf16.mxu0 %v5014_v24  ;;  %v4401_v23 = vcombine.low %v5803_v19, %v5803_v19  ;;  %v5816_v24 = vld [vmem:[%s6127_s0 + $0x30] sm:$0xff] }
  0x95   :  { %1539 = vmatprep.subr.bf16.mxu1 %v5017_v25  ;;  %v5821_v25 = vld [vmem:[%s6127_s0 + $0x38] sm:$0xff]  ;;  %v4438_v18 = vcombine.high %v5816_v24, %v5816_v24 }
  0x96   :  { %v4474_v19 = vcombine.high %v5821_v25, %v5821_v25 }
  0x97   :  { %1278 = vmatpush1.bf16.msra.mxu0 %v5012_v26  ;;  %v5108_v26 = vld [vmem:[#allocation2 + $0x664] ss:$8 sps:$4 sm:$0xff]  }
  0x98   :  { %1540 = vmatpush1.bf16.msra.mxu1 %v5015_v27  ;;  %1279 = vmatprep.subr.bf16.mxu0 %v5020_v28  ;;  %v5111_v27 = vld [vmem:[#allocation2 + $0x764] ss:$8 sps:$4 sm:$0xff]   ;;  %v5106_v28 = vld [vmem:[#allocation2 + $0x660] ss:$8 sps:$4 sm:$0xff]  }
  0x99   :  { %1541 = vmatprep.subr.bf16.mxu1 %v5023_v29  ;;  %v5109_v29 = vld [vmem:[#allocation2 + $0x760] ss:$8 sps:$4 sm:$0xff]  }
  0x9b   :  { %1280 = vmatpush1.bf16.msra.mxu0 %v5018_v30  ;;  %v5114_v30 = vld [vmem:[#allocation2 + $0x654] ss:$8 sps:$4 sm:$0xff]  }
  0x9c   :  { %1542 = vmatpush1.bf16.msra.mxu1 %v5021_v31  ;;  %1281 = vmatprep.subr.bf16.mxu0 %v5026_v32  ;;  %v5117_v31 = vld [vmem:[#allocation2 + $0x754] ss:$8 sps:$4 sm:$0xff]   ;;  %v5112_v32 = vld [vmem:[#allocation2 + $0x650] ss:$8 sps:$4 sm:$0xff]  }
  0x9d   :  { %1543 = vmatprep.subr.bf16.mxu1 %v5029_v33  ;;  %v5115_v33 = vld [vmem:[#allocation2 + $0x750] ss:$8 sps:$4 sm:$0xff]  }
  0x9f   :  { %1282 = vmatpush1.bf16.msra.mxu0 %v5024_v34  ;;  %v5120_v34 = vld [vmem:[#allocation2 + $0x644] ss:$8 sps:$4 sm:$0xff]  }
  0xa0   :  { %1544 = vmatpush1.bf16.msra.mxu1 %v5027_v35  ;;  %1283 = vmatprep.subr.bf16.mxu0 %v5032_v36  ;;  %v5123_v35 = vld [vmem:[#allocation2 + $0x744] ss:$8 sps:$4 sm:$0xff]   ;;  %v5118_v36 = vld [vmem:[#allocation2 + $0x640] ss:$8 sps:$4 sm:$0xff]  }
  0xa1   :  { %1545 = vmatprep.subr.bf16.mxu1 %v5035_v37  ;;  %v5121_v37 = vld [vmem:[#allocation2 + $0x740] ss:$8 sps:$4 sm:$0xff]  }
  0xa3   :  { %1284 = vmatpush1.bf16.msra.mxu0 %v5030_v38  ;;  %v5126_v38 = vld [vmem:[#allocation2 + $0x634] ss:$8 sps:$4 sm:$0xff]  }
  0xa4   :  { %1546 = vmatpush1.bf16.msra.mxu1 %v5033_v39  ;;  %1285 = vmatprep.subr.bf16.mxu0 %v5038_v40  ;;  %v5129_v39 = vld [vmem:[#allocation2 + $0x734] ss:$8 sps:$4 sm:$0xff]   ;;  %v5124_v40 = vld [vmem:[#allocation2 + $0x630] ss:$8 sps:$4 sm:$0xff]  }
  0xa5   :  { %1547 = vmatprep.subr.bf16.mxu1 %v5041_v41  ;;  %v5127_v41 = vld [vmem:[#allocation2 + $0x730] ss:$8 sps:$4 sm:$0xff]  }
  0xa7   :  { %1286 = vmatpush1.bf16.msra.mxu0 %v5036_v42  ;;  %v5132_v42 = vld [vmem:[#allocation2 + $0x624] ss:$8 sps:$4 sm:$0xff]  }
  0xa8   :  { %1548 = vmatpush1.bf16.msra.mxu1 %v5039_v43  ;;  %1287 = vmatprep.subr.bf16.mxu0 %v5044_v44  ;;  %v5135_v43 = vld [vmem:[#allocation2 + $0x724] ss:$8 sps:$4 sm:$0xff]   ;;  %v5130_v44 = vld [vmem:[#allocation2 + $0x620] ss:$8 sps:$4 sm:$0xff]  }
  0xa9   :  { %1549 = vmatprep.subr.bf16.mxu1 %v5047_v45  ;;  %v5133_v45 = vld [vmem:[#allocation2 + $0x720] ss:$8 sps:$4 sm:$0xff]  }
  0xab   :  { %1288 = vmatpush1.bf16.msra.mxu0 %v5042_v46  ;;  %v5138_v46 = vld [vmem:[#allocation2 + $0x614] ss:$8 sps:$4 sm:$0xff]  }
  0xac   :  { %1550 = vmatpush1.bf16.msra.mxu1 %v5045_v47  ;;  %1289 = vmatprep.subr.bf16.mxu0 %v5050_v48  ;;  %v5141_v47 = vld [vmem:[#allocation2 + $0x714] ss:$8 sps:$4 sm:$0xff]   ;;  %v5136_v48 = vld [vmem:[#allocation2 + $0x610] ss:$8 sps:$4 sm:$0xff]  }
  0xad   :  { %1551 = vmatprep.subr.bf16.mxu1 %v5053_v49  ;;  %v5139_v49 = vld [vmem:[#allocation2 + $0x710] ss:$8 sps:$4 sm:$0xff]  }
  0xaf   :  { %1290 = vmatpush2.bf16.msra.mxu0 %v5048_v50  ;;  %v5144_v50 = vld [vmem:[#allocation2 + $0x604] ss:$8 sps:$4 sm:$0xff]  }
  0xb0   :  { %1552 = vmatpush2.bf16.msra.mxu1 %v5051_v51  ;;  %1291 = vmatprep.subr.bf16.mxu0 %v5056_v52  ;;  %v5147_v51 = vld [vmem:[#allocation2 + $0x704] ss:$8 sps:$4 sm:$0xff]   ;;  %v5142_v52 = vld [vmem:[#allocation2 + $0x600] ss:$8 sps:$4 sm:$0xff]  }
  0xb1   :  { %1553 = vmatprep.subr.bf16.mxu1 %v5059_v53  ;;  %v5145_v53 = vld [vmem:[#allocation2 + $0x700] ss:$8 sps:$4 sm:$0xff]  }
  0xb3   :  { %1292 = vmatpush2.bf16.msra.mxu0 %v5054_v54  ;;  %v5150_v54 = vld [vmem:[#allocation2 + $0x6f4] ss:$8 sps:$4 sm:$0xff]  }
  0xb4   :  { %1554 = vmatpush2.bf16.msra.mxu1 %v5057_v55  ;;  %1293 = vmatprep.subr.bf16.mxu0 %v5062_v56  ;;  %v5153_v55 = vld [vmem:[#allocation2 + $0x7f4] ss:$8 sps:$4 sm:$0xff]   ;;  %v5148_v56 = vld [vmem:[#allocation2 + $0x6f0] ss:$8 sps:$4 sm:$0xff]  }
  0xb5   :  { %1555 = vmatprep.subr.bf16.mxu1 %v5065_v57  ;;  %v5151_v57 = vld [vmem:[#allocation2 + $0x7f0] ss:$8 sps:$4 sm:$0xff]  }
  0xb7   :  { %1294 = vmatpush2.bf16.msra.mxu0 %v5060_v58  ;;  %v5156_v58 = vld [vmem:[#allocation2 + $0x6e4] ss:$8 sps:$4 sm:$0xff]  }
  0xb8   :  { %1556 = vmatpush2.bf16.msra.mxu1 %v5063_v59  ;;  %1295 = vmatprep.subr.bf16.mxu0 %v5068_v60  ;;  %v5159_v59 = vld [vmem:[#allocation2 + $0x7e4] ss:$8 sps:$4 sm:$0xff]   ;;  %v5154_v60 = vld [vmem:[#allocation2 + $0x6e0] ss:$8 sps:$4 sm:$0xff]  }
  0xb9   :  { %1557 = vmatprep.subr.bf16.mxu1 %v5071_v61  ;;  %v5157_v61 = vld [vmem:[#allocation2 + $0x7e0] ss:$8 sps:$4 sm:$0xff]  }
  0xbb   :  { %1296 = vmatpush2.bf16.msra.mxu0 %v5066_v62  ;;  %v5162_v62 = vld [vmem:[#allocation2 + $0x6d4] ss:$8 sps:$4 sm:$0xff]  }
  0xbc   :  { %1558 = vmatpush2.bf16.msra.mxu1 %v5069_v63  ;;  %1297 = vmatprep.subr.bf16.mxu0 %v5074_v0  ;;  %v5165_v63 = vld [vmem:[#allocation2 + $0x7d4] ss:$8 sps:$4 sm:$0xff]   ;;  %v5160_v0 = vld [vmem:[#allocation2 + $0x6d0] ss:$8 sps:$4 sm:$0xff]  }
  0xbd   :  { %1559 = vmatprep.subr.bf16.mxu1 %v5077_v1  ;;  %v5163_v1 = vld [vmem:[#allocation2 + $0x7d0] ss:$8 sps:$4 sm:$0xff]  }
  0xbf   :  { %1298 = vmatpush2.bf16.msra.mxu0 %v5072_v2  ;;  %v5168_v2 = vld [vmem:[#allocation2 + $0x6c4] ss:$8 sps:$4 sm:$0xff]  }
  0xc0   :  { %1560 = vmatpush2.bf16.msra.mxu1 %v5075_v3  ;;  %1299 = vmatprep.subr.bf16.mxu0 %v5080_v4  ;;  %v5171_v3 = vld [vmem:[#allocation2 + $0x7c4] ss:$8 sps:$4 sm:$0xff]   ;;  %v5166_v4 = vld [vmem:[#allocation2 + $0x6c0] ss:$8 sps:$4 sm:$0xff]  }
  0xc1   :  { %1561 = vmatprep.subr.bf16.mxu1 %v5083_v5  ;;  %v5169_v5 = vld [vmem:[#allocation2 + $0x7c0] ss:$8 sps:$4 sm:$0xff]  }
  0xc3   :  { %1300 = vmatpush2.bf16.msra.mxu0 %v5078_v6  ;;  %v5174_v6 = vld [vmem:[#allocation2 + $0x6b4] ss:$8 sps:$4 sm:$0xff]  }
  0xc4   :  { %1562 = vmatpush2.bf16.msra.mxu1 %v5081_v7  ;;  %1301 = vmatprep.subr.bf16.mxu0 %v5086_v8  ;;  %v5177_v7 = vld [vmem:[#allocation2 + $0x7b4] ss:$8 sps:$4 sm:$0xff]   ;;  %v5172_v8 = vld [vmem:[#allocation2 + $0x6b0] ss:$8 sps:$4 sm:$0xff]  }
  0xc5   :  { %1563 = vmatprep.subr.bf16.mxu1 %v5089_v9  ;;  %v5175_v9 = vld [vmem:[#allocation2 + $0x7b0] ss:$8 sps:$4 sm:$0xff]  }
  0xc7   :  { %1302 = vmatpush2.bf16.msra.mxu0 %v5084_v10  ;;  %v5180_v10 = vld [vmem:[#allocation2 + $0x6a4] ss:$8 sps:$4 sm:$0xff]  }
  0xc8   :  { %1564 = vmatpush2.bf16.msra.mxu1 %v5087_v11  ;;  %1303 = vmatprep.subr.bf16.mxu0 %v5092_v12  ;;  %v5183_v11 = vld [vmem:[#allocation2 + $0x7a4] ss:$8 sps:$4 sm:$0xff]   ;;  %v5178_v12 = vld [vmem:[#allocation2 + $0x6a0] ss:$8 sps:$4 sm:$0xff]  }
  0xc9   :  { %1565 = vmatprep.subr.bf16.mxu1 %v5095_v13  ;;  %v5181_v13 = vld [vmem:[#allocation2 + $0x7a0] ss:$8 sps:$4 sm:$0xff]  }
  0xcb   :  { %1304 = vmatpush2.bf16.msra.mxu0 %v5090_v14  ;;  %v5186_v14 = vld [vmem:[#allocation2 + $0x694] ss:$8 sps:$4 sm:$0xff]  }
  0xcc   :  { %1566 = vmatpush2.bf16.msra.mxu1 %v5093_v15  ;;  %1797 = vmatprep.subr.bf16.mxu0 %v5102_v16  ;;  %v5189_v15 = vld [vmem:[#allocation2 + $0x794] ss:$8 sps:$4 sm:$0xff]   ;;  %v5184_v16 = vld [vmem:[#allocation2 + $0x690] ss:$8 sps:$4 sm:$0xff]  }
  0xcd   :  { %2059 = vmatprep.subr.bf16.mxu1 %v5105_v17  ;;  %v5187_v17 = vld [vmem:[#allocation2 + $0x790] ss:$8 sps:$4 sm:$0xff]  }
  0xce   :  { %1306 = vmatmul.mubr.bf16.vlgmr.msra.gmra.mxu0 %v4365_v22  ;;  %v5190_v22 = vld [vmem:[#allocation2 + $0x680] ss:$8 sps:$4 sm:$0xff]  }
  0xcf   :  { %1568 = vmatmul.mubr.bf16.vlgmr.msra.gmra.mxu1 %v4401_v23  ;;  %1798 = vmatpush1.bf16.msra.mxu0 %v5100_v20  ;;  %v5192_v20 = vld [vmem:[#allocation2 + $0x684] ss:$8 sps:$4 sm:$0xff]   ;;  %v5193_v23 = vld [vmem:[#allocation2 + $0x780] ss:$8 sps:$4 sm:$0xff]  }
  0xd0   :  { %2060 = vmatpush1.bf16.msra.mxu1 %v5103_v21  ;;  %1799 = vmatprep.subr.bf16.mxu0 %v5108_v26  ;;  %v5195_v21 = vld [vmem:[#allocation2 + $0x784] ss:$8 sps:$4 sm:$0xff]   ;;  %v5202_v26 = vld [vmem:[#allocation2 + $0x874] ss:$8 sps:$4 sm:$0xff]  }
  0xd1   :  { %2061 = vmatprep.subr.bf16.mxu1 %v5111_v27  ;;  %1829 = vmatprep.mubr.bf16.mxu0 %v4438_v18  ;;  %v5205_v27 = vld [vmem:[#allocation2 + $0x974] ss:$8 sps:$4 sm:$0xff]   ;;  %v5830_v18 = vld [vmem:[%s6127_s0 + $0x40] sm:$0xff] }
  0xd2   :  { %2091 = vmatprep.mubr.bf16.mxu1 %v4474_v19  ;;  %v4437_v19 = vcombine.low %v5816_v24, %v5816_v24 }
  0xd3   :  { %1800 = vmatpush1.bf16.msra.mxu0 %v5106_v28  ;;  %v4473_v28 = vcombine.low %v5821_v25, %v5821_v25 }
  0xd4   :  { %2062 = vmatpush1.bf16.msra.mxu1 %v5109_v29  ;;  %1801 = vmatprep.subr.bf16.mxu0 %v5114_v30  ;;  %v5839_v29 = vld [vmem:[%s6127_s0 + $0x48] sm:$0xff]  ;;  %v5200_v30 = vld [vmem:[#allocation2 + $0x870] ss:$8 sps:$4 sm:$0xff]  }
  0xd5   :  { %2063 = vmatprep.subr.bf16.mxu1 %v5117_v31  ;;  %v5203_v31 = vld [vmem:[#allocation2 + $0x970] ss:$8 sps:$4 sm:$0xff]   ;;  %v4546_v24 = vcombine.high %v5839_v29, %v5839_v29 }
  0xd7   :  { %1802 = vmatpush1.bf16.msra.mxu0 %v5112_v32  ;;  %v5208_v32 = vld [vmem:[#allocation2 + $0x864] ss:$8 sps:$4 sm:$0xff]  }
  0xd8   :  { %2064 = vmatpush1.bf16.msra.mxu1 %v5115_v33  ;;  %1803 = vmatprep.subr.bf16.mxu0 %v5120_v34  ;;  %v5211_v33 = vld [vmem:[#allocation2 + $0x964] ss:$8 sps:$4 sm:$0xff]   ;;  %v4510_v34 = vcombine.high %v5830_v18, %v5830_v18 }
  0xd9   :  { %2065 = vmatprep.subr.bf16.mxu1 %v5123_v35 }
  0xdb   :  { %1804 = vmatpush1.bf16.msra.mxu0 %v5118_v36  ;;  %v5206_v36 = vld [vmem:[#allocation2 + $0x860] ss:$8 sps:$4 sm:$0xff]  }
  0xdc   :  { %2066 = vmatpush1.bf16.msra.mxu1 %v5121_v37  ;;  %1805 = vmatprep.subr.bf16.mxu0 %v5126_v38  ;;  %v5209_v37 = vld [vmem:[#allocation2 + $0x960] ss:$8 sps:$4 sm:$0xff]  }
  0xdd   :  { %2067 = vmatprep.subr.bf16.mxu1 %v5129_v39 }
  0xdf   :  { %1806 = vmatpush1.bf16.msra.mxu0 %v5124_v40  ;;  %v5214_v40 = vld [vmem:[#allocation2 + $0x854] ss:$8 sps:$4 sm:$0xff]  }
  0xe0   :  { %2068 = vmatpush1.bf16.msra.mxu1 %v5127_v41  ;;  %1807 = vmatprep.subr.bf16.mxu0 %v5132_v42  ;;  %v5217_v42 = vld [vmem:[#allocation2 + $0x954] ss:$8 sps:$4 sm:$0xff]  }
  0xe1   :  { %2069 = vmatprep.subr.bf16.mxu1 %v5135_v43 }
  0xe3   :  { %1808 = vmatpush1.bf16.msra.mxu0 %v5130_v44 }
  0xe4   :  { %2070 = vmatpush1.bf16.msra.mxu1 %v5133_v45  ;;  %1809 = vmatprep.subr.bf16.mxu0 %v5138_v46  ;;  %v5212_v45 = vld [vmem:[#allocation2 + $0x850] ss:$8 sps:$4 sm:$0xff]  }
  0xe5   :  { %2071 = vmatprep.subr.bf16.mxu1 %v5141_v47  ;;  %v5215_v46 = vld [vmem:[#allocation2 + $0x950] ss:$8 sps:$4 sm:$0xff]  }
  0xe7   :  { %1810 = vmatpush1.bf16.msra.mxu0 %v5136_v48 }
  0xe8   :  { %2072 = vmatpush1.bf16.msra.mxu1 %v5139_v49  ;;  %1811 = vmatprep.subr.bf16.mxu0 %v5144_v50  ;;  %v5220_v49 = vld [vmem:[#allocation2 + $0x844] ss:$8 sps:$4 sm:$0xff]  }
  0xe9   :  { %2073 = vmatprep.subr.bf16.mxu1 %v5147_v51  ;;  %v5223_v50 = vld [vmem:[#allocation2 + $0x944] ss:$8 sps:$4 sm:$0xff]  }
  0xeb   :  { %1812 = vmatpush1.bf16.msra.mxu0 %v5142_v52  ;;  %v5218_v52 = vld [vmem:[#allocation2 + $0x840] ss:$8 sps:$4 sm:$0xff]  }
  0xec   :  { %2074 = vmatpush1.bf16.msra.mxu1 %v5145_v53  ;;  %1813 = vmatprep.subr.bf16.mxu0 %v5150_v54  ;;  %v5221_v53 = vld [vmem:[#allocation2 + $0x940] ss:$8 sps:$4 sm:$0xff]   ;;  %v5226_v54 = vld [vmem:[#allocation2 + $0x834] ss:$8 sps:$4 sm:$0xff]  }
  0xed   :  { %2075 = vmatprep.subr.bf16.mxu1 %v5153_v55  ;;  %v5229_v55 = vld [vmem:[#allocation2 + $0x934] ss:$8 sps:$4 sm:$0xff]  }
  0xef   :  { %1814 = vmatpush2.bf16.msra.mxu0 %v5148_v56  ;;  %v5224_v56 = vld [vmem:[#allocation2 + $0x830] ss:$8 sps:$4 sm:$0xff]  }
  0xf0   :  { %2076 = vmatpush2.bf16.msra.mxu1 %v5151_v57  ;;  %1815 = vmatprep.subr.bf16.mxu0 %v5156_v58  ;;  %v5227_v57 = vld [vmem:[#allocation2 + $0x930] ss:$8 sps:$4 sm:$0xff]   ;;  %v5232_v58 = vld [vmem:[#allocation2 + $0x824] ss:$8 sps:$4 sm:$0xff]  }
  0xf1   :  { %2077 = vmatprep.subr.bf16.mxu1 %v5159_v59  ;;  %v5235_v59 = vld [vmem:[#allocation2 + $0x924] ss:$8 sps:$4 sm:$0xff]  }
  0xf3   :  { %1816 = vmatpush2.bf16.msra.mxu0 %v5154_v60  ;;  %v5230_v60 = vld [vmem:[#allocation2 + $0x820] ss:$8 sps:$4 sm:$0xff]  }
  0xf4   :  { %2078 = vmatpush2.bf16.msra.mxu1 %v5157_v61  ;;  %1817 = vmatprep.subr.bf16.mxu0 %v5162_v62  ;;  %v5233_v61 = vld [vmem:[#allocation2 + $0x920] ss:$8 sps:$4 sm:$0xff]   ;;  %v5238_v62 = vld [vmem:[#allocation2 + $0x814] ss:$8 sps:$4 sm:$0xff]  }
  0xf5   :  { %2079 = vmatprep.subr.bf16.mxu1 %v5165_v63  ;;  %v5241_v63 = vld [vmem:[#allocation2 + $0x914] ss:$8 sps:$4 sm:$0xff]  }
  0xf7   :  { %1818 = vmatpush2.bf16.msra.mxu0 %v5160_v0  ;;  %v5236_v0 = vld [vmem:[#allocation2 + $0x810] ss:$8 sps:$4 sm:$0xff]  }
  0xf8   :  { %2080 = vmatpush2.bf16.msra.mxu1 %v5163_v1  ;;  %1819 = vmatprep.subr.bf16.mxu0 %v5168_v2  ;;  %v5239_v1 = vld [vmem:[#allocation2 + $0x910] ss:$8 sps:$4 sm:$0xff]   ;;  %v5244_v2 = vld [vmem:[#allocation2 + $0x804] ss:$8 sps:$4 sm:$0xff]  }
  0xf9   :  { %2081 = vmatprep.subr.bf16.mxu1 %v5171_v3  ;;  %v5247_v3 = vld [vmem:[#allocation2 + $0x904] ss:$8 sps:$4 sm:$0xff]  }
  0xfb   :  { %1820 = vmatpush2.bf16.msra.mxu0 %v5166_v4  ;;  %v5242_v4 = vld [vmem:[#allocation2 + $0x800] ss:$8 sps:$4 sm:$0xff]  }
  0xfc   :  { %2082 = vmatpush2.bf16.msra.mxu1 %v5169_v5  ;;  %1821 = vmatprep.subr.bf16.mxu0 %v5174_v6  ;;  %v5245_v5 = vld [vmem:[#allocation2 + $0x900] ss:$8 sps:$4 sm:$0xff]   ;;  %v5250_v6 = vld [vmem:[#allocation2 + $0x8f4] ss:$8 sps:$4 sm:$0xff]  }
  0xfd   :  { %2083 = vmatprep.subr.bf16.mxu1 %v5177_v7  ;;  %v5253_v7 = vld [vmem:[#allocation2 + $0x9f4] ss:$8 sps:$4 sm:$0xff]  }
  0xff   :  { %1822 = vmatpush2.bf16.msra.mxu0 %v5172_v8  ;;  %v5248_v8 = vld [vmem:[#allocation2 + $0x8f0] ss:$8 sps:$4 sm:$0xff]  }
 0x100   :  { %2084 = vmatpush2.bf16.msra.mxu1 %v5175_v9  ;;  %1823 = vmatprep.subr.bf16.mxu0 %v5180_v10  ;;  %v5251_v9 = vld [vmem:[#allocation2 + $0x9f0] ss:$8 sps:$4 sm:$0xff]   ;;  %v5256_v10 = vld [vmem:[#allocation2 + $0x8e4] ss:$8 sps:$4 sm:$0xff]  }
 0x101   :  { %2085 = vmatprep.subr.bf16.mxu1 %v5183_v11  ;;  %v5259_v11 = vld [vmem:[#allocation2 + $0x9e4] ss:$8 sps:$4 sm:$0xff]  }
 0x103   :  { %1824 = vmatpush2.bf16.msra.mxu0 %v5178_v12  ;;  %v5254_v12 = vld [vmem:[#allocation2 + $0x8e0] ss:$8 sps:$4 sm:$0xff]  }
 0x104   :  { %2086 = vmatpush2.bf16.msra.mxu1 %v5181_v13  ;;  %1825 = vmatprep.subr.bf16.mxu0 %v5186_v14  ;;  %v5257_v13 = vld [vmem:[#allocation2 + $0x9e0] ss:$8 sps:$4 sm:$0xff]   ;;  %v5262_v14 = vld [vmem:[#allocation2 + $0x8d4] ss:$8 sps:$4 sm:$0xff]  }
 0x105   :  { %2087 = vmatprep.subr.bf16.mxu1 %v5189_v15  ;;  %v5265_v15 = vld [vmem:[#allocation2 + $0x9d4] ss:$8 sps:$4 sm:$0xff]  }
 0x107   :  { %1826 = vmatpush2.bf16.msra.mxu0 %v5184_v16  ;;  %v5260_v16 = vld [vmem:[#allocation2 + $0x8d0] ss:$8 sps:$4 sm:$0xff]  }
 0x108   :  { %2088 = vmatpush2.bf16.msra.mxu1 %v5187_v17  ;;  %1827 = vmatprep.subr.bf16.mxu0 %v5192_v20  ;;  %v5263_v17 = vld [vmem:[#allocation2 + $0x9d0] ss:$8 sps:$4 sm:$0xff]   ;;  %v5268_v20 = vld [vmem:[#allocation2 + $0x8c4] ss:$8 sps:$4 sm:$0xff]  }
 0x109   :  { %2089 = vmatprep.subr.bf16.mxu1 %v5195_v21  ;;  %v5271_v21 = vld [vmem:[#allocation2 + $0x9c4] ss:$8 sps:$4 sm:$0xff]  }
 0x10b   :  { %1828 = vmatpush2.bf16.msra.mxu0 %v5190_v22  ;;  %v5266_v22 = vld [vmem:[#allocation2 + $0x8c0] ss:$8 sps:$4 sm:$0xff]  }
 0x10c   :  { %2090 = vmatpush2.bf16.msra.mxu1 %v5193_v23  ;;  %2321 = vmatprep.subr.bf16.mxu0 %v5202_v26  ;;  %v5269_v23 = vld [vmem:[#allocation2 + $0x9c0] ss:$8 sps:$4 sm:$0xff]   ;;  %v5274_v26 = vld [vmem:[#allocation2 + $0x8b4] ss:$8 sps:$4 sm:$0xff]  }
 0x10d   :  { %2583 = vmatprep.subr.bf16.mxu1 %v5205_v27  ;;  %v5277_v27 = vld [vmem:[#allocation2 + $0x9b4] ss:$8 sps:$4 sm:$0xff]  }
 0x10e   :  { %v5845_v25 = vpop.f32.mrf.mxu0  ;;  %1830 = vmatmul.mubr.bf16.vlgmr.msra.gmra.mxu0 %v4437_v19  ;;  %v5272_v19 = vld [vmem:[#allocation2 + $0x8b0] ss:$8 sps:$4 sm:$0xff]  }
 0x10f   :  { %v5847_v35 = vpop.f32.mrf.mxu1  ;;  %2092 = vmatmul.mubr.bf16.vlgmr.msra.gmra.mxu1 %v4473_v28  ;;  %2322 = vmatpush1.bf16.msra.mxu0 %v5200_v30  ;;  %v5275_v28 = vld [vmem:[#allocation2 + $0x9b0] ss:$8 sps:$4 sm:$0xff]   ;;  %v5280_v30 = vld [vmem:[#allocation2 + $0x8a4] ss:$8 sps:$4 sm:$0xff]  }
 0x110   :  { %2584 = vmatpush1.bf16.msra.mxu1 %v5203_v31  ;;  %v5849_v38 = vpop.f32.mrf.mxu0  ;;  %2323 = vmatprep.subr.bf16.mxu0 %v5208_v32  ;;  %v5283_v31 = vld [vmem:[#allocation2 + $0x9a4] ss:$8 sps:$4 sm:$0xff]   ;;  %v5278_v32 = vld [vmem:[#allocation2 + $0x8a0] ss:$8 sps:$4 sm:$0xff]  }
 0x111   :  { %v5851_v39 = vpop.f32.mrf.mxu1  ;;  %2585 = vmatprep.subr.bf16.mxu1 %v5211_v33  ;;  %v266_v41 = vmax.f32 %v5845_v25, %v5849_v38  ;;  %2353 = vmatprep.mubr.bf16.mxu0 %v4510_v34  ;;  %v5281_v33 = vld [vmem:[#allocation2 + $0x9a0] ss:$8 sps:$4 sm:$0xff]   ;;  %v5286_v34 = vld [vmem:[#allocation2 + $0x894] ss:$8 sps:$4 sm:$0xff]  }
 0x112   :  { %2615 = vmatprep.mubr.bf16.mxu1 %v4546_v24  ;;  %v263_v43 = vpop.f32.mrf.mxu0  ;;  %v528_v51 = vmax.f32 %v5847_v35, %v5851_v39  ;;  %v5289_v24 = vld [vmem:[#allocation2 + $0x994] ss:$8 sps:$4 sm:$0xff]  }
 0x113   :  { %v525_v44 = vpop.f32.mrf.mxu1  ;;  %2324 = vmatpush1.bf16.msra.mxu0 %v5206_v36  ;;  %267 = vmax.xlane.f32.xlu0 %v266_v41  ;;  %v5284_v36 = vld [vmem:[#allocation2 + $0x890] ss:$8 sps:$4 sm:$0xff]   ;;  %v5295_v41 = vld [vmem:[#allocation2 + $0x984] ss:$8 sps:$4 sm:$0xff]   ;;  %v5293_v43 = vld [vmem:[#allocation2 + $0x980] ss:$8 sps:$4 sm:$0xff]  }
 0x114   :  { %2586 = vmatpush1.bf16.msra.mxu1 %v5209_v37  ;;  %v264_v47 = vpop.f32.mrf.mxu0  ;;  %2325 = vmatprep.subr.bf16.mxu0 %v5214_v40  ;;  %v5287_v37 = vld [vmem:[#allocation2 + $0x990] ss:$8 sps:$4 sm:$0xff]   ;;  %v5292_v40 = vld [vmem:[#allocation2 + $0x884] ss:$8 sps:$4 sm:$0xff]   ;;  %v5302_v44 = vld [vmem:[#allocation2 + $0xa74] ss:$8 sps:$4 sm:$0xff]  }
 0x115   :  { %v526_v48 = vpop.f32.mrf.mxu1  ;;  %2587 = vmatprep.subr.bf16.mxu1 %v5217_v42  ;;  %v5290_v42 = vld [vmem:[#allocation2 + $0x880] ss:$8 sps:$4 sm:$0xff]   ;;  %v5865_v47 = vld [vmem:[%s6127_s0 + $0x58] sm:$0xff] }
 0x116   :  { %v5300_v48 = vld [vmem:[#allocation2 + $0xa70] ss:$8 sps:$4 sm:$0xff]  }
 0x117   :  { %2326 = vmatpush1.bf16.msra.mxu0 %v5212_v45  ;;  %529 = vmax.xlane.f32.xlu0 %v528_v51  ;;  %v5305_v45 = vld [vmem:[#allocation2 + $0xb74] ss:$8 sps:$4 sm:$0xff]   ;;  %v4545_v51 = vcombine.low %v5839_v29, %v5839_v29  ;;  %v5309_v29 = vld [vmem:[#allocation2 + $0xb60] ss:$8 sps:$4 sm:$0xff]  }
 0x118   :  { %2588 = vmatpush1.bf16.msra.mxu1 %v5215_v46  ;;  %2327 = vmatprep.subr.bf16.mxu0 %v5220_v49  ;;  %v5860_v46 = vld [vmem:[%s6127_s0 + $0x50] sm:$0xff] }
 0x119   :  { %2589 = vmatprep.subr.bf16.mxu1 %v5223_v50  ;;  %v5303_v49 = vld [vmem:[#allocation2 + $0xb70] ss:$8 sps:$4 sm:$0xff]   ;;  %v4509_v50 = vcombine.low %v5830_v18, %v5830_v18  ;;  %v5306_v18 = vld [vmem:[#allocation2 + $0xa60] ss:$8 sps:$4 sm:$0xff]  }
 0x11b   :  { %2328 = vmatpush1.bf16.msra.mxu0 %v5218_v52  ;;  %v5308_v52 = vld [vmem:[#allocation2 + $0xa64] ss:$8 sps:$4 sm:$0xff]  }
 0x11c   :  { %2590 = vmatpush1.bf16.msra.mxu1 %v5221_v53  ;;  %2329 = vmatprep.subr.bf16.mxu0 %v5226_v54  ;;  %v5311_v53 = vld [vmem:[#allocation2 + $0xb64] ss:$8 sps:$4 sm:$0xff]   ;;  %v4582_v54 = vcombine.high %v5860_v46, %v5860_v46 }
 0x11d   :  { %2591 = vmatprep.subr.bf16.mxu1 %v5229_v55  ;;  %v4618_v55 = vcombine.high %v5865_v47, %v5865_v47 }
 0x11f   :  { %2330 = vmatpush1.bf16.msra.mxu0 %v5224_v56 }
 0x120   :  { %2592 = vmatpush1.bf16.msra.mxu1 %v5227_v57  ;;  %2331 = vmatprep.subr.bf16.mxu0 %v5232_v58  ;;  %v5314_v58 = vld [vmem:[#allocation2 + $0xa54] ss:$8 sps:$4 sm:$0xff]  }
 0x121   :  { %2593 = vmatprep.subr.bf16.mxu1 %v5235_v59 }
 0x123   :  { %2332 = vmatpush1.bf16.msra.mxu0 %v5230_v60 }
 0x124   :  { %2594 = vmatpush1.bf16.msra.mxu1 %v5233_v61  ;;  %2333 = vmatprep.subr.bf16.mxu0 %v5238_v62  ;;  %v5317_v62 = vld [vmem:[#allocation2 + $0xb54] ss:$8 sps:$4 sm:$0xff]  }
 0x125   :  { %2595 = vmatprep.subr.bf16.mxu1 %v5241_v63 }
 0x127   :  { %2334 = vmatpush1.bf16.msra.mxu0 %v5236_v0 }
 0x128   :  { %2596 = vmatpush1.bf16.msra.mxu1 %v5239_v1  ;;  %2335 = vmatprep.subr.bf16.mxu0 %v5244_v2  ;;  %v5312_v1 = vld [vmem:[#allocation2 + $0xa50] ss:$8 sps:$4 sm:$0xff]  }
 0x129   :  { %2597 = vmatprep.subr.bf16.mxu1 %v5247_v3  ;;  %v5315_v2 = vld [vmem:[#allocation2 + $0xb50] ss:$8 sps:$4 sm:$0xff]  }
 0x12b   :  { %2336 = vmatpush1.bf16.msra.mxu0 %v5242_v4 }
 0x12c   :  { %2598 = vmatpush1.bf16.msra.mxu1 %v5245_v5  ;;  %2337 = vmatprep.subr.bf16.mxu0 %v5250_v6  ;;  %v5320_v5 = vld [vmem:[#allocation2 + $0xa44] ss:$8 sps:$4 sm:$0xff]  }
 0x12d   :  { %2599 = vmatprep.subr.bf16.mxu1 %v5253_v7  ;;  %v5323_v6 = vld [vmem:[#allocation2 + $0xb44] ss:$8 sps:$4 sm:$0xff]  }
 0x12f   :  { %2338 = vmatpush2.bf16.msra.mxu0 %v5248_v8  ;;  %v5318_v8 = vld [vmem:[#allocation2 + $0xa40] ss:$8 sps:$4 sm:$0xff]  }
 0x130   :  { %2600 = vmatpush2.bf16.msra.mxu1 %v5251_v9  ;;  %2339 = vmatprep.subr.bf16.mxu0 %v5256_v10  ;;  %v5321_v9 = vld [vmem:[#allocation2 + $0xb40] ss:$8 sps:$4 sm:$0xff]   ;;  %v5326_v10 = vld [vmem:[#allocation2 + $0xa34] ss:$8 sps:$4 sm:$0xff]  }
 0x131   :  { %2601 = vmatprep.subr.bf16.mxu1 %v5259_v11  ;;  %v5329_v11 = vld [vmem:[#allocation2 + $0xb34] ss:$8 sps:$4 sm:$0xff]  }
 0x133   :  { %2340 = vmatpush2.bf16.msra.mxu0 %v5254_v12  ;;  %v5324_v12 = vld [vmem:[#allocation2 + $0xa30] ss:$8 sps:$4 sm:$0xff]  }
 0x134   :  { %2602 = vmatpush2.bf16.msra.mxu1 %v5257_v13  ;;  %2341 = vmatprep.subr.bf16.mxu0 %v5262_v14  ;;  %v5327_v13 = vld [vmem:[#allocation2 + $0xb30] ss:$8 sps:$4 sm:$0xff]   ;;  %v5332_v14 = vld [vmem:[#allocation2 + $0xa24] ss:$8 sps:$4 sm:$0xff]  }
 0x135   :  { %2603 = vmatprep.subr.bf16.mxu1 %v5265_v15  ;;  %v5335_v15 = vld [vmem:[#allocation2 + $0xb24] ss:$8 sps:$4 sm:$0xff]  }
 0x137   :  { %2342 = vmatpush2.bf16.msra.mxu0 %v5260_v16  ;;  %v5330_v16 = vld [vmem:[#allocation2 + $0xa20] ss:$8 sps:$4 sm:$0xff]  }
 0x138   :  { %2604 = vmatpush2.bf16.msra.mxu1 %v5263_v17  ;;  %2343 = vmatprep.subr.bf16.mxu0 %v5268_v20  ;;  %v5333_v17 = vld [vmem:[#allocation2 + $0xb20] ss:$8 sps:$4 sm:$0xff]   ;;  %v5338_v20 = vld [vmem:[#allocation2 + $0xa14] ss:$8 sps:$4 sm:$0xff]  }
 0x139   :  { %2605 = vmatprep.subr.bf16.mxu1 %v5271_v21  ;;  %v5341_v21 = vld [vmem:[#allocation2 + $0xb14] ss:$8 sps:$4 sm:$0xff]  }
 0x13b   :  { %2344 = vmatpush2.bf16.msra.mxu0 %v5266_v22  ;;  %v5336_v22 = vld [vmem:[#allocation2 + $0xa10] ss:$8 sps:$4 sm:$0xff]  }
 0x13c   :  { %2606 = vmatpush2.bf16.msra.mxu1 %v5269_v23  ;;  %2345 = vmatprep.subr.bf16.mxu0 %v5274_v26  ;;  %v5339_v23 = vld [vmem:[#allocation2 + $0xb10] ss:$8 sps:$4 sm:$0xff]   ;;  %v5344_v26 = vld [vmem:[#allocation2 + $0xa04] ss:$8 sps:$4 sm:$0xff]  }
 0x13d   :  { %2607 = vmatprep.subr.bf16.mxu1 %v5277_v27  ;;  %v5347_v27 = vld [vmem:[#allocation2 + $0xb04] ss:$8 sps:$4 sm:$0xff]  }
 0x13f   :  { %2346 = vmatpush2.bf16.msra.mxu0 %v5272_v19  ;;  %v5342_v19 = vld [vmem:[#allocation2 + $0xa00] ss:$8 sps:$4 sm:$0xff]  }
 0x140   :  { %2608 = vmatpush2.bf16.msra.mxu1 %v5275_v28  ;;  %2347 = vmatprep.subr.bf16.mxu0 %v5280_v30  ;;  %v5345_v28 = vld [vmem:[#allocation2 + $0xb00] ss:$8 sps:$4 sm:$0xff]   ;;  %v5350_v30 = vld [vmem:[#allocation2 + $0xaf4] ss:$8 sps:$4 sm:$0xff]  }
 0x141   :  { %2609 = vmatprep.subr.bf16.mxu1 %v5283_v31  ;;  %v5353_v31 = vld [vmem:[#allocation2 + $0xbf4] ss:$8 sps:$4 sm:$0xff]  }
 0x143   :  { %2348 = vmatpush2.bf16.msra.mxu0 %v5278_v32  ;;  %v5348_v32 = vld [vmem:[#allocation2 + $0xaf0] ss:$8 sps:$4 sm:$0xff]  }
 0x144   :  { %2610 = vmatpush2.bf16.msra.mxu1 %v5281_v33  ;;  %2349 = vmatprep.subr.bf16.mxu0 %v5286_v34  ;;  %v5351_v33 = vld [vmem:[#allocation2 + $0xbf0] ss:$8 sps:$4 sm:$0xff]   ;;  %v5356_v34 = vld [vmem:[#allocation2 + $0xae4] ss:$8 sps:$4 sm:$0xff]  }
 0x145   :  { %2611 = vmatprep.subr.bf16.mxu1 %v5289_v24  ;;  %v5359_v24 = vld [vmem:[#allocation2 + $0xbe4] ss:$8 sps:$4 sm:$0xff]  }
 0x147   :  { %2350 = vmatpush2.bf16.msra.mxu0 %v5284_v36  ;;  %v5354_v36 = vld [vmem:[#allocation2 + $0xae0] ss:$8 sps:$4 sm:$0xff]  }
 0x148   :  { %2612 = vmatpush2.bf16.msra.mxu1 %v5287_v37  ;;  %2351 = vmatprep.subr.bf16.mxu0 %v5292_v40  ;;  %v5357_v37 = vld [vmem:[#allocation2 + $0xbe0] ss:$8 sps:$4 sm:$0xff]   ;;  %v5362_v40 = vld [vmem:[#allocation2 + $0xad4] ss:$8 sps:$4 sm:$0xff]  }
 0x149   :  { %2613 = vmatprep.subr.bf16.mxu1 %v5295_v41  ;;  %v5365_v41 = vld [vmem:[#allocation2 + $0xbd4] ss:$8 sps:$4 sm:$0xff]  }
 0x14b   :  { %2352 = vmatpush2.bf16.msra.mxu0 %v5290_v42  ;;  %v5360_v42 = vld [vmem:[#allocation2 + $0xad0] ss:$8 sps:$4 sm:$0xff]  }
 0x14c   :  { %2614 = vmatpush2.bf16.msra.mxu1 %v5293_v43  ;;  %2845 = vmatprep.subr.bf16.mxu0 %v5302_v44  ;;  %v5363_v43 = vld [vmem:[#allocation2 + $0xbd0] ss:$8 sps:$4 sm:$0xff]   ;;  %v5368_v44 = vld [vmem:[#allocation2 + $0xac4] ss:$8 sps:$4 sm:$0xff]  }
 0x14d   :  { %3107 = vmatprep.subr.bf16.mxu1 %v5305_v45  ;;  %v5371_v45 = vld [vmem:[#allocation2 + $0xbc4] ss:$8 sps:$4 sm:$0xff]  }
 0x14e   :  { %v5875_v56 = vpop.f32.mrf.mxu0  ;;  %2354 = vmatmul.mubr.bf16.vlgmr.msra.gmra.mxu0 %v4509_v50  ;;  %v5374_v50 = vld [vmem:[#allocation2 + $0xab4] ss:$8 sps:$4 sm:$0xff]  }
 0x14f   :  { %v5877_v57 = vpop.f32.mrf.mxu1  ;;  %2616 = vmatmul.mubr.bf16.vlgmr.msra.gmra.mxu1 %v4545_v51  ;;  %2846 = vmatpush1.bf16.msra.mxu0 %v5300_v48  ;;  %v5366_v48 = vld [vmem:[#allocation2 + $0xac0] ss:$8 sps:$4 sm:$0xff]   ;;  %v5377_v51 = vld [vmem:[#allocation2 + $0xbb4] ss:$8 sps:$4 sm:$0xff]  }
 0x150   :  { %3108 = vmatpush1.bf16.msra.mxu1 %v5303_v49  ;;  %v5879_v59 = vpop.f32.mrf.mxu0  ;;  %2847 = vmatprep.subr.bf16.mxu0 %v5308_v52  ;;  %v5369_v49 = vld [vmem:[#allocation2 + $0xbc0] ss:$8 sps:$4 sm:$0xff]   ;;  %v5372_v52 = vld [vmem:[#allocation2 + $0xab0] ss:$8 sps:$4 sm:$0xff]  }
 0x151   :  { %v5881_v60 = vpop.f32.mrf.mxu1  ;;  %3109 = vmatprep.subr.bf16.mxu1 %v5311_v53  ;;  %v790_v61 = vmax.f32 %v5875_v56, %v5879_v59  ;;  %2877 = vmatprep.mubr.bf16.mxu0 %v4582_v54  ;;  %v5375_v53 = vld [vmem:[#allocation2 + $0xbb0] ss:$8 sps:$4 sm:$0xff]   ;;  %v5380_v54 = vld [vmem:[#allocation2 + $0xaa4] ss:$8 sps:$4 sm:$0xff]  }
 0x152   :  { %3139 = vmatprep.mubr.bf16.mxu1 %v4618_v55  ;;  %v787_v63 = vpop.f32.mrf.mxu0  ;;  %v1052_v7 = vmax.f32 %v5877_v57, %v5881_v60  ;;  %v5383_v55 = vld [vmem:[#allocation2 + $0xba4] ss:$8 sps:$4 sm:$0xff]  }
 0x153   :  { %v1049_v0 = vpop.f32.mrf.mxu1  ;;  %2848 = vmatpush1.bf16.msra.mxu0 %v5306_v18  ;;  %791 = vmax.xlane.f32.xlu1 %v790_v61  ;;  %v5378_v18 = vld [vmem:[#allocation2 + $0xaa0] ss:$8 sps:$4 sm:$0xff]   ;;  %v5389_v61 = vld [vmem:[#allocation2 + $0xb94] ss:$8 sps:$4 sm:$0xff]   ;;  %v5387_v63 = vld [vmem:[#allocation2 + $0xb90] ss:$8 sps:$4 sm:$0xff]  }
 0x154   :  { %3110 = vmatpush1.bf16.msra.mxu1 %v5309_v29  ;;  %v788_v3 = vpop.f32.mrf.mxu0  ;;  %2849 = vmatprep.subr.bf16.mxu0 %v5314_v58  ;;  %v5381_v29 = vld [vmem:[#allocation2 + $0xba0] ss:$8 sps:$4 sm:$0xff]   ;;  %v5386_v58 = vld [vmem:[#allocation2 + $0xa94] ss:$8 sps:$4 sm:$0xff]   ;;  %v5392_v0 = vld [vmem:[#allocation2 + $0xa84] ss:$8 sps:$4 sm:$0xff]  }
 0x155   :  { %v1050_v4 = vpop.f32.mrf.mxu1  ;;  %3111 = vmatprep.subr.bf16.mxu1 %v5317_v62  ;;  %v5384_v62 = vld [vmem:[#allocation2 + $0xa90] ss:$8 sps:$4 sm:$0xff]   ;;  %v5393_v3 = vld [vmem:[#allocation2 + $0xb80] ss:$8 sps:$4 sm:$0xff]  }
 0x156   :  { %v5402_v4 = vld [vmem:[#allocation2 + $0xc74] ss:$8 sps:$4 sm:$0xff]  }
 0x157   :  { %2850 = vmatpush1.bf16.msra.mxu0 %v5312_v1  ;;  %1053 = vmax.xlane.f32.xlu1 %v1052_v7  ;;  %v5395_v1 = vld [vmem:[#allocation2 + $0xb84] ss:$8 sps:$4 sm:$0xff]   ;;  %v4617_v7 = vcombine.low %v5865_v47, %v5865_v47 }
 0x158   :  { %3112 = vmatpush1.bf16.msra.mxu1 %v5315_v2  ;;  %2851 = vmatprep.subr.bf16.mxu0 %v5320_v5  ;;  %v5390_v2 = vld [vmem:[#allocation2 + $0xa80] ss:$8 sps:$4 sm:$0xff]   ;;  %v5405_v5 = vld [vmem:[#allocation2 + $0xd74] ss:$8 sps:$4 sm:$0xff]  }
 0x159   :  { %3113 = vmatprep.subr.bf16.mxu1 %v5323_v6  ;;  %v4581_v6 = vcombine.low %v5860_v46, %v5860_v46  ;;  %v5408_v46 = vld [vmem:[#allocation2 + $0xc64] ss:$8 sps:$4 sm:$0xff]  }
 0x15b   :  { %2852 = vmatpush1.bf16.msra.mxu0 %v5318_v8  ;;  %v5894_v8 = vld [vmem:[%s6127_s0 + $0x60] sm:$0xff] }
 0x15c   :  { %3114 = vmatpush1.bf16.msra.mxu1 %v5321_v9  ;;  %2853 = vmatprep.subr.bf16.mxu0 %v5326_v10  ;;  %v5899_v9 = vld [vmem:[%s6127_s0 + $0x68] sm:$0xff]  ;;  %v5400_v10 = vld [vmem:[#allocation2 + $0xc70] ss:$8 sps:$4 sm:$0xff]   ;;  %v4654_v47 = vcombine.high %v5894_v8, %v5894_v8 }
 0x15d   :  { %3115 = vmatprep.subr.bf16.mxu1 %v5329_v11  ;;  %v5403_v11 = vld [vmem:[#allocation2 + $0xd70] ss:$8 sps:$4 sm:$0xff]  }
 0x15f   :  { %2854 = vmatpush1.bf16.msra.mxu0 %v5324_v12  ;;  %v5411_v12 = vld [vmem:[#allocation2 + $0xd64] ss:$8 sps:$4 sm:$0xff]  }
 0x160   :  { %3116 = vmatpush1.bf16.msra.mxu1 %v5327_v13  ;;  %2855 = vmatprep.subr.bf16.mxu0 %v5332_v14  ;;  %v4690_v13 = vcombine.high %v5899_v9, %v5899_v9 }
 0x161   :  { %3117 = vmatprep.subr.bf16.mxu1 %v5335_v15 }
 0x163   :  { %2856 = vmatpush1.bf16.msra.mxu0 %v5330_v16  ;;  %v5406_v16 = vld [vmem:[#allocation2 + $0xc60] ss:$8 sps:$4 sm:$0xff]  }
 0x164   :  { %3118 = vmatpush1.bf16.msra.mxu1 %v5333_v17  ;;  %2857 = vmatprep.subr.bf16.mxu0 %v5338_v20  ;;  %v5409_v17 = vld [vmem:[#allocation2 + $0xd60] ss:$8 sps:$4 sm:$0xff]  }
 0x165   :  { %3119 = vmatprep.subr.bf16.mxu1 %v5341_v21 }
 0x167   :  { %2858 = vmatpush1.bf16.msra.mxu0 %v5336_v22 }
 0x168   :  { %3120 = vmatpush1.bf16.msra.mxu1 %v5339_v23  ;;  %2859 = vmatprep.subr.bf16.mxu0 %v5344_v26  ;;  %v5414_v26 = vld [vmem:[#allocation2 + $0xc54] ss:$8 sps:$4 sm:$0xff]  }
 0x169   :  { %3121 = vmatprep.subr.bf16.mxu1 %v5347_v27  ;;  %v5417_v27 = vld [vmem:[#allocation2 + $0xd54] ss:$8 sps:$4 sm:$0xff]  }
 0x16b   :  { %2860 = vmatpush1.bf16.msra.mxu0 %v5342_v19 }
 0x16c   :  { %3122 = vmatpush1.bf16.msra.mxu1 %v5345_v28  ;;  %2861 = vmatprep.subr.bf16.mxu0 %v5350_v30  ;;  %v5412_v30 = vld [vmem:[#allocation2 + $0xc50] ss:$8 sps:$4 sm:$0xff]  }
 0x16d   :  { %3123 = vmatprep.subr.bf16.mxu1 %v5353_v31  ;;  %v5415_v31 = vld [vmem:[#allocation2 + $0xd50] ss:$8 sps:$4 sm:$0xff]  }
 0x16f   :  { %2862 = vmatpush2.bf16.msra.mxu0 %v5348_v32 }
 0x170   :  { %3124 = vmatpush2.bf16.msra.mxu1 %v5351_v33  ;;  %2863 = vmatprep.subr.bf16.mxu0 %v5356_v34  ;;  %v5420_v34 = vld [vmem:[#allocation2 + $0xc44] ss:$8 sps:$4 sm:$0xff]  }
 0x171   :  { %3125 = vmatprep.subr.bf16.mxu1 %v5359_v24  ;;  %v5423_v24 = vld [vmem:[#allocation2 + $0xd44] ss:$8 sps:$4 sm:$0xff]  }
 0x173   :  { %2864 = vmatpush2.bf16.msra.mxu0 %v5354_v36  ;;  %v5418_v36 = vld [vmem:[#allocation2 + $0xc40] ss:$8 sps:$4 sm:$0xff]  }
 0x174   :  { %3126 = vmatpush2.bf16.msra.mxu1 %v5357_v37  ;;  %2865 = vmatprep.subr.bf16.mxu0 %v5362_v40  ;;  %v5421_v37 = vld [vmem:[#allocation2 + $0xd40] ss:$8 sps:$4 sm:$0xff]   ;;  %v5426_v40 = vld [vmem:[#allocation2 + $0xc34] ss:$8 sps:$4 sm:$0xff]  }
 0x175   :  { %3127 = vmatprep.subr.bf16.mxu1 %v5365_v41  ;;  %v5429_v41 = vld [vmem:[#allocation2 + $0xd34] ss:$8 sps:$4 sm:$0xff]  }
 0x177   :  { %2866 = vmatpush2.bf16.msra.mxu0 %v5360_v42  ;;  %v5424_v42 = vld [vmem:[#allocation2 + $0xc30] ss:$8 sps:$4 sm:$0xff]  }
 0x178   :  { %3128 = vmatpush2.bf16.msra.mxu1 %v5363_v43  ;;  %2867 = vmatprep.subr.bf16.mxu0 %v5368_v44  ;;  %v5427_v43 = vld [vmem:[#allocation2 + $0xd30] ss:$8 sps:$4 sm:$0xff]   ;;  %v5432_v44 = vld [vmem:[#allocation2 + $0xc24] ss:$8 sps:$4 sm:$0xff]  }
 0x179   :  { %3129 = vmatprep.subr.bf16.mxu1 %v5371_v45  ;;  %v5435_v45 = vld [vmem:[#allocation2 + $0xd24] ss:$8 sps:$4 sm:$0xff]  }
 0x17b   :  { %2868 = vmatpush2.bf16.msra.mxu0 %v5366_v48 }
 0x17c   :  { %3130 = vmatpush2.bf16.msra.mxu1 %v5369_v49  ;;  %2869 = vmatprep.subr.bf16.mxu0 %v5374_v50  ;;  %v5430_v50 = vld [vmem:[#allocation2 + $0xc20] ss:$8 sps:$4 sm:$0xff]  }
 0x17d   :  { %3131 = vmatprep.subr.bf16.mxu1 %v5377_v51  ;;  %v5433_v51 = vld [vmem:[#allocation2 + $0xd20] ss:$8 sps:$4 sm:$0xff]  }
 0x17f   :  { %2870 = vmatpush2.bf16.msra.mxu0 %v5372_v52 }
 0x180   :  { %3132 = vmatpush2.bf16.msra.mxu1 %v5375_v53  ;;  %2871 = vmatprep.subr.bf16.mxu0 %v5380_v54  ;;  %v5438_v54 = vld [vmem:[#allocation2 + $0xc14] ss:$8 sps:$4 sm:$0xff]  }
 0x181   :  { %3133 = vmatprep.subr.bf16.mxu1 %v5383_v55  ;;  %v5441_v55 = vld [vmem:[#allocation2 + $0xd14] ss:$8 sps:$4 sm:$0xff]  }
 0x183   :  { %2872 = vmatpush2.bf16.msra.mxu0 %v5378_v18 }
 0x184   :  { %3134 = vmatpush2.bf16.msra.mxu1 %v5381_v29  ;;  %2873 = vmatprep.subr.bf16.mxu0 %v5386_v58 }
 0x185   :  { %3135 = vmatprep.subr.bf16.mxu1 %v5389_v61 }
 0x187   :  { %2874 = vmatpush2.bf16.msra.mxu0 %v5384_v62  ;;  %v5436_v62 = vld [vmem:[#allocation2 + $0xc10] ss:$8 sps:$4 sm:$0xff]  }
 0x188   :  { %3136 = vmatpush2.bf16.msra.mxu1 %v5387_v63  ;;  %2875 = vmatprep.subr.bf16.mxu0 %v5392_v0  ;;  %v5439_v63 = vld [vmem:[#allocation2 + $0xd10] ss:$8 sps:$4 sm:$0xff]  }
 0x189   :  { %3137 = vmatprep.subr.bf16.mxu1 %v5395_v1 }
 0x18b   :  { %2876 = vmatpush2.bf16.msra.mxu0 %v5390_v2 }
 0x18c   :  { %3138 = vmatpush2.bf16.msra.mxu1 %v5393_v3  ;;  %3369 = vmatprep.subr.bf16.mxu0 %v5402_v4  ;;  %v5442_v4 = vld [vmem:[#allocation2 + $0xc00] ss:$8 sps:$4 sm:$0xff]  }
 0x18d   :  { %3631 = vmatprep.subr.bf16.mxu1 %v5405_v5  ;;  %v5445_v5 = vld [vmem:[#allocation2 + $0xd00] ss:$8 sps:$4 sm:$0xff]  }
 0x18e   :  { %v5905_v14 = vpop.f32.mrf.mxu0  ;;  %2878 = vmatmul.mubr.bf16.vlgmr.msra.gmra.mxu0 %v4581_v6  ;;  %v5450_v6 = vld [vmem:[#allocation2 + $0xcf4] ss:$8 sps:$4 sm:$0xff]  }
 0x18f   :  { %v5907_v15 = vpop.f32.mrf.mxu1  ;;  %3140 = vmatmul.mubr.bf16.vlgmr.msra.gmra.mxu1 %v4617_v7  ;;  %3370 = vmatpush1.bf16.msra.mxu0 %v5400_v10  ;;  %v5453_v7 = vld [vmem:[#allocation2 + $0xdf4] ss:$8 sps:$4 sm:$0xff]   ;;  %v5456_v10 = vld [vmem:[#allocation2 + $0xce4] ss:$8 sps:$4 sm:$0xff]  }
 0x190   :  { %3632 = vmatpush1.bf16.msra.mxu1 %v5403_v11  ;;  %v5909_v20 = vpop.f32.mrf.mxu0  ;;  %3371 = vmatprep.subr.bf16.mxu0 %v5408_v46  ;;  %v5459_v11 = vld [vmem:[#allocation2 + $0xde4] ss:$8 sps:$4 sm:$0xff]   ;;  %v5454_v46 = vld [vmem:[#allocation2 + $0xce0] ss:$8 sps:$4 sm:$0xff]  }
 0x191   :  { %v5911_v21 = vpop.f32.mrf.mxu1  ;;  %3633 = vmatprep.subr.bf16.mxu1 %v5411_v12  ;;  %v1314_v23 = vmax.f32 %v5905_v14, %v5909_v20  ;;  %3401 = vmatprep.mubr.bf16.mxu0 %v4654_v47  ;;  %v5457_v12 = vld [vmem:[#allocation2 + $0xde0] ss:$8 sps:$4 sm:$0xff]   ;;  %v5462_v47 = vld [vmem:[#allocation2 + $0xcd4] ss:$8 sps:$4 sm:$0xff]  }
 0x192   :  { %v1576_v22 = vmax.f32 %v5907_v15, %v5911_v21  ;;  %3663 = vmatprep.mubr.bf16.mxu1 %v4690_v13  ;;  %v1311_v19 = vpop.f32.mrf.mxu0  ;;  %v5465_v13 = vld [vmem:[#allocation2 + $0xdd4] ss:$8 sps:$4 sm:$0xff]  }
 0x193   :  { %v1573_v28 = vpop.f32.mrf.mxu1  ;;  %3372 = vmatpush1.bf16.msra.mxu0 %v5406_v16  ;;  %1315 = vmax.xlane.f32.xlu0 %v1314_v23  ;;  %v5468_v19 = vld [vmem:[#allocation2 + $0xcc4] ss:$8 sps:$4 sm:$0xff]  }
 0x194   :  { %3634 = vmatpush1.bf16.msra.mxu1 %v5409_v17  ;;  %1577 = vmax.xlane.f32.xlu1 %v1576_v22  ;;  %v1312_v32 = vpop.f32.mrf.mxu0  ;;  %v5471_v28 = vld [vmem:[#allocation2 + $0xdc4] ss:$8 sps:$4 sm:$0xff]  }
 0x195   :  { %v1574_v33 = vpop.f32.mrf.mxu1  ;;  %3373 = vmatprep.subr.bf16.mxu0 %v5414_v26  ;;  %3635 = vmatprep.subr.bf16.mxu1 %v5417_v27  ;;  %v5460_v26 = vld [vmem:[#allocation2 + $0xcd0] ss:$8 sps:$4 sm:$0xff]  }
 0x196   :  { %v5463_v27 = vld [vmem:[#allocation2 + $0xdd0] ss:$8 sps:$4 sm:$0xff]  }
 0x197   :  { %3374 = vmatpush1.bf16.msra.mxu0 %v5412_v30 }
 0x198   :  { %3636 = vmatpush1.bf16.msra.mxu1 %v5415_v31  ;;  %3375 = vmatprep.subr.bf16.mxu0 %v5420_v34  ;;  %v5466_v34 = vld [vmem:[#allocation2 + $0xcc0] ss:$8 sps:$4 sm:$0xff]  }
 0x199   :  { %3637 = vmatprep.subr.bf16.mxu1 %v5423_v24  ;;  %v5469_v24 = vld [vmem:[#allocation2 + $0xdc0] ss:$8 sps:$4 sm:$0xff]  }
 0x19b   :  { %3376 = vmatpush1.bf16.msra.mxu0 %v5418_v36  ;;  %v5474_v36 = vld [vmem:[#allocation2 + $0xcb4] ss:$8 sps:$4 sm:$0xff]  }
 0x19c   :  { %3638 = vmatpush1.bf16.msra.mxu1 %v5421_v37  ;;  %3377 = vmatprep.subr.bf16.mxu0 %v5426_v40  ;;  %v268_v48 = vpop.xlane.xlu0 %267  ;;  %v5477_v37 = vld [vmem:[#allocation2 + $0xdb4] ss:$8 sps:$4 sm:$0xff]   ;;  %v5472_v40 = vld [vmem:[#allocation2 + $0xcb0] ss:$8 sps:$4 sm:$0xff]  }
 0x19d   :  { %3639 = vmatprep.subr.bf16.mxu1 %v5429_v41  ;;  %v269_v49 = vmul.f32 0.5, %v268_v48  ;;  %v5475_v41 = vld [vmem:[#allocation2 + $0xdb0] ss:$8 sps:$4 sm:$0xff]   ;;  %v5486_v48 = vld [vmem:[#allocation2 + $0xc94] ss:$8 sps:$4 sm:$0xff]  }
 0x19f   :  { %3378 = vmatpush1.bf16.msra.mxu0 %v5424_v42  ;;  %v270_v52 = vsub.f32 %v5845_v25, %v269_v49  ;;  %v271_v53 = vsub.f32 %v5849_v38, %v269_v49  ;;  %v5444_v25 = vld [vmem:[#allocation2 + $0xc04] ss:$8 sps:$4 sm:$0xff]   ;;  %v5489_v49 = vld [vmem:[#allocation2 + $0xd94] ss:$8 sps:$4 sm:$0xff]  }
 0x1a0   :  { %3640 = vmatpush1.bf16.msra.mxu1 %v5427_v43  ;;  %3379 = vmatprep.subr.bf16.mxu0 %v5432_v44  ;;  %v530_v18 = vpop.xlane.xlu0 %529  ;;  %v5447_v38 = vld [vmem:[#allocation2 + $0xd04] ss:$8 sps:$4 sm:$0xff]   ;;  %v5478_v44 = vld [vmem:[#allocation2 + $0xca0] ss:$8 sps:$4 sm:$0xff]  }
 0x1a1   :  { %3641 = vmatprep.subr.bf16.mxu1 %v5435_v45  ;;  %v4255_v29 = vmul.f32 -1.442695, %v270_v52  ;;  %v4256_v58 = vmul.f32 -1.442695, %v271_v53  ;;  %v531_v61 = vmul.f32 0.5, %v530_v18 }
 0x1a2   :  { %v5480_v42 = vld [vmem:[#allocation2 + $0xca4] ss:$8 sps:$4 sm:$0xff]   ;;  %v5481_v45 = vld [vmem:[#allocation2 + $0xda0] ss:$8 sps:$4 sm:$0xff]   ;;  %v5484_v52 = vld [vmem:[#allocation2 + $0xc90] ss:$8 sps:$4 sm:$0xff]  }
 0x1a3   :  { %3380 = vmatpush1.bf16.msra.mxu0 %v5430_v50  ;;  %5600 = vpow2.f32 %v4255_v29  ;;  %v532_v0 = vsub.f32 %v5847_v35, %v531_v61  ;;  %v533_v1 = vsub.f32 %v5851_v39, %v531_v61  ;;  %v5448_v35 = vld [vmem:[#allocation2 + $0xcf0] ss:$8 sps:$4 sm:$0xff]   ;;  %v5483_v43 = vld [vmem:[#allocation2 + $0xda4] ss:$8 sps:$4 sm:$0xff]   ;;  %v5493_v61 = vld [vmem:[#allocation2 + $0xd80] ss:$8 sps:$4 sm:$0xff]  }
 0x1a4   :  { %3642 = vmatpush1.bf16.msra.mxu1 %v5433_v51  ;;  %3381 = vmatprep.subr.bf16.mxu0 %v5438_v54  ;;  %5602 = vpow2.f32 %v4256_v58  ;;  %v5451_v39 = vld [vmem:[#allocation2 + $0xdf0] ss:$8 sps:$4 sm:$0xff]   ;;  %v5492_v54 = vld [vmem:[#allocation2 + $0xc84] ss:$8 sps:$4 sm:$0xff]   ;;  %v5490_v58 = vld [vmem:[#allocation2 + $0xc80] ss:$8 sps:$4 sm:$0xff]  }
 0x1a5   :  { %3643 = vmatprep.subr.bf16.mxu1 %v5441_v55  ;;  %v4291_v2 = vmul.f32 -1.442695, %v532_v0  ;;  %v4292_v3 = vmul.f32 -1.442695, %v533_v1  ;;  %v5487_v53 = vld [vmem:[#allocation2 + $0xd90] ss:$8 sps:$4 sm:$0xff]   ;;  %v4653_v0 = vcombine.low %v5894_v8, %v5894_v8  ;;  %v4689_v1 = vcombine.low %v5899_v9, %v5899_v9 }
 0x1a6   :  { %v5495_v55 = vld [vmem:[#allocation2 + $0xd84] ss:$8 sps:$4 sm:$0xff]  }
 0x1a7   :  { %3382 = vmatpush1.bf16.msra.mxu0 %v5436_v62  ;;  %5604 = vpow2.f32 %v4291_v2  ;;  %v5502_v62 = vld [vmem:[#allocation2 + $0xe74] ss:$8 sps:$4 sm:$0xff]   ;;  %v5500_v2 = vld [vmem:[#allocation2 + $0xe70] ss:$8 sps:$4 sm:$0xff]   ;;  %v5508_v8 = vld [vmem:[#allocation2 + $0xe64] ss:$8 sps:$4 sm:$0xff]  }
 0x1a8   :  { %3644 = vmatpush1.bf16.msra.mxu1 %v5439_v63  ;;  %3383 = vmatprep.subr.bf16.mxu0 %v5444_v25  ;;  %5606 = vpow2.f32 %v4292_v3  ;;  %v5505_v63 = vld [vmem:[#allocation2 + $0xf74] ss:$8 sps:$4 sm:$0xff]   ;;  %v5503_v3 = vld [vmem:[#allocation2 + $0xf70] ss:$8 sps:$4 sm:$0xff]  }
 0x1a9   :  { %3645 = vmatprep.subr.bf16.mxu1 %v5447_v38  ;;  %v5940_v25 = vld [vmem:[%s6127_s0 + $0x70] sm:$0xff]  ;;  %v5945_v38 = vld [vmem:[%s6127_s0 + $0x78] sm:$0xff] }
 0x1aa   :  { %v4726_v9 = vcombine.high %v5940_v25, %v5940_v25 }
 0x1ab   :  { %3384 = vmatpush1.bf16.msra.mxu0 %v5442_v4  ;;  %v5511_v4 = vld [vmem:[#allocation2 + $0xf64] ss:$8 sps:$4 sm:$0xff]  }
 0x1ac   :  { %3646 = vmatpush1.bf16.msra.mxu1 %v5445_v5  ;;  %3385 = vmatprep.subr.bf16.mxu0 %v5450_v6  ;;  %v4762_v5 = vcombine.high %v5945_v38, %v5945_v38 }
 0x1ad   :  { %3647 = vmatprep.subr.bf16.mxu1 %v5453_v7 }
 0x1af   :  { %3386 = vmatpush2.bf16.msra.mxu0 %v5448_v35  ;;  %v5506_v35 = vld [vmem:[#allocation2 + $0xe60] ss:$8 sps:$4 sm:$0xff]  }
 0x1b0   :  { %3648 = vmatpush2.bf16.msra.mxu1 %v5451_v39  ;;  %3387 = vmatprep.subr.bf16.mxu0 %v5456_v10  ;;  %v5601_v16 = vpop.eup %5600  ;;  %v5509_v39 = vld [vmem:[#allocation2 + $0xf60] ss:$8 sps:$4 sm:$0xff]  }
 0x1b1   :  { %3649 = vmatprep.subr.bf16.mxu1 %v5459_v11  ;;  %v5603_v17 = vpop.eup %5602  ;;  %v278_v22 = vadd.f32 1.0, %v5601_v16 }
 0x1b2   :  { %v279_v23 = vadd.f32 1.0, %v5603_v17 }
 0x1b3   :  { %3388 = vmatpush2.bf16.msra.mxu0 %v5454_v46  ;;  %5608 = vrcp.f32 %v278_v22  ;;  %v5512_v22 = vld [vmem:[#allocation2 + $0xe50] ss:$8 sps:$4 sm:$0xff]  }
 0x1b4   :  { %3650 = vmatpush2.bf16.msra.mxu1 %v5457_v12  ;;  %3389 = vmatprep.subr.bf16.mxu0 %v5462_v47  ;;  %v5605_v30 = vpop.eup %5604  ;;  %5610 = vrcp.f32 %v279_v23  ;;  %v5514_v47 = vld [vmem:[#allocation2 + $0xe54] ss:$8 sps:$4 sm:$0xff]   ;;  %v5515_v23 = vld [vmem:[#allocation2 + $0xf50] ss:$8 sps:$4 sm:$0xff]  }
 0x1b5   :  { %3651 = vmatprep.subr.bf16.mxu1 %v5465_v13  ;;  %v5607_v31 = vpop.eup %5606  ;;  %v540_v32 = vadd.f32 1.0, %v5605_v30  ;;  %v5517_v13 = vld [vmem:[#allocation2 + $0xf54] ss:$8 sps:$4 sm:$0xff]   ;;  %v5518_v30 = vld [vmem:[#allocation2 + $0xe40] ss:$8 sps:$4 sm:$0xff]  }
 0x1b6   :  { %v541_v33 = vadd.f32 1.0, %v5607_v31  ;;  %v5521_v31 = vld [vmem:[#allocation2 + $0xf40] ss:$8 sps:$4 sm:$0xff]  }
 0x1b7   :  { %3390 = vmatpush2.bf16.msra.mxu0 %v5460_v26  ;;  %5612 = vrcp.f32 %v540_v32  ;;  %v5526_v32 = vld [vmem:[#allocation2 + $0xe34] ss:$8 sps:$4 sm:$0xff]  }
 0x1b8   :  { %3652 = vmatpush2.bf16.msra.mxu1 %v5463_v27  ;;  %3391 = vmatprep.subr.bf16.mxu0 %v5468_v19  ;;  %5614 = vrcp.f32 %v541_v33  ;;  %v5520_v19 = vld [vmem:[#allocation2 + $0xe44] ss:$8 sps:$4 sm:$0xff]   ;;  %v5529_v33 = vld [vmem:[#allocation2 + $0xf34] ss:$8 sps:$4 sm:$0xff]  }
 0x1b9   :  { %3653 = vmatprep.subr.bf16.mxu1 %v5471_v28  ;;  %v5523_v28 = vld [vmem:[#allocation2 + $0xf44] ss:$8 sps:$4 sm:$0xff]  }
 0x1bb   :  { %3392 = vmatpush2.bf16.msra.mxu0 %v5466_v34  ;;  %v5524_v34 = vld [vmem:[#allocation2 + $0xe30] ss:$8 sps:$4 sm:$0xff]  }
 0x1bc   :  { %3654 = vmatpush2.bf16.msra.mxu1 %v5469_v24  ;;  %3393 = vmatprep.subr.bf16.mxu0 %v5474_v36  ;;  %v5527_v24 = vld [vmem:[#allocation2 + $0xf30] ss:$8 sps:$4 sm:$0xff]   ;;  %v5532_v36 = vld [vmem:[#allocation2 + $0xe24] ss:$8 sps:$4 sm:$0xff]  }
 0x1bd   :  { %3655 = vmatprep.subr.bf16.mxu1 %v5477_v37  ;;  %v5535_v37 = vld [vmem:[#allocation2 + $0xf24] ss:$8 sps:$4 sm:$0xff]  }
 0x1bf   :  { %3394 = vmatpush2.bf16.msra.mxu0 %v5472_v40 }
 0x1c0   :  { %3656 = vmatpush2.bf16.msra.mxu1 %v5475_v41  ;;  %3395 = vmatprep.subr.bf16.mxu0 %v5480_v42  ;;  %v5609_v50 = vpop.eup %5608  ;;  %v5530_v42 = vld [vmem:[#allocation2 + $0xe20] ss:$8 sps:$4 sm:$0xff]  }
 0x1c1   :  { %3657 = vmatprep.subr.bf16.mxu1 %v5483_v43  ;;  %v5611_v51 = vpop.eup %5610  ;;  %284 = vst [vmem:[%s6129_s2] sm:$0xff] %v5609_v50  ;;  %v5533_v43 = vld [vmem:[#allocation2 + $0xf20] ss:$8 sps:$4 sm:$0xff]  }
 0x1c2   :  { %285 = vst [vmem:[%s6129_s2 + $0x8] sm:$0xff] %v5611_v51 }
 0x1c3   :  { %3396 = vmatpush2.bf16.msra.mxu0 %v5478_v44 }
 0x1c4   :  { %3658 = vmatpush2.bf16.msra.mxu1 %v5481_v45  ;;  %3397 = vmatprep.subr.bf16.mxu0 %v5486_v48  ;;  %v5613_v18 = vpop.eup %5612  ;;  %v5538_v48 = vld [vmem:[#allocation2 + $0xe14] ss:$8 sps:$4 sm:$0xff]  }
 0x1c5   :  { %3659 = vmatprep.subr.bf16.mxu1 %v5489_v49  ;;  %v5615_v29 = vpop.eup %5614  ;;  %546 = vst [vmem:[%s6129_s2 + $0x10] sm:$0xff] %v5613_v18  ;;  %v5541_v49 = vld [vmem:[#allocation2 + $0xf14] ss:$8 sps:$4 sm:$0xff]  }
 0x1c6   :  { %547 = vst [vmem:[%s6129_s2 + $0x18] sm:$0xff] %v5615_v29 }
 0x1c7   :  { %3398 = vmatpush2.bf16.msra.mxu0 %v5484_v52 }
 0x1c8   :  { %3660 = vmatpush2.bf16.msra.mxu1 %v5487_v53  ;;  %3399 = vmatprep.subr.bf16.mxu0 %v5492_v54  ;;  %v5536_v54 = vld [vmem:[#allocation2 + $0xe10] ss:$8 sps:$4 sm:$0xff]  }
 0x1c9   :  { %3661 = vmatprep.subr.bf16.mxu1 %v5495_v55  ;;  %v5539_v55 = vld [vmem:[#allocation2 + $0xf10] ss:$8 sps:$4 sm:$0xff]  }
 0x1cb   :  { %3400 = vmatpush2.bf16.msra.mxu0 %v5490_v58 }
 0x1cc   :  { %3662 = vmatpush2.bf16.msra.mxu1 %v5493_v61  ;;  %3893 = vmatprep.subr.bf16.mxu0 %v5502_v62  ;;  %v5542_v62 = vld [vmem:[#allocation2 + $0xe00] ss:$8 sps:$4 sm:$0xff]  }
 0x1cd   :  { %4155 = vmatprep.subr.bf16.mxu1 %v5505_v63  ;;  %v5545_v63 = vld [vmem:[#allocation2 + $0xf00] ss:$8 sps:$4 sm:$0xff]  }
 0x1ce   :  { %v5951_v6 = vpop.f32.mrf.mxu0  ;;  %3402 = vmatmul.mubr.bf16.vlgmr.msra.gmra.mxu0 %v4653_v0  ;;  %v5550_v0 = vld [vmem:[#allocation2 + $0xef4] ss:$8 sps:$4 sm:$0xff]  }
 0x1cf   :  { %v5953_v7 = vpop.f32.mrf.mxu1  ;;  %3664 = vmatmul.mubr.bf16.vlgmr.msra.gmra.mxu1 %v4689_v1  ;;  %3894 = vmatpush1.bf16.msra.mxu0 %v5500_v2  ;;  %v5553_v1 = vld [vmem:[#allocation2 + $0xff4] ss:$8 sps:$4 sm:$0xff]   ;;  %v5556_v2 = vld [vmem:[#allocation2 + $0xee4] ss:$8 sps:$4 sm:$0xff]  }
 0x1d0   :  { %4156 = vmatpush1.bf16.msra.mxu1 %v5503_v3  ;;  %v5955_v10 = vpop.f32.mrf.mxu0  ;;  %3895 = vmatprep.subr.bf16.mxu0 %v5508_v8  ;;  %v5559_v3 = vld [vmem:[#allocation2 + $0xfe4] ss:$8 sps:$4 sm:$0xff]   ;;  %v5554_v8 = vld [vmem:[#allocation2 + $0xee0] ss:$8 sps:$4 sm:$0xff]  }
 0x1d1   :  { %v5957_v11 = vpop.f32.mrf.mxu1  ;;  %4157 = vmatprep.subr.bf16.mxu1 %v5511_v4  ;;  %v1838_v12 = vmax.f32 %v5951_v6, %v5955_v10  ;;  %3925 = vmatprep.mubr.bf16.mxu0 %v4726_v9  ;;  %v5557_v4 = vld [vmem:[#allocation2 + $0xfe0] ss:$8 sps:$4 sm:$0xff]   ;;  %v5562_v9 = vld [vmem:[#allocation2 + $0xed4] ss:$8 sps:$4 sm:$0xff]  }
 0x1d2   :  { %v2100_v46 = vmax.f32 %v5953_v7, %v5957_v11  ;;  %4187 = vmatprep.mubr.bf16.mxu1 %v4762_v5  ;;  %v1835_v16 = vpop.f32.mrf.mxu0  ;;  %v5565_v5 = vld [vmem:[#allocation2 + $0xfd4] ss:$8 sps:$4 sm:$0xff]  }
 0x1d3   :  { %v2097_v17 = vpop.f32.mrf.mxu1  ;;  %3896 = vmatpush1.bf16.msra.mxu0 %v5506_v35  ;;  %1839 = vmax.xlane.f32.xlu0 %v1838_v12  ;;  %v5568_v16 = vld [vmem:[#allocation2 + $0xec4] ss:$8 sps:$4 sm:$0xff]  }
 0x1d4   :  { %4158 = vmatpush1.bf16.msra.mxu1 %v5509_v39  ;;  %2101 = vmax.xlane.f32.xlu1 %v2100_v46  ;;  %v1836_v26 = vpop.f32.mrf.mxu0  ;;  %v5571_v17 = vld [vmem:[#allocation2 + $0xfc4] ss:$8 sps:$4 sm:$0xff]  }
 0x1d5   :  { %v2098_v27 = vpop.f32.mrf.mxu1  ;;  %3897 = vmatprep.subr.bf16.mxu0 %v5514_v47  ;;  %4159 = vmatprep.subr.bf16.mxu1 %v5517_v13  ;;  %v5560_v47 = vld [vmem:[#allocation2 + $0xed0] ss:$8 sps:$4 sm:$0xff]  }
 0x1d6   :  { %v5563_v13 = vld [vmem:[#allocation2 + $0xfd0] ss:$8 sps:$4 sm:$0xff]  }
 0x1d7   :  { %3898 = vmatpush1.bf16.msra.mxu0 %v5512_v22 }
 0x1d8   :  { %4160 = vmatpush1.bf16.msra.mxu1 %v5515_v23  ;;  %3899 = vmatprep.subr.bf16.mxu0 %v5520_v19  ;;  %v5566_v19 = vld [vmem:[#allocation2 + $0xec0] ss:$8 sps:$4 sm:$0xff]  }
 0x1d9   :  { %4161 = vmatprep.subr.bf16.mxu1 %v5523_v28  ;;  %v5569_v28 = vld [vmem:[#allocation2 + $0xfc0] ss:$8 sps:$4 sm:$0xff]  }
 0x1db   :  { %3900 = vmatpush1.bf16.msra.mxu0 %v5518_v30  ;;  %v5574_v30 = vld [vmem:[#allocation2 + $0xeb4] ss:$8 sps:$4 sm:$0xff]  }
 0x1dc   :  { %4162 = vmatpush1.bf16.msra.mxu1 %v5521_v31  ;;  %3901 = vmatprep.subr.bf16.mxu0 %v5526_v32  ;;  %v792_v40 = vpop.xlane.xlu1 %791  ;;  %v5577_v31 = vld [vmem:[#allocation2 + $0xfb4] ss:$8 sps:$4 sm:$0xff]   ;;  %v5572_v32 = vld [vmem:[#allocation2 + $0xeb0] ss:$8 sps:$4 sm:$0xff]  }
 0x1dd   :  { %4163 = vmatprep.subr.bf16.mxu1 %v5529_v33  ;;  %v793_v41 = vmul.f32 0.5, %v792_v40  ;;  %v5575_v33 = vld [vmem:[#allocation2 + $0xfb0] ss:$8 sps:$4 sm:$0xff]   ;;  %v5586_v40 = vld [vmem:[#allocation2 + $0xe94] ss:$8 sps:$4 sm:$0xff]  }
 0x1df   :  { %3902 = vmatpush1.bf16.msra.mxu0 %v5524_v34  ;;  %v794_v44 = vsub.f32 %v5875_v56, %v793_v41  ;;  %v795_v45 = vsub.f32 %v5879_v59, %v793_v41  ;;  %v5544_v56 = vld [vmem:[#allocation2 + $0xe04] ss:$8 sps:$4 sm:$0xff]   ;;  %v5589_v41 = vld [vmem:[#allocation2 + $0xf94] ss:$8 sps:$4 sm:$0xff]  }
 0x1e0   :  { %4164 = vmatpush1.bf16.msra.mxu1 %v5527_v24  ;;  %3903 = vmatprep.subr.bf16.mxu0 %v5532_v36  ;;  %v1054_v50 = vpop.xlane.xlu1 %1053  ;;  %v5547_v59 = vld [vmem:[#allocation2 + $0xf04] ss:$8 sps:$4 sm:$0xff]   ;;  %v5578_v36 = vld [vmem:[#allocation2 + $0xea0] ss:$8 sps:$4 sm:$0xff]  }
 0x1e1   :  { %4165 = vmatprep.subr.bf16.mxu1 %v5535_v37  ;;  %v4327_v51 = vmul.f32 -1.442695, %v794_v44  ;;  %v4328_v52 = vmul.f32 -1.442695, %v795_v45  ;;  %v1055_v53 = vmul.f32 0.5, %v1054_v50 }
 0x1e2   :  { %v5580_v34 = vld [vmem:[#allocation2 + $0xea4] ss:$8 sps:$4 sm:$0xff]   ;;  %v5581_v37 = vld [vmem:[#allocation2 + $0xfa0] ss:$8 sps:$4 sm:$0xff]   ;;  %v5584_v44 = vld [vmem:[#allocation2 + $0xe90] ss:$8 sps:$4 sm:$0xff]  }
 0x1e3   :  { %3904 = vmatpush1.bf16.msra.mxu0 %v5530_v42  ;;  %5616 = vpow2.f32 %v4327_v51  ;;  %v1056_v18 = vsub.f32 %v5877_v57, %v1055_v53  ;;  %v1057_v29 = vsub.f32 %v5881_v60, %v1055_v53  ;;  %v5548_v57 = vld [vmem:[#allocation2 + $0xef0] ss:$8 sps:$4 sm:$0xff]   ;;  %v5583_v24 = vld [vmem:[#allocation2 + $0xfa4] ss:$8 sps:$4 sm:$0xff]   ;;  %v5593_v53 = vld [vmem:[#allocation2 + $0xf80] ss:$8 sps:$4 sm:$0xff]  }
 0x1e4   :  { %4166 = vmatpush1.bf16.msra.mxu1 %v5533_v43  ;;  %3905 = vmatprep.subr.bf16.mxu0 %v5538_v48  ;;  %5618 = vpow2.f32 %v4328_v52  ;;  %v5551_v60 = vld [vmem:[#allocation2 + $0xff0] ss:$8 sps:$4 sm:$0xff]   ;;  %v5592_v48 = vld [vmem:[#allocation2 + $0xe84] ss:$8 sps:$4 sm:$0xff]   ;;  %v5590_v52 = vld [vmem:[#allocation2 + $0xe80] ss:$8 sps:$4 sm:$0xff]  }
 0x1e5   :  { %4167 = vmatprep.subr.bf16.mxu1 %v5541_v49  ;;  %v4363_v58 = vmul.f32 -1.442695, %v1056_v18  ;;  %v4364_v61 = vmul.f32 -1.442695, %v1057_v29  ;;  %v5587_v45 = vld [vmem:[#allocation2 + $0xf90] ss:$8 sps:$4 sm:$0xff]  }
 0x1e6   :  { %v5595_v49 = vld [vmem:[#allocation2 + $0xf84] ss:$8 sps:$4 sm:$0xff]  }
 0x1e7   :  { %3906 = vmatpush1.bf16.msra.mxu0 %v5536_v54  ;;  %5620 = vpow2.f32 %v4363_v58  ;;  %v4725_v54 = vcombine.low %v5940_v25, %v5940_v25 }
 0x1e8   :  { %4168 = vmatpush1.bf16.msra.mxu1 %v5539_v55  ;;  %3907 = vmatprep.subr.bf16.mxu0 %v5544_v56  ;;  %5622 = vpow2.f32 %v4364_v61  ;;  %v4761_v55 = vcombine.low %v5945_v38, %v5945_v38 }
 0x1e9   :  { %4169 = vmatprep.subr.bf16.mxu1 %v5547_v59 }
 0x1eb   :  { %3908 = vmatpush1.bf16.msra.mxu0 %v5542_v62 }
 0x1ec   :  { %4170 = vmatpush1.bf16.msra.mxu1 %v5545_v63  ;;  %3909 = vmatprep.subr.bf16.mxu0 %v5550_v0 }
 0x1ed   :  { %4171 = vmatprep.subr.bf16.mxu1 %v5553_v1 }
 0x1ef   :  { %3910 = vmatpush2.bf16.msra.mxu0 %v5548_v57 }
 0x1f0   :  { %4172 = vmatpush2.bf16.msra.mxu1 %v5551_v60  ;;  %3911 = vmatprep.subr.bf16.mxu0 %v5556_v2  ;;  %v5617_v35 = vpop.eup %5616 }
 0x1f1   :  { %4173 = vmatprep.subr.bf16.mxu1 %v5559_v3  ;;  %v5619_v39 = vpop.eup %5618  ;;  %v802_v46 = vadd.f32 1.0, %v5617_v35 }
 0x1f2   :  { %v803_v12 = vadd.f32 1.0, %v5619_v39 }
 0x1f3   :  { %3912 = vmatpush2.bf16.msra.mxu0 %v5554_v8  ;;  %5624 = vrcp.f32 %v802_v46 }
 0x1f4   :  { %4174 = vmatpush2.bf16.msra.mxu1 %v5557_v4  ;;  %3913 = vmatprep.subr.bf16.mxu0 %v5562_v9  ;;  %v5621_v22 = vpop.eup %5620  ;;  %5626 = vrcp.f32 %v803_v12 }
 0x1f5   :  { %4175 = vmatprep.subr.bf16.mxu1 %v5565_v5  ;;  %v5623_v23 = vpop.eup %5622  ;;  %v1064_v26 = vadd.f32 1.0, %v5621_v22 }
 0x1f6   :  { %v1065_v27 = vadd.f32 1.0, %v5623_v23 }
 0x1f7   :  { %3914 = vmatpush2.bf16.msra.mxu0 %v5560_v47  ;;  %5628 = vrcp.f32 %v1064_v26 }
 0x1f8   :  { %4176 = vmatpush2.bf16.msra.mxu1 %v5563_v13  ;;  %3915 = vmatprep.subr.bf16.mxu0 %v5568_v16  ;;  %5630 = vrcp.f32 %v1065_v27 }
 0x1f9   :  { %4177 = vmatprep.subr.bf16.mxu1 %v5571_v17 }
 0x1fb   :  { %3916 = vmatpush2.bf16.msra.mxu0 %v5566_v19 }
 0x1fc   :  { %4178 = vmatpush2.bf16.msra.mxu1 %v5569_v28  ;;  %3917 = vmatprep.subr.bf16.mxu0 %v5574_v30 }
 0x1fd   :  { %4179 = vmatprep.subr.bf16.mxu1 %v5577_v31 }
 0x1ff   :  { %3918 = vmatpush2.bf16.msra.mxu0 %v5572_v32 }
 0x200   :  { %4180 = vmatpush2.bf16.msra.mxu1 %v5575_v33  ;;  %3919 = vmatprep.subr.bf16.mxu0 %v5580_v34  ;;  %v5625_v42 = vpop.eup %5624 }
 0x201   :  { %4181 = vmatprep.subr.bf16.mxu1 %v5583_v24  ;;  %v5627_v43 = vpop.eup %5626  ;;  %808 = vst [vmem:[%s6129_s2 + $0x20] sm:$0xff] %v5625_v42 }
 0x202   :  { %809 = vst [vmem:[%s6129_s2 + $0x28] sm:$0xff] %v5627_v43 }
 0x203   :  { %3920 = vmatpush2.bf16.msra.mxu0 %v5578_v36 }
 0x204   :  { %4182 = vmatpush2.bf16.msra.mxu1 %v5581_v37  ;;  %3921 = vmatprep.subr.bf16.mxu0 %v5586_v40  ;;  %v5629_v50 = vpop.eup %5628 }
 0x205   :  { %4183 = vmatprep.subr.bf16.mxu1 %v5589_v41  ;;  %v5631_v51 = vpop.eup %5630  ;;  %1070 = vst [vmem:[%s6129_s2 + $0x30] sm:$0xff] %v5629_v50 }
 0x206   :  { %1071 = vst [vmem:[%s6129_s2 + $0x38] sm:$0xff] %v5631_v51 }
 0x207   :  { %3922 = vmatpush2.bf16.msra.mxu0 %v5584_v44 }
 0x208   :  { %4184 = vmatpush2.bf16.msra.mxu1 %v5587_v45  ;;  %3923 = vmatprep.subr.bf16.mxu0 %v5592_v48 }
 0x209   :  { %4185 = vmatprep.subr.bf16.mxu1 %v5595_v49 }
 0x20b   :  { %3924 = vmatpush2.bf16.msra.mxu0 %v5590_v52 }
 0x20c   :  { %4186 = vmatpush2.bf16.msra.mxu1 %v5593_v53 }
 0x20e   :  { %v5983_v18 = vpop.f32.mrf.mxu0  ;;  %3926 = vmatmul.mubr.bf16.vlgmr.msra.gmra.mxu0 %v4725_v54 }
 0x20f   :  { %v5985_v29 = vpop.f32.mrf.mxu1  ;;  %4188 = vmatmul.mubr.bf16.vlgmr.msra.gmra.mxu1 %v4761_v55 }
 0x210   :  { %v5987_v56 = vpop.f32.mrf.mxu0 }
 0x211   :  { %v5989_v59 = vpop.f32.mrf.mxu1  ;;  %v2362_v25 = vmax.f32 %v5983_v18, %v5987_v56 }
 0x212   :  { %v2624_v58 = vmax.f32 %v5985_v29, %v5989_v59  ;;  %v2359_v61 = vpop.f32.mrf.mxu0 }
 0x213   :  { %v2621_v38 = vpop.f32.mrf.mxu1  ;;  %2363 = vmax.xlane.f32.xlu0 %v2362_v25 }
 0x214   :  { %2625 = vmax.xlane.f32.xlu1 %v2624_v58  ;;  %v2360_v62 = vpop.f32.mrf.mxu0 }
 0x215   :  { %v2622_v63 = vpop.f32.mrf.mxu1 }
 0x21c   :  { %v1316_v1 = vpop.xlane.xlu0 %1315 }
 0x21d   :  { %v1578_v0 = vpop.xlane.xlu1 %1577  ;;  %v1317_v60 = vmul.f32 0.5, %v1316_v1 }
 0x21e   :  { %v1579_v57 = vmul.f32 0.5, %v1578_v0 }
 0x21f   :  { %v1318_v8 = vsub.f32 %v5905_v14, %v1317_v60  ;;  %v1319_v4 = vsub.f32 %v5909_v20, %v1317_v60 }
 0x220   :  { %v1580_v2 = vsub.f32 %v5907_v15, %v1579_v57  ;;  %v1581_v3 = vsub.f32 %v5911_v21, %v1579_v57 }
 0x221   :  { %v4399_v35 = vmul.f32 -1.442695, %v1318_v8  ;;  %v4400_v39 = vmul.f32 -1.442695, %v1319_v4 }
 0x222   :  { %v4435_v9 = vmul.f32 -1.442695, %v1580_v2  ;;  %v4436_v5 = vmul.f32 -1.442695, %v1581_v3 }
 0x224   :  { %5632 = vpow2.f32 %v4435_v9 }
 0x225   :  { %5634 = vpow2.f32 %v4436_v5 }
 0x226   :  { %5636 = vpow2.f32 %v4399_v35 }
 0x227   :  { %5638 = vpow2.f32 %v4400_v39 }
 0x231   :  { %v5633_v46 = vpop.eup %5632 }
 0x232   :  { %v5635_v12 = vpop.eup %5634  ;;  %v1588_v47 = vadd.f32 1.0, %v5633_v46 }
 0x233   :  { %v5637_v13 = vpop.eup %5636  ;;  %v1589_v16 = vadd.f32 1.0, %v5635_v12 }
 0x234   :  { %v5639_v15 = vpop.eup %5638  ;;  %5640 = vrcp.f32 %v1588_v47  ;;  %v1326_v21 = vadd.f32 1.0, %v5637_v13 }
 0x235   :  { %5642 = vrcp.f32 %v1589_v16  ;;  %v1327_v14 = vadd.f32 1.0, %v5639_v15 }
 0x236   :  { %5644 = vrcp.f32 %v1326_v21 }
 0x237   :  { %5646 = vrcp.f32 %v1327_v14 }
 0x241   :  { %v5641_v20 = vpop.eup %5640 }
 0x242   :  { %v5643_v17 = vpop.eup %5642  ;;  %1594 = vst [vmem:[%s6129_s2 + $0x50] sm:$0xff] %v5641_v20 }
 0x243   :  { %v5645_v22 = vpop.eup %5644  ;;  %1595 = vst [vmem:[%s6129_s2 + $0x58] sm:$0xff] %v5643_v17 }
 0x244   :  { %v5647_v23 = vpop.eup %5646  ;;  %1332 = vst [vmem:[%s6129_s2 + $0x40] sm:$0xff] %v5645_v22 }
 0x245   :  { %1333 = vst [vmem:[%s6129_s2 + $0x48] sm:$0xff] %v5647_v23 }
 0x24e   :  { %v6011_v26 = vpop.f32.mrf.mxu0 }
 0x24f   :  { %v6013_v27 = vpop.f32.mrf.mxu1 }
 0x250   :  { %v6015_v19 = vpop.f32.mrf.mxu0 }
 0x251   :  { %v6017_v28 = vpop.f32.mrf.mxu1  ;;  %v2886_v31 = vmax.f32 %v6011_v26, %v6015_v19 }
 0x252   :  { %v3148_v30 = vmax.f32 %v6013_v27, %v6017_v28  ;;  %v2883_v32 = vpop.f32.mrf.mxu0 }
 0x253   :  { %v3145_v33 = vpop.f32.mrf.mxu1  ;;  %2887 = vmax.xlane.f32.xlu0 %v2886_v31 }
 0x254   :  { %3149 = vmax.xlane.f32.xlu1 %v3148_v30  ;;  %v2884_v34 = vpop.f32.mrf.mxu0 }
 0x255   :  { %v3146_v24 = vpop.f32.mrf.mxu1 }
 0x25c   :  { %v1840_v37 = vpop.xlane.xlu0 %1839 }
 0x25d   :  { %v2102_v36 = vpop.xlane.xlu1 %2101  ;;  %v1841_v41 = vmul.f32 0.5, %v1840_v37 }
 0x25e   :  { %v2103_v40 = vmul.f32 0.5, %v2102_v36 }
 0x25f   :  { %v1842_v44 = vsub.f32 %v5951_v6, %v1841_v41  ;;  %v1843_v45 = vsub.f32 %v5955_v10, %v1841_v41 }
 0x260   :  { %v2104_v42 = vsub.f32 %v5953_v7, %v2103_v40  ;;  %v2105_v43 = vsub.f32 %v5957_v11, %v2103_v40 }
 0x261   :  { %v4471_v50 = vmul.f32 -1.442695, %v1842_v44  ;;  %v4472_v51 = vmul.f32 -1.442695, %v1843_v45 }
 0x262   :  { %v4507_v48 = vmul.f32 -1.442695, %v2104_v42  ;;  %v4508_v49 = vmul.f32 -1.442695, %v2105_v43 }
 0x264   :  { %5648 = vpow2.f32 %v4507_v48 }
 0x265   :  { %5650 = vpow2.f32 %v4508_v49 }
 0x266   :  { %5652 = vpow2.f32 %v4471_v50 }
 0x267   :  { %5654 = vpow2.f32 %v4472_v51 }
 0x271   :  { %v5649_v52 = vpop.eup %5648 }
 0x272   :  { %v5651_v53 = vpop.eup %5650  ;;  %v2112_v54 = vadd.f32 1.0, %v5649_v52 }
 0x273   :  { %v5653_v55 = vpop.eup %5652  ;;  %v2113_v58 = vadd.f32 1.0, %v5651_v53 }
 0x274   :  { %v5655_v7 = vpop.eup %5654  ;;  %5656 = vrcp.f32 %v2112_v54  ;;  %v1850_v11 = vadd.f32 1.0, %v5653_v55 }
 0x275   :  { %5658 = vrcp.f32 %v2113_v58  ;;  %v1851_v6 = vadd.f32 1.0, %v5655_v7 }
 0x276   :  { %5660 = vrcp.f32 %v1850_v11 }
 0x277   :  { %5662 = vrcp.f32 %v1851_v6 }
 0x281   :  { %v5657_v10 = vpop.eup %5656 }
 0x282   :  { %v5659_v25 = vpop.eup %5658  ;;  %2118 = vst [vmem:[%s6129_s2 + $0x70] sm:$0xff] %v5657_v10 }
 0x283   :  { %v5661_v61 = vpop.eup %5660  ;;  %2119 = vst [vmem:[%s6129_s2 + $0x78] sm:$0xff] %v5659_v25 }
 0x284   :  { %v5663_v38 = vpop.eup %5662  ;;  %1856 = vst [vmem:[%s6129_s2 + $0x60] sm:$0xff] %v5661_v61 }
 0x285   :  { %1857 = vst [vmem:[%s6129_s2 + $0x68] sm:$0xff] %v5663_v38 }
 0x28e   :  { %v6039_v62 = vpop.f32.mrf.mxu0 }
 0x28f   :  { %v6041_v63 = vpop.f32.mrf.mxu1 }
 0x290   :  { %v6043_v0 = vpop.f32.mrf.mxu0 }
 0x291   :  { %v6045_v1 = vpop.f32.mrf.mxu1  ;;  %v3410_v60 = vmax.f32 %v6039_v62, %v6043_v0 }
 0x292   :  { %v3672_v57 = vmax.f32 %v6041_v63, %v6045_v1  ;;  %v3407_v2 = vpop.f32.mrf.mxu0 }
 0x293   :  { %v3669_v3 = vpop.f32.mrf.mxu1  ;;  %3411 = vmax.xlane.f32.xlu0 %v3410_v60 }
 0x294   :  { %3673 = vmax.xlane.f32.xlu1 %v3672_v57  ;;  %v3408_v8 = vpop.f32.mrf.mxu0 }
 0x295   :  { %v3670_v4 = vpop.f32.mrf.mxu1 }
 0x29c   :  { %v2364_v5 = vpop.xlane.xlu0 %2363 }
 0x29d   :  { %v2626_v9 = vpop.xlane.xlu1 %2625  ;;  %v2365_v39 = vmul.f32 0.5, %v2364_v5 }
 0x29e   :  { %v2627_v35 = vmul.f32 0.5, %v2626_v9 }
 0x29f   :  { %v2366_v47 = vsub.f32 %v5983_v18, %v2365_v39  ;;  %v2367_v13 = vsub.f32 %v5987_v56, %v2365_v39 }
 0x2a0   :  { %v2628_v46 = vsub.f32 %v5985_v29, %v2627_v35  ;;  %v2629_v12 = vsub.f32 %v5989_v59, %v2627_v35 }
 0x2a1   :  { %v4543_v21 = vmul.f32 -1.442695, %v2366_v47  ;;  %v4544_v14 = vmul.f32 -1.442695, %v2367_v13 }
 0x2a2   :  { %v4579_v16 = vmul.f32 -1.442695, %v2628_v46  ;;  %v4580_v15 = vmul.f32 -1.442695, %v2629_v12 }
 0x2a4   :  { %5664 = vpow2.f32 %v4579_v16 }
 0x2a5   :  { %5666 = vpow2.f32 %v4580_v15 }
 0x2a6   :  { %5668 = vpow2.f32 %v4543_v21 }
 0x2a7   :  { %5670 = vpow2.f32 %v4544_v14 }
 0x2b1   :  { %v5665_v20 = vpop.eup %5664 }
 0x2b2   :  { %v5667_v17 = vpop.eup %5666  ;;  %v2636_v22 = vadd.f32 1.0, %v5665_v20 }
 0x2b3   :  { %v5669_v23 = vpop.eup %5668  ;;  %v2637_v30 = vadd.f32 1.0, %v5667_v17 }
 0x2b4   :  { %v5671_v29 = vpop.eup %5670  ;;  %5672 = vrcp.f32 %v2636_v22  ;;  %v2374_v59 = vadd.f32 1.0, %v5669_v23 }
 0x2b5   :  { %5674 = vrcp.f32 %v2637_v30  ;;  %v2375_v18 = vadd.f32 1.0, %v5671_v29 }
 0x2b6   :  { %5676 = vrcp.f32 %v2374_v59 }
 0x2b7   :  { %5678 = vrcp.f32 %v2375_v18 }
 0x2c1   :  { %v5673_v56 = vpop.eup %5672 }
 0x2c2   :  { %v5675_v31 = vpop.eup %5674  ;;  %2642 = vst [vmem:[%s6129_s2 + $0x90] sm:$0xff] %v5673_v56 }
 0x2c3   :  { %v5677_v32 = vpop.eup %5676  ;;  %2643 = vst [vmem:[%s6129_s2 + $0x98] sm:$0xff] %v5675_v31 }
 0x2c4   :  { %v5679_v33 = vpop.eup %5678  ;;  %2380 = vst [vmem:[%s6129_s2 + $0x80] sm:$0xff] %v5677_v32 }
 0x2c5   :  { %2381 = vst [vmem:[%s6129_s2 + $0x88] sm:$0xff] %v5679_v33 }
 0x2ce   :  { %v6067_v34 = vpop.f32.mrf.mxu0 }
 0x2cf   :  { %v6069_v24 = vpop.f32.mrf.mxu1 }
 0x2d0   :  { %v6071_v36 = vpop.f32.mrf.mxu0 }
 0x2d1   :  { %v6073_v37 = vpop.f32.mrf.mxu1  ;;  %v3934_v41 = vmax.f32 %v6067_v34, %v6071_v36 }
 0x2d2   :  { %v4196_v40 = vmax.f32 %v6069_v24, %v6073_v37  ;;  %v3931_v42 = vpop.f32.mrf.mxu0 }
 0x2d3   :  { %v4193_v43 = vpop.f32.mrf.mxu1  ;;  %3935 = vmax.xlane.f32.xlu0 %v3934_v41 }
 0x2d4   :  { %4197 = vmax.xlane.f32.xlu1 %v4196_v40  ;;  %v3932_v44 = vpop.f32.mrf.mxu0 }
 0x2d5   :  { %v4194_v45 = vpop.f32.mrf.mxu1 }
 0x2dc   :  { %v2888_v49 = vpop.xlane.xlu0 %2887 }
 0x2dd   :  { %v3150_v48 = vpop.xlane.xlu1 %3149  ;;  %v2889_v51 = vmul.f32 0.5, %v2888_v49 }
 0x2de   :  { %v3151_v50 = vmul.f32 0.5, %v3150_v48 }
 0x2df   :  { %v2890_v54 = vsub.f32 %v6011_v26, %v2889_v51  ;;  %v2891_v55 = vsub.f32 %v6015_v19, %v2889_v51 }
 0x2e0   :  { %v3152_v52 = vsub.f32 %v6013_v27, %v3151_v50  ;;  %v3153_v53 = vsub.f32 %v6017_v28, %v3151_v50 }
 0x2e1   :  { %v4615_v11 = vmul.f32 -1.442695, %v2890_v54  ;;  %v4616_v6 = vmul.f32 -1.442695, %v2891_v55 }
 0x2e2   :  { %v4651_v58 = vmul.f32 -1.442695, %v3152_v52  ;;  %v4652_v7 = vmul.f32 -1.442695, %v3153_v53 }
 0x2e4   :  { %5680 = vpow2.f32 %v4651_v58 }
 0x2e5   :  { %5682 = vpow2.f32 %v4652_v7 }
 0x2e6   :  { %5684 = vpow2.f32 %v4615_v11 }
 0x2e7   :  { %5686 = vpow2.f32 %v4616_v6 }
 0x2f1   :  { %v5681_v10 = vpop.eup %5680 }
 0x2f2   :  { %v5683_v25 = vpop.eup %5682  ;;  %v3160_v61 = vadd.f32 1.0, %v5681_v10 }
 0x2f3   :  { %v5685_v38 = vpop.eup %5684  ;;  %v3161_v57 = vadd.f32 1.0, %v5683_v25 }
 0x2f4   :  { %v5687_v27 = vpop.eup %5686  ;;  %5688 = vrcp.f32 %v3160_v61  ;;  %v2898_v28 = vadd.f32 1.0, %v5685_v38 }
 0x2f5   :  { %5690 = vrcp.f32 %v3161_v57  ;;  %v2899_v26 = vadd.f32 1.0, %v5687_v27 }
 0x2f6   :  { %5692 = vrcp.f32 %v2898_v28 }
 0x2f7   :  { %5694 = vrcp.f32 %v2899_v26 }
 0x301   :  { %v5689_v19 = vpop.eup %5688 }
 0x302   :  { %v5691_v60 = vpop.eup %5690  ;;  %3166 = vst [vmem:[%s6129_s2 + $0xb0] sm:$0xff] %v5689_v19 }
 0x303   :  { %v5693_v2 = vpop.eup %5692  ;;  %3167 = vst [vmem:[%s6129_s2 + $0xb8] sm:$0xff] %v5691_v60 }
 0x304   :  { %v5695_v3 = vpop.eup %5694  ;;  %2904 = vst [vmem:[%s6129_s2 + $0xa0] sm:$0xff] %v5693_v2 }
 0x305   :  { %2905 = vst [vmem:[%s6129_s2 + $0xa8] sm:$0xff] %v5695_v3 }
 0x31c   :  { %v3412_v4 = vpop.xlane.xlu0 %3411 }
 0x31d   :  { %v3674_v8 = vpop.xlane.xlu1 %3673  ;;  %v3413_v5 = vmul.f32 0.5, %v3412_v4 }
 0x31e   :  { %v3675_v9 = vmul.f32 0.5, %v3674_v8 }
 0x31f   :  { %v3414_v46 = vsub.f32 %v6039_v62, %v3413_v5  ;;  %v3415_v12 = vsub.f32 %v6043_v0, %v3413_v5 }
 0x320   :  { %v3676_v35 = vsub.f32 %v6041_v63, %v3675_v9  ;;  %v3677_v39 = vsub.f32 %v6045_v1, %v3675_v9 }
 0x321   :  { %v4687_v16 = vmul.f32 -1.442695, %v3414_v46  ;;  %v4688_v15 = vmul.f32 -1.442695, %v3415_v12 }
 0x322   :  { %v4723_v47 = vmul.f32 -1.442695, %v3676_v35  ;;  %v4724_v13 = vmul.f32 -1.442695, %v3677_v39 }
 0x324   :  { %5696 = vpow2.f32 %v4723_v47 }
 0x325   :  { %5698 = vpow2.f32 %v4724_v13 }
 0x326   :  { %5700 = vpow2.f32 %v4687_v16 }
 0x327   :  { %5702 = vpow2.f32 %v4688_v15 }
 0x331   :  { %v5697_v21 = vpop.eup %5696 }
 0x332   :  { %v5699_v14 = vpop.eup %5698  ;;  %v3684_v20 = vadd.f32 1.0, %v5697_v21 }
 0x333   :  { %v5701_v17 = vpop.eup %5700  ;;  %v3685_v22 = vadd.f32 1.0, %v5699_v14 }
 0x334   :  { %v5703_v63 = vpop.eup %5702  ;;  %5704 = vrcp.f32 %v3684_v20  ;;  %v3422_v1 = vadd.f32 1.0, %v5701_v17 }
 0x335   :  { %5706 = vrcp.f32 %v3685_v22  ;;  %v3423_v62 = vadd.f32 1.0, %v5703_v63 }
 0x336   :  { %5708 = vrcp.f32 %v3422_v1 }
 0x337   :  { %5710 = vrcp.f32 %v3423_v62 }
 0x341   :  { %v5705_v0 = vpop.eup %5704 }
 0x342   :  { %v5707_v23 = vpop.eup %5706  ;;  %3690 = vst [vmem:[%s6129_s2 + $0xd0] sm:$0xff] %v5705_v0 }
 0x343   :  { %v5709_v30 = vpop.eup %5708  ;;  %3691 = vst [vmem:[%s6129_s2 + $0xd8] sm:$0xff] %v5707_v23 }
 0x344   :  { %v5711_v29 = vpop.eup %5710  ;;  %3428 = vst [vmem:[%s6129_s2 + $0xc0] sm:$0xff] %v5709_v30 }
 0x345   :  { %3429 = vst [vmem:[%s6129_s2 + $0xc8] sm:$0xff] %v5711_v29 }
 0x35c   :  { %v3936_v18 = vpop.xlane.xlu0 %3935 }
 0x35d   :  { %v4198_v59 = vpop.xlane.xlu1 %4197  ;;  %v3937_v31 = vmul.f32 0.5, %v3936_v18 }
 0x35e   :  { %v4199_v56 = vmul.f32 0.5, %v4198_v59 }
 0x35f   :  { %v3938_v40 = vsub.f32 %v6067_v34, %v3937_v31  ;;  %v3939_v41 = vsub.f32 %v6071_v36, %v3937_v31 }
 0x360   :  { %v4200_v32 = vsub.f32 %v6069_v24, %v4199_v56  ;;  %v4201_v33 = vsub.f32 %v6073_v37, %v4199_v56 }
 0x361   :  { %v4759_v44 = vmul.f32 -1.442695, %v3938_v40  ;;  %v4760_v45 = vmul.f32 -1.442695, %v3939_v41 }
 0x362   :  { %v4795_v42 = vmul.f32 -1.442695, %v4200_v32  ;;  %v4796_v43 = vmul.f32 -1.442695, %v4201_v33 }
 0x364   :  { %5712 = vpow2.f32 %v4795_v42 }
 0x365   :  { %5714 = vpow2.f32 %v4796_v43 }
 0x366   :  { %5716 = vpow2.f32 %v4759_v44 }
 0x367   :  { %5718 = vpow2.f32 %v4760_v45 }
 0x371   :  { %v5713_v48 = vpop.eup %5712 }
 0x372   :  { %v5715_v49 = vpop.eup %5714  ;;  %v4208_v50 = vadd.f32 1.0, %v5713_v48 }
 0x373   :  { %v5717_v51 = vpop.eup %5716  ;;  %v4209_v52 = vadd.f32 1.0, %v5715_v49 }
 0x374   :  { %v5719_v24 = vpop.eup %5718  ;;  %5720 = vrcp.f32 %v4208_v50  ;;  %v3946_v37 = vadd.f32 1.0, %v5717_v51 }
 0x375   :  { %5722 = vrcp.f32 %v4209_v52  ;;  %v3947_v34 = vadd.f32 1.0, %v5719_v24 }
 0x376   :  { %5724 = vrcp.f32 %v3946_v37 }
 0x377   :  { %5726 = vrcp.f32 %v3947_v34 }
 0x381   :  { %v5721_v36 = vpop.eup %5720 }
 0x382   :  { %v5723_v53 = vpop.eup %5722  ;;  %4214 = vst [vmem:[%s6129_s2 + $0xf0] sm:$0xff] %v5721_v36 }
 0x383   :  { %v5725_v54 = vpop.eup %5724  ;;  %4215 = vst [vmem:[%s6129_s2 + $0xf8] sm:$0xff] %v5723_v53 }
 0x384   :  { %v5727_v55 = vpop.eup %5726  ;;  %3952 = vst [vmem:[%s6129_s2 + $0xe0] sm:$0xff] %v5725_v54 }
 0x385   :  { %3953 = vst [vmem:[%s6129_s2 + $0xe8] sm:$0xff] %v5727_v55 }
 0x386   :  { %4220 = vsyncpa [#allocation3], 1 }

</bundles_post_ra>
